<compile_context>
chip_gen: v7x
topology: tpu7x:2x2x1
jax: 0.10.0
libtpu: 0.0.40
codegen_flags: <defaults>
</compile_context>

<pallas_src>
import jax
import jax.numpy as jnp
from jax import lax
from jax.experimental import pallas as pl
from jax.experimental.pallas import tpu as pltpu

INPUT_SIZE = 4
HIDDEN_SIZE = 128          # spec uses 512; scaled down for the small demo
NUM_LAYERS = 5
OUTPUT_SIZE = 1
BATCH = 16
SEQ = 8
B_TILE = 8                 # batch rows per grid step (one f32 sublane group)


def _rnn_kernel(x_ref,        # (T, Bt, D_in)   f32, time-major input tile
                wih0_ref,     # (D_in, H)       bf16, layer-0 input weights (transposed)
                whh0_ref,     # (H, H)          bf16, layer-0 recurrent weights (transposed)
                b0_ref,       # (1, H)          f32,  layer-0 combined bias (b_ih + b_hh)
                wih_ref,      # (L-1, H, H)     bf16, layers 1.. input weights (transposed)
                whh_ref,      # (L-1, H, H)     bf16, layers 1.. recurrent weights (transposed)
                b_ref,        # (L-1, 1, H)     f32,  layers 1.. combined biases
                wfc_ref,      # (1, H)          f32,  fc weight (PyTorch (out,in) layout)
                bfc_ref,      # (1, 1)          f32,  fc bias
                out_ref,      # (Bt, 1)         f32,  final output tile
                seq_scratch): # VMEM (T*Bt, H)  f32,  per-layer pre-activations / outputs
    T, BT, _ = x_ref.shape
    n_rest = wih_ref.shape[0]
    bf16 = jnp.bfloat16

    def recurrence(whh):
        """Serial tanh recurrence over the hoisted pre-activations in seq_scratch.

        Fully unrolled (T is small & static) with static slices so the
        scheduler sees across steps.  Only one MXU matmul per step remains on
        the critical path.  h_0 = 0, so step 0 needs no matmul at all.
        """
        h = jnp.tanh(seq_scratch[pl.ds(0, BT), :])
        seq_scratch[pl.ds(0, BT), :] = h
        for t in range(1, T):
            z = seq_scratch[pl.ds(t * BT, BT), :]
            h = jnp.tanh(z + jnp.dot(h.astype(bf16), whh,
                                     preferred_element_type=jnp.float32))
            seq_scratch[pl.ds(t * BT, BT), :] = h
        return h

    # ---- layer 0: input->hidden GEMMs hoisted out of the recurrence.
    # Done per-timestep ((Bt, 4) @ (4, H)) directly into scratch: K == 4 so the
    # MXU work is negligible, and it avoids reshaping the 4-lane input tile.
    for t in range(T):
        seq_scratch[pl.ds(t * BT, BT), :] = (
            jnp.dot(x_ref[t].astype(bf16), wih0_ref[...],
                    preferred_element_type=jnp.float32)
            + b0_ref[...])
    h = recurrence(whh0_ref[...])

    # ---- layers 1 .. L-1: one hoisted (T*Bt, H) @ (H, H) GEMM + recurrence ----
    for l in range(n_rest):                      # static unroll over layers
        prev = seq_scratch[...].astype(bf16)     # previous layer's outputs (T*Bt, H)
        seq_scratch[...] = (
            jnp.dot(prev, wih_ref[l], preferred_element_type=jnp.float32)
            + b_ref[l])
        h = recurrence(whh_ref[l])

    # ---- fc on last timestep + ReLU, as a VPU/XLU reduction (OUT == 1) ----
    logits = jnp.sum(h * wfc_ref[...], axis=-1, keepdims=True) + bfc_ref[...]
    out_ref[...] = jnp.maximum(logits, 0.0)


def simple_rnn_forward(x, params):
    """x: (B, T, D_in) batch-first, like the PyTorch module."""
    B, T, d_in = x.shape
    H = params["whh0"].shape[0]
    out_dim = params["bfc"].shape[1]
    L_rest = params["wih_rest"].shape[0]
    assert B % B_TILE == 0, "batch must be a multiple of B_TILE"

    x_tm = jnp.transpose(x, (1, 0, 2))            # time-major (T, B, D_in)
    bf = jnp.bfloat16

    def _full(shape):                             # whole-array block, fixed index
        zeros = (0,) * len(shape)
        return pl.BlockSpec(shape, lambda i: zeros)

    in_specs = [
        pl.BlockSpec((T, B_TILE, d_in), lambda i: (0, i, 0)),   # x: tiled over batch
        _full((d_in, H)),                                       # wih0
        _full((H, H)),                                          # whh0
        _full((1, H)),                                          # b0
        _full((L_rest, H, H)),                                  # wih_rest
        _full((L_rest, H, H)),                                  # whh_rest
        _full((L_rest, 1, H)),                                  # b_rest
        _full((1, H)),                                          # wfc
        _full((1, out_dim)),                                    # bfc
    ]
    out_specs = pl.BlockSpec((B_TILE, out_dim), lambda i: (i, 0))

    return pl.pallas_call(
        _rnn_kernel,
        out_shape=jax.ShapeDtypeStruct((B, out_dim), jnp.float32),
        grid=(B // B_TILE,),
        in_specs=in_specs,
        out_specs=out_specs,
        scratch_shapes=[pltpu.VMEM((T * B_TILE, H), jnp.float32)],
        compiler_params=pltpu.CompilerParams(
            dimension_semantics=("parallel",)),   # batch tiles -> both TCs on v7x
    )(x_tm,
      params["wih0"].astype(bf), params["whh0"].astype(bf), params["b0"],
      params["wih_rest"].astype(bf), params["whh_rest"].astype(bf),
      params["b_rest"],
      params["wfc"], params["bfc"])


def make_params(key):
    """Deterministic init (uniform +-1/sqrt(H), like nn.RNN / nn.Linear)."""
    scale = 1.0 / jnp.sqrt(jnp.float32(HIDDEN_SIZE))
    ks = jax.random.split(key, 10)
    u = lambda k, shape: jax.random.uniform(
        k, shape, jnp.float32, minval=-scale, maxval=scale)
    return {
        # stored transposed: (in_features, out_features)
        "wih0": u(ks[0], (INPUT_SIZE, HIDDEN_SIZE)),
        "whh0": u(ks[1], (HIDDEN_SIZE, HIDDEN_SIZE)),
        "b0": u(ks[2], (1, HIDDEN_SIZE)) + u(ks[3], (1, HIDDEN_SIZE)),   # b_ih + b_hh
        "wih_rest": u(ks[4], (NUM_LAYERS - 1, HIDDEN_SIZE, HIDDEN_SIZE)),
        "whh_rest": u(ks[5], (NUM_LAYERS - 1, HIDDEN_SIZE, HIDDEN_SIZE)),
        "b_rest": u(ks[6], (NUM_LAYERS - 1, 1, HIDDEN_SIZE))
                  + u(ks[7], (NUM_LAYERS - 1, 1, HIDDEN_SIZE)),          # b_ih + b_hh
        # fc kept in natural PyTorch (out, in) layout so the kernel can do a
        # broadcast-multiply + lane reduction instead of a 1-lane matmul.
        "wfc": u(ks[8], (1, HIDDEN_SIZE)),
        "bfc": u(ks[9], (1, OUTPUT_SIZE)),
    }


def reference_forward(x, params):
    """Pure-JAX reference mirroring the kernel's math (bf16 MXU operands,
    f32 accumulation/elementwise), structured like nn.RNN(tanh)+Linear+ReLU."""
    B, T, _ = x.shape
    H = params["whh0"].shape[0]
    bf = jnp.bfloat16

    def run_layer(seq, wih, whh, b):              # seq: (T, B, K) f32
        k = seq.shape[-1]
        wih_b = wih.astype(bf)
        whh_b = whh.astype(bf)
        z = (jnp.dot(seq.astype(bf).reshape(T * B, k), wih_b,
                     preferred_element_type=jnp.float32) + b).reshape(T, B, H)

        def step(h, z_t):
            h_new = jnp.tanh(z_t + jnp.dot(h.astype(bf), whh_b,
                                           preferred_element_type=jnp.float32))
            return h_new, h_new

        _, outs = lax.scan(step, jnp.zeros((B, H), jnp.float32), z)
        return outs                               # (T, B, H)

    seq = jnp.transpose(x, (1, 0, 2))             # time-major
    seq = run_layer(seq, params["wih0"], params["whh0"], params["b0"])
    for l in range(NUM_LAYERS - 1):
        seq = run_layer(seq, params["wih_rest"][l], params["whh_rest"][l],
                        params["b_rest"][l])
    h_last = seq[-1]                              # (B, H)
    logits = jnp.sum(h_last * params["wfc"], axis=-1, keepdims=True) + params["bfc"]
    return jnp.maximum(logits, 0.0)


if __name__ == "__main__":
    key = jax.random.PRNGKey(0)
    k_x, k_p = jax.random.split(key)
    x = jax.random.normal(k_x, (BATCH, SEQ, INPUT_SIZE), jnp.float32)
    params = make_params(k_p)

    out = jax.block_until_ready(simple_rnn_forward(x, params))
    ref = reference_forward(x, params)

    assert out.shape == (BATCH, OUTPUT_SIZE), out.shape
    # bf16-MXU kernel vs. bf16-MXU reference: differences only from reduction
    # order / transcendental approximation.
    assert jnp.allclose(out, ref, rtol=1e-2, atol=1e-2), (
        out, ref, jnp.max(jnp.abs(out - ref)))
    print("KERNEL_OK")
</pallas_src>

<mosaic_0001>
module attributes {stable_mosaic.version = 11 : i64} {
  func.func @_rnn_kernel(%arg0: i32, %arg1: memref<8x8x4xf32, #tpu.memory_space<vmem>>, %arg2: memref<4x128xbf16, #tpu.memory_space<vmem>>, %arg3: memref<128x128xbf16, #tpu.memory_space<vmem>>, %arg4: memref<1x128xf32, #tpu.memory_space<vmem>>, %arg5: memref<4x128x128xbf16, #tpu.memory_space<vmem>>, %arg6: memref<4x128x128xbf16, #tpu.memory_space<vmem>>, %arg7: memref<4x1x128xf32, #tpu.memory_space<vmem>>, %arg8: memref<1x128xf32, #tpu.memory_space<vmem>>, %arg9: memref<1x1xf32, #tpu.memory_space<vmem>>, %arg10: memref<8x1xf32, #tpu.memory_space<vmem>>, %arg11: memref<64x128xf32, #tpu.memory_space<vmem>>) attributes {dimension_semantics = [#tpu.dimension_semantics<parallel>], iteration_bounds = array<i64: 2>, scalar_prefetch = 0 : i64, scratch_operands = 1 : i64, tpu.core_type = #tpu.core_type<tc>, window_params = [{transform_indices = @transform_0, window_bounds = array<i64: 8, 8, 4>}, {pipeline_mode = #tpu.pipeline_mode<synchronous>, transform_indices = @transform_1, window_bounds = array<i64: 4, 128>}, {pipeline_mode = #tpu.pipeline_mode<synchronous>, transform_indices = @transform_2, window_bounds = array<i64: 128, 128>}, {pipeline_mode = #tpu.pipeline_mode<synchronous>, transform_indices = @transform_3, window_bounds = array<i64: 1, 128>}, {pipeline_mode = #tpu.pipeline_mode<synchronous>, transform_indices = @transform_4, window_bounds = array<i64: 4, 128, 128>}, {pipeline_mode = #tpu.pipeline_mode<synchronous>, transform_indices = @transform_5, window_bounds = array<i64: 4, 128, 128>}, {pipeline_mode = #tpu.pipeline_mode<synchronous>, transform_indices = @transform_6, window_bounds = array<i64: 4, 1, 128>}, {pipeline_mode = #tpu.pipeline_mode<synchronous>, transform_indices = @transform_7, window_bounds = array<i64: 1, 128>}, {pipeline_mode = #tpu.pipeline_mode<synchronous>, transform_indices = @transform_8, window_bounds = array<i64: 1, 1>}, {transform_indices = @transform_9, window_bounds = array<i64: 8, 1>}]} {
    %c0 = arith.constant 0 : index
    %c0_0 = arith.constant 0 : index
    %c0_1 = arith.constant 0 : index
    %0 = vector.load %arg1[%c0, %c0_0, %c0_1] : memref<8x8x4xf32, #tpu.memory_space<vmem>>, vector<1x8x4xf32>
    %1 = vector.shape_cast %0 : vector<1x8x4xf32> to vector<8x4xf32>
    %2 = arith.truncf %1 : vector<8x4xf32> to vector<8x4xbf16>
    %c0_2 = arith.constant 0 : index
    %c0_3 = arith.constant 0 : index
    %3 = vector.load %arg2[%c0_2, %c0_3] : memref<4x128xbf16, #tpu.memory_space<vmem>>, vector<4x128xbf16>
    %cst = arith.constant dense<0.000000e+00> : vector<8x128xf32>
    %4 = tpu.matmul %2, %3, %cst {dimension_numbers = #tpu.dot_dimension_numbers<[1], [0], [0], [1], [0, 0, 1, 1], [], []>} : vector<8x4xbf16>, vector<4x128xbf16>, vector<8x128xf32> -> vector<8x128xf32>
    %c0_4 = arith.constant 0 : index
    %c0_5 = arith.constant 0 : index
    %5 = vector.load %arg4[%c0_4, %c0_5] : memref<1x128xf32, #tpu.memory_space<vmem>>, vector<1x128xf32>
    %6 = vector.broadcast %5 : vector<1x128xf32> to vector<8x128xf32>
    %7 = arith.addf %4, %6 : vector<8x128xf32>
    %c0_6 = arith.constant 0 : index
    %c0_7 = arith.constant 0 : index
    %8 = vector.load %arg11[%c0_6, %c0_7] : memref<64x128xf32, #tpu.memory_space<vmem>>, vector<8x128xf32>
    tpu.vector_store %arg11[%c0_6, %c0_7], %7 {strides = array<i32>} : memref<64x128xf32, #tpu.memory_space<vmem>>, vector<8x128xf32>,
    %c1 = arith.constant 1 : index
    %c0_8 = arith.constant 0 : index
    %c0_9 = arith.constant 0 : index
    %9 = vector.load %arg1[%c1, %c0_8, %c0_9] : memref<8x8x4xf32, #tpu.memory_space<vmem>>, vector<1x8x4xf32>
    %10 = vector.shape_cast %9 : vector<1x8x4xf32> to vector<8x4xf32>
    %11 = arith.truncf %10 : vector<8x4xf32> to vector<8x4xbf16>
    %c0_10 = arith.constant 0 : index
    %c0_11 = arith.constant 0 : index
    %12 = vector.load %arg2[%c0_10, %c0_11] : memref<4x128xbf16, #tpu.memory_space<vmem>>, vector<4x128xbf16>
    %cst_12 = arith.constant dense<0.000000e+00> : vector<8x128xf32>
    %13 = tpu.matmul %11, %12, %cst_12 {dimension_numbers = #tpu.dot_dimension_numbers<[1], [0], [0], [1], [0, 0, 1, 1], [], []>} : vector<8x4xbf16>, vector<4x128xbf16>, vector<8x128xf32> -> vector<8x128xf32>
    %c0_13 = arith.constant 0 : index
    %c0_14 = arith.constant 0 : index
    %14 = vector.load %arg4[%c0_13, %c0_14] : memref<1x128xf32, #tpu.memory_space<vmem>>, vector<1x128xf32>
    %15 = vector.broadcast %14 : vector<1x128xf32> to vector<8x128xf32>
    %16 = arith.addf %13, %15 : vector<8x128xf32>
    %c8 = arith.constant 8 : index
    %c0_15 = arith.constant 0 : index
    %17 = vector.load %arg11[%c8, %c0_15] : memref<64x128xf32, #tpu.memory_space<vmem>>, vector<8x128xf32>
    tpu.vector_store %arg11[%c8, %c0_15], %16 {strides = array<i32>} : memref<64x128xf32, #tpu.memory_space<vmem>>, vector<8x128xf32>,
    %c2 = arith.constant 2 : index
    %c0_16 = arith.constant 0 : index
    %c0_17 = arith.constant 0 : index
    %18 = vector.load %arg1[%c2, %c0_16, %c0_17] : memref<8x8x4xf32, #tpu.memory_space<vmem>>, vector<1x8x4xf32>
    %19 = vector.shape_cast %18 : vector<1x8x4xf32> to vector<8x4xf32>
    %20 = arith.truncf %19 : vector<8x4xf32> to vector<8x4xbf16>
    %c0_18 = arith.constant 0 : index
    %c0_19 = arith.constant 0 : index
    %21 = vector.load %arg2[%c0_18, %c0_19] : memref<4x128xbf16, #tpu.memory_space<vmem>>, vector<4x128xbf16>
    %cst_20 = arith.constant dense<0.000000e+00> : vector<8x128xf32>
    %22 = tpu.matmul %20, %21, %cst_20 {dimension_numbers = #tpu.dot_dimension_numbers<[1], [0], [0], [1], [0, 0, 1, 1], [], []>} : vector<8x4xbf16>, vector<4x128xbf16>, vector<8x128xf32> -> vector<8x128xf32>
    %c0_21 = arith.constant 0 : index
    %c0_22 = arith.constant 0 : index
    %23 = vector.load %arg4[%c0_21, %c0_22] : memref<1x128xf32, #tpu.memory_space<vmem>>, vector<1x128xf32>
    %24 = vector.broadcast %23 : vector<1x128xf32> to vector<8x128xf32>
    %25 = arith.addf %22, %24 : vector<8x128xf32>
    %c16 = arith.constant 16 : index
    %c0_23 = arith.constant 0 : index
    %26 = vector.load %arg11[%c16, %c0_23] : memref<64x128xf32, #tpu.memory_space<vmem>>, vector<8x128xf32>
    tpu.vector_store %arg11[%c16, %c0_23], %25 {strides = array<i32>} : memref<64x128xf32, #tpu.memory_space<vmem>>, vector<8x128xf32>,
    %c3 = arith.constant 3 : index
    %c0_24 = arith.constant 0 : index
    %c0_25 = arith.constant 0 : index
    %27 = vector.load %arg1[%c3, %c0_24, %c0_25] : memref<8x8x4xf32, #tpu.memory_space<vmem>>, vector<1x8x4xf32>
    %28 = vector.shape_cast %27 : vector<1x8x4xf32> to vector<8x4xf32>
    %29 = arith.truncf %28 : vector<8x4xf32> to vector<8x4xbf16>
    %c0_26 = arith.constant 0 : index
    %c0_27 = arith.constant 0 : index
    %30 = vector.load %arg2[%c0_26, %c0_27] : memref<4x128xbf16, #tpu.memory_space<vmem>>, vector<4x128xbf16>
    %cst_28 = arith.constant dense<0.000000e+00> : vector<8x128xf32>
    %31 = tpu.matmul %29, %30, %cst_28 {dimension_numbers = #tpu.dot_dimension_numbers<[1], [0], [0], [1], [0, 0, 1, 1], [], []>} : vector<8x4xbf16>, vector<4x128xbf16>, vector<8x128xf32> -> vector<8x128xf32>
    %c0_29 = arith.constant 0 : index
    %c0_30 = arith.constant 0 : index
    %32 = vector.load %arg4[%c0_29, %c0_30] : memref<1x128xf32, #tpu.memory_space<vmem>>, vector<1x128xf32>
    %33 = vector.broadcast %32 : vector<1x128xf32> to vector<8x128xf32>
    %34 = arith.addf %31, %33 : vector<8x128xf32>
    %c24 = arith.constant 24 : index
    %c0_31 = arith.constant 0 : index
    %35 = vector.load %arg11[%c24, %c0_31] : memref<64x128xf32, #tpu.memory_space<vmem>>, vector<8x128xf32>
    tpu.vector_store %arg11[%c24, %c0_31], %34 {strides = array<i32>} : memref<64x128xf32, #tpu.memory_space<vmem>>, vector<8x128xf32>,
    %c4 = arith.constant 4 : index
    %c0_32 = arith.constant 0 : index
    %c0_33 = arith.constant 0 : index
    %36 = vector.load %arg1[%c4, %c0_32, %c0_33] : memref<8x8x4xf32, #tpu.memory_space<vmem>>, vector<1x8x4xf32>
    %37 = vector.shape_cast %36 : vector<1x8x4xf32> to vector<8x4xf32>
    %38 = arith.truncf %37 : vector<8x4xf32> to vector<8x4xbf16>
    %c0_34 = arith.constant 0 : index
    %c0_35 = arith.constant 0 : index
    %39 = vector.load %arg2[%c0_34, %c0_35] : memref<4x128xbf16, #tpu.memory_space<vmem>>, vector<4x128xbf16>
    %cst_36 = arith.constant dense<0.000000e+00> : vector<8x128xf32>
    %40 = tpu.matmul %38, %39, %cst_36 {dimension_numbers = #tpu.dot_dimension_numbers<[1], [0], [0], [1], [0, 0, 1, 1], [], []>} : vector<8x4xbf16>, vector<4x128xbf16>, vector<8x128xf32> -> vector<8x128xf32>
    %c0_37 = arith.constant 0 : index
    %c0_38 = arith.constant 0 : index
    %41 = vector.load %arg4[%c0_37, %c0_38] : memref<1x128xf32, #tpu.memory_space<vmem>>, vector<1x128xf32>
    %42 = vector.broadcast %41 : vector<1x128xf32> to vector<8x128xf32>
    %43 = arith.addf %40, %42 : vector<8x128xf32>
    %c32 = arith.constant 32 : index
    %c0_39 = arith.constant 0 : index
    %44 = vector.load %arg11[%c32, %c0_39] : memref<64x128xf32, #tpu.memory_space<vmem>>, vector<8x128xf32>
    tpu.vector_store %arg11[%c32, %c0_39], %43 {strides = array<i32>} : memref<64x128xf32, #tpu.memory_space<vmem>>, vector<8x128xf32>,
    %c5 = arith.constant 5 : index
    %c0_40 = arith.constant 0 : index
    %c0_41 = arith.constant 0 : index
    %45 = vector.load %arg1[%c5, %c0_40, %c0_41] : memref<8x8x4xf32, #tpu.memory_space<vmem>>, vector<1x8x4xf32>
    %46 = vector.shape_cast %45 : vector<1x8x4xf32> to vector<8x4xf32>
    %47 = arith.truncf %46 : vector<8x4xf32> to vector<8x4xbf16>
    %c0_42 = arith.constant 0 : index
    %c0_43 = arith.constant 0 : index
    %48 = vector.load %arg2[%c0_42, %c0_43] : memref<4x128xbf16, #tpu.memory_space<vmem>>, vector<4x128xbf16>
    %cst_44 = arith.constant dense<0.000000e+00> : vector<8x128xf32>
    %49 = tpu.matmul %47, %48, %cst_44 {dimension_numbers = #tpu.dot_dimension_numbers<[1], [0], [0], [1], [0, 0, 1, 1], [], []>} : vector<8x4xbf16>, vector<4x128xbf16>, vector<8x128xf32> -> vector<8x128xf32>
    %c0_45 = arith.constant 0 : index
    %c0_46 = arith.constant 0 : index
    %50 = vector.load %arg4[%c0_45, %c0_46] : memref<1x128xf32, #tpu.memory_space<vmem>>, vector<1x128xf32>
    %51 = vector.broadcast %50 : vector<1x128xf32> to vector<8x128xf32>
    %52 = arith.addf %49, %51 : vector<8x128xf32>
    %c40 = arith.constant 40 : index
    %c0_47 = arith.constant 0 : index
    %53 = vector.load %arg11[%c40, %c0_47] : memref<64x128xf32, #tpu.memory_space<vmem>>, vector<8x128xf32>
    tpu.vector_store %arg11[%c40, %c0_47], %52 {strides = array<i32>} : memref<64x128xf32, #tpu.memory_space<vmem>>, vector<8x128xf32>,
    %c6 = arith.constant 6 : index
    %c0_48 = arith.constant 0 : index
    %c0_49 = arith.constant 0 : index
    %54 = vector.load %arg1[%c6, %c0_48, %c0_49] : memref<8x8x4xf32, #tpu.memory_space<vmem>>, vector<1x8x4xf32>
    %55 = vector.shape_cast %54 : vector<1x8x4xf32> to vector<8x4xf32>
    %56 = arith.truncf %55 : vector<8x4xf32> to vector<8x4xbf16>
    %c0_50 = arith.constant 0 : index
    %c0_51 = arith.constant 0 : index
    %57 = vector.load %arg2[%c0_50, %c0_51] : memref<4x128xbf16, #tpu.memory_space<vmem>>, vector<4x128xbf16>
    %cst_52 = arith.constant dense<0.000000e+00> : vector<8x128xf32>
    %58 = tpu.matmul %56, %57, %cst_52 {dimension_numbers = #tpu.dot_dimension_numbers<[1], [0], [0], [1], [0, 0, 1, 1], [], []>} : vector<8x4xbf16>, vector<4x128xbf16>, vector<8x128xf32> -> vector<8x128xf32>
    %c0_53 = arith.constant 0 : index
    %c0_54 = arith.constant 0 : index
    %59 = vector.load %arg4[%c0_53, %c0_54] : memref<1x128xf32, #tpu.memory_space<vmem>>, vector<1x128xf32>
    %60 = vector.broadcast %59 : vector<1x128xf32> to vector<8x128xf32>
    %61 = arith.addf %58, %60 : vector<8x128xf32>
    %c48 = arith.constant 48 : index
    %c0_55 = arith.constant 0 : index
    %62 = vector.load %arg11[%c48, %c0_55] : memref<64x128xf32, #tpu.memory_space<vmem>>, vector<8x128xf32>
    tpu.vector_store %arg11[%c48, %c0_55], %61 {strides = array<i32>} : memref<64x128xf32, #tpu.memory_space<vmem>>, vector<8x128xf32>,
    %c7 = arith.constant 7 : index
    %c0_56 = arith.constant 0 : index
    %c0_57 = arith.constant 0 : index
    %63 = vector.load %arg1[%c7, %c0_56, %c0_57] : memref<8x8x4xf32, #tpu.memory_space<vmem>>, vector<1x8x4xf32>
    %64 = vector.shape_cast %63 : vector<1x8x4xf32> to vector<8x4xf32>
    %65 = arith.truncf %64 : vector<8x4xf32> to vector<8x4xbf16>
    %c0_58 = arith.constant 0 : index
    %c0_59 = arith.constant 0 : index
    %66 = vector.load %arg2[%c0_58, %c0_59] : memref<4x128xbf16, #tpu.memory_space<vmem>>, vector<4x128xbf16>
    %cst_60 = arith.constant dense<0.000000e+00> : vector<8x128xf32>
    %67 = tpu.matmul %65, %66, %cst_60 {dimension_numbers = #tpu.dot_dimension_numbers<[1], [0], [0], [1], [0, 0, 1, 1], [], []>} : vector<8x4xbf16>, vector<4x128xbf16>, vector<8x128xf32> -> vector<8x128xf32>
    %c0_61 = arith.constant 0 : index
    %c0_62 = arith.constant 0 : index
    %68 = vector.load %arg4[%c0_61, %c0_62] : memref<1x128xf32, #tpu.memory_space<vmem>>, vector<1x128xf32>
    %69 = vector.broadcast %68 : vector<1x128xf32> to vector<8x128xf32>
    %70 = arith.addf %67, %69 : vector<8x128xf32>
    %c56 = arith.constant 56 : index
    %c0_63 = arith.constant 0 : index
    %71 = vector.load %arg11[%c56, %c0_63] : memref<64x128xf32, #tpu.memory_space<vmem>>, vector<8x128xf32>
    tpu.vector_store %arg11[%c56, %c0_63], %70 {strides = array<i32>} : memref<64x128xf32, #tpu.memory_space<vmem>>, vector<8x128xf32>,
    %c0_64 = arith.constant 0 : index
    %c0_65 = arith.constant 0 : index
    %72 = vector.load %arg3[%c0_64, %c0_65] : memref<128x128xbf16, #tpu.memory_space<vmem>>, vector<128x128xbf16>
    %c0_66 = arith.constant 0 : index
    %c0_67 = arith.constant 0 : index
    %73 = vector.load %arg11[%c0_66, %c0_67] : memref<64x128xf32, #tpu.memory_space<vmem>>, vector<8x128xf32>
    %74 = math.tanh %73 : vector<8x128xf32>
    %c0_68 = arith.constant 0 : index
    %c0_69 = arith.constant 0 : index
    %75 = vector.load %arg11[%c0_68, %c0_69] : memref<64x128xf32, #tpu.memory_space<vmem>>, vector<8x128xf32>
    tpu.vector_store %arg11[%c0_68, %c0_69], %74 {strides = array<i32>} : memref<64x128xf32, #tpu.memory_space<vmem>>, vector<8x128xf32>,
    %c8_70 = arith.constant 8 : index
    %c0_71 = arith.constant 0 : index
    %76 = vector.load %arg11[%c8_70, %c0_71] : memref<64x128xf32, #tpu.memory_space<vmem>>, vector<8x128xf32>
    %77 = arith.truncf %74 : vector<8x128xf32> to vector<8x128xbf16>
    %cst_72 = arith.constant dense<0.000000e+00> : vector<8x128xf32>
    %78 = tpu.matmul %77, %72, %cst_72 {dimension_numbers = #tpu.dot_dimension_numbers<[1], [0], [0], [1], [0, 0, 1, 1], [], []>} : vector<8x128xbf16>, vector<128x128xbf16>, vector<8x128xf32> -> vector<8x128xf32>
    %79 = arith.addf %76, %78 : vector<8x128xf32>
    %80 = math.tanh %79 : vector<8x128xf32>
    %c8_73 = arith.constant 8 : index
    %c0_74 = arith.constant 0 : index
    %81 = vector.load %arg11[%c8_73, %c0_74] : memref<64x128xf32, #tpu.memory_space<vmem>>, vector<8x128xf32>
    tpu.vector_store %arg11[%c8_73, %c0_74], %80 {strides = array<i32>} : memref<64x128xf32, #tpu.memory_space<vmem>>, vector<8x128xf32>,
    %c16_75 = arith.constant 16 : index
    %c0_76 = arith.constant 0 : index
    %82 = vector.load %arg11[%c16_75, %c0_76] : memref<64x128xf32, #tpu.memory_space<vmem>>, vector<8x128xf32>
    %83 = arith.truncf %80 : vector<8x128xf32> to vector<8x128xbf16>
    %cst_77 = arith.constant dense<0.000000e+00> : vector<8x128xf32>
    %84 = tpu.matmul %83, %72, %cst_77 {dimension_numbers = #tpu.dot_dimension_numbers<[1], [0], [0], [1], [0, 0, 1, 1], [], []>} : vector<8x128xbf16>, vector<128x128xbf16>, vector<8x128xf32> -> vector<8x128xf32>
    %85 = arith.addf %82, %84 : vector<8x128xf32>
    %86 = math.tanh %85 : vector<8x128xf32>
    %c16_78 = arith.constant 16 : index
    %c0_79 = arith.constant 0 : index
    %87 = vector.load %arg11[%c16_78, %c0_79] : memref<64x128xf32, #tpu.memory_space<vmem>>, vector<8x128xf32>
    tpu.vector_store %arg11[%c16_78, %c0_79], %86 {strides = array<i32>} : memref<64x128xf32, #tpu.memory_space<vmem>>, vector<8x128xf32>,
    %c24_80 = arith.constant 24 : index
    %c0_81 = arith.constant 0 : index
    %88 = vector.load %arg11[%c24_80, %c0_81] : memref<64x128xf32, #tpu.memory_space<vmem>>, vector<8x128xf32>
    %89 = arith.truncf %86 : vector<8x128xf32> to vector<8x128xbf16>
    %cst_82 = arith.constant dense<0.000000e+00> : vector<8x128xf32>
    %90 = tpu.matmul %89, %72, %cst_82 {dimension_numbers = #tpu.dot_dimension_numbers<[1], [0], [0], [1], [0, 0, 1, 1], [], []>} : vector<8x128xbf16>, vector<128x128xbf16>, vector<8x128xf32> -> vector<8x128xf32>
    %91 = arith.addf %88, %90 : vector<8x128xf32>
    %92 = math.tanh %91 : vector<8x128xf32>
    %c24_83 = arith.constant 24 : index
    %c0_84 = arith.constant 0 : index
    %93 = vector.load %arg11[%c24_83, %c0_84] : memref<64x128xf32, #tpu.memory_space<vmem>>, vector<8x128xf32>
    tpu.vector_store %arg11[%c24_83, %c0_84], %92 {strides = array<i32>} : memref<64x128xf32, #tpu.memory_space<vmem>>, vector<8x128xf32>,
    %c32_85 = arith.constant 32 : index
    %c0_86 = arith.constant 0 : index
    %94 = vector.load %arg11[%c32_85, %c0_86] : memref<64x128xf32, #tpu.memory_space<vmem>>, vector<8x128xf32>
    %95 = arith.truncf %92 : vector<8x128xf32> to vector<8x128xbf16>
    %cst_87 = arith.constant dense<0.000000e+00> : vector<8x128xf32>
    %96 = tpu.matmul %95, %72, %cst_87 {dimension_numbers = #tpu.dot_dimension_numbers<[1], [0], [0], [1], [0, 0, 1, 1], [], []>} : vector<8x128xbf16>, vector<128x128xbf16>, vector<8x128xf32> -> vector<8x128xf32>
    %97 = arith.addf %94, %96 : vector<8x128xf32>
    %98 = math.tanh %97 : vector<8x128xf32>
    %c32_88 = arith.constant 32 : index
    %c0_89 = arith.constant 0 : index
    %99 = vector.load %arg11[%c32_88, %c0_89] : memref<64x128xf32, #tpu.memory_space<vmem>>, vector<8x128xf32>
    tpu.vector_store %arg11[%c32_88, %c0_89], %98 {strides = array<i32>} : memref<64x128xf32, #tpu.memory_space<vmem>>, vector<8x128xf32>,
    %c40_90 = arith.constant 40 : index
    %c0_91 = arith.constant 0 : index
    %100 = vector.load %arg11[%c40_90, %c0_91] : memref<64x128xf32, #tpu.memory_space<vmem>>, vector<8x128xf32>
    %101 = arith.truncf %98 : vector<8x128xf32> to vector<8x128xbf16>
    %cst_92 = arith.constant dense<0.000000e+00> : vector<8x128xf32>
    %102 = tpu.matmul %101, %72, %cst_92 {dimension_numbers = #tpu.dot_dimension_numbers<[1], [0], [0], [1], [0, 0, 1, 1], [], []>} : vector<8x128xbf16>, vector<128x128xbf16>, vector<8x128xf32> -> vector<8x128xf32>
    %103 = arith.addf %100, %102 : vector<8x128xf32>
    %104 = math.tanh %103 : vector<8x128xf32>
    %c40_93 = arith.constant 40 : index
    %c0_94 = arith.constant 0 : index
    %105 = vector.load %arg11[%c40_93, %c0_94] : memref<64x128xf32, #tpu.memory_space<vmem>>, vector<8x128xf32>
    tpu.vector_store %arg11[%c40_93, %c0_94], %104 {strides = array<i32>} : memref<64x128xf32, #tpu.memory_space<vmem>>, vector<8x128xf32>,
    %c48_95 = arith.constant 48 : index
    %c0_96 = arith.constant 0 : index
    %106 = vector.load %arg11[%c48_95, %c0_96] : memref<64x128xf32, #tpu.memory_space<vmem>>, vector<8x128xf32>
    %107 = arith.truncf %104 : vector<8x128xf32> to vector<8x128xbf16>
    %cst_97 = arith.constant dense<0.000000e+00> : vector<8x128xf32>
    %108 = tpu.matmul %107, %72, %cst_97 {dimension_numbers = #tpu.dot_dimension_numbers<[1], [0], [0], [1], [0, 0, 1, 1], [], []>} : vector<8x128xbf16>, vector<128x128xbf16>, vector<8x128xf32> -> vector<8x128xf32>
    %109 = arith.addf %106, %108 : vector<8x128xf32>
    %110 = math.tanh %109 : vector<8x128xf32>
    %c48_98 = arith.constant 48 : index
    %c0_99 = arith.constant 0 : index
    %111 = vector.load %arg11[%c48_98, %c0_99] : memref<64x128xf32, #tpu.memory_space<vmem>>, vector<8x128xf32>
    tpu.vector_store %arg11[%c48_98, %c0_99], %110 {strides = array<i32>} : memref<64x128xf32, #tpu.memory_space<vmem>>, vector<8x128xf32>,
    %c56_100 = arith.constant 56 : index
    %c0_101 = arith.constant 0 : index
    %112 = vector.load %arg11[%c56_100, %c0_101] : memref<64x128xf32, #tpu.memory_space<vmem>>, vector<8x128xf32>
    %113 = arith.truncf %110 : vector<8x128xf32> to vector<8x128xbf16>
    %cst_102 = arith.constant dense<0.000000e+00> : vector<8x128xf32>
    %114 = tpu.matmul %113, %72, %cst_102 {dimension_numbers = #tpu.dot_dimension_numbers<[1], [0], [0], [1], [0, 0, 1, 1], [], []>} : vector<8x128xbf16>, vector<128x128xbf16>, vector<8x128xf32> -> vector<8x128xf32>
    %115 = arith.addf %112, %114 : vector<8x128xf32>
    %116 = math.tanh %115 : vector<8x128xf32>
    %c56_103 = arith.constant 56 : index
    %c0_104 = arith.constant 0 : index
    %117 = vector.load %arg11[%c56_103, %c0_104] : memref<64x128xf32, #tpu.memory_space<vmem>>, vector<8x128xf32>
    tpu.vector_store %arg11[%c56_103, %c0_104], %116 {strides = array<i32>} : memref<64x128xf32, #tpu.memory_space<vmem>>, vector<8x128xf32>,
    %c0_105 = arith.constant 0 : index
    %c0_106 = arith.constant 0 : index
    %118 = vector.load %arg11[%c0_105, %c0_106] : memref<64x128xf32, #tpu.memory_space<vmem>>, vector<64x128xf32>
    %119 = arith.truncf %118 : vector<64x128xf32> to vector<64x128xbf16>
    %c0_107 = arith.constant 0 : index
    %c0_108 = arith.constant 0 : index
    %c0_109 = arith.constant 0 : index
    %120 = vector.load %arg5[%c0_107, %c0_108, %c0_109] : memref<4x128x128xbf16, #tpu.memory_space<vmem>>, vector<1x128x128xbf16>
    %121 = vector.shape_cast %120 : vector<1x128x128xbf16> to vector<128x128xbf16>
    %cst_110 = arith.constant dense<0.000000e+00> : vector<64x128xf32>
    %122 = tpu.matmul %119, %121, %cst_110 {dimension_numbers = #tpu.dot_dimension_numbers<[1], [0], [0], [1], [0, 0, 1, 1], [], []>} : vector<64x128xbf16>, vector<128x128xbf16>, vector<64x128xf32> -> vector<64x128xf32>
    %c0_111 = arith.constant 0 : index
    %c0_112 = arith.constant 0 : index
    %c0_113 = arith.constant 0 : index
    %123 = vector.load %arg7[%c0_111, %c0_112, %c0_113] : memref<4x1x128xf32, #tpu.memory_space<vmem>>, vector<1x1x128xf32>
    %124 = vector.shape_cast %123 : vector<1x1x128xf32> to vector<1x128xf32>
    %125 = vector.broadcast %124 : vector<1x128xf32> to vector<64x128xf32>
    %126 = arith.addf %122, %125 : vector<64x128xf32>
    %c0_114 = arith.constant 0 : index
    %c0_115 = arith.constant 0 : index
    %127 = vector.load %arg11[%c0_114, %c0_115] : memref<64x128xf32, #tpu.memory_space<vmem>>, vector<64x128xf32>
    tpu.vector_store %arg11[%c0_114, %c0_115], %126 {strides = array<i32>} : memref<64x128xf32, #tpu.memory_space<vmem>>, vector<64x128xf32>,
    %c0_116 = arith.constant 0 : index
    %c0_117 = arith.constant 0 : index
    %c0_118 = arith.constant 0 : index
    %128 = vector.load %arg6[%c0_116, %c0_117, %c0_118] : memref<4x128x128xbf16, #tpu.memory_space<vmem>>, vector<1x128x128xbf16>
    %129 = vector.shape_cast %128 : vector<1x128x128xbf16> to vector<128x128xbf16>
    %c0_119 = arith.constant 0 : index
    %c0_120 = arith.constant 0 : index
    %130 = vector.load %arg11[%c0_119, %c0_120] : memref<64x128xf32, #tpu.memory_space<vmem>>, vector<8x128xf32>
    %131 = math.tanh %130 : vector<8x128xf32>
    %c0_121 = arith.constant 0 : index
    %c0_122 = arith.constant 0 : index
    %132 = vector.load %arg11[%c0_121, %c0_122] : memref<64x128xf32, #tpu.memory_space<vmem>>, vector<8x128xf32>
    tpu.vector_store %arg11[%c0_121, %c0_122], %131 {strides = array<i32>} : memref<64x128xf32, #tpu.memory_space<vmem>>, vector<8x128xf32>,
    %c8_123 = arith.constant 8 : index
    %c0_124 = arith.constant 0 : index
    %133 = vector.load %arg11[%c8_123, %c0_124] : memref<64x128xf32, #tpu.memory_space<vmem>>, vector<8x128xf32>
    %134 = arith.truncf %131 : vector<8x128xf32> to vector<8x128xbf16>
    %cst_125 = arith.constant dense<0.000000e+00> : vector<8x128xf32>
    %135 = tpu.matmul %134, %129, %cst_125 {dimension_numbers = #tpu.dot_dimension_numbers<[1], [0], [0], [1], [0, 0, 1, 1], [], []>} : vector<8x128xbf16>, vector<128x128xbf16>, vector<8x128xf32> -> vector<8x128xf32>
    %136 = arith.addf %133, %135 : vector<8x128xf32>
    %137 = math.tanh %136 : vector<8x128xf32>
    %c8_126 = arith.constant 8 : index
    %c0_127 = arith.constant 0 : index
    %138 = vector.load %arg11[%c8_126, %c0_127] : memref<64x128xf32, #tpu.memory_space<vmem>>, vector<8x128xf32>
    tpu.vector_store %arg11[%c8_126, %c0_127], %137 {strides = array<i32>} : memref<64x128xf32, #tpu.memory_space<vmem>>, vector<8x128xf32>,
    %c16_128 = arith.constant 16 : index
    %c0_129 = arith.constant 0 : index
    %139 = vector.load %arg11[%c16_128, %c0_129] : memref<64x128xf32, #tpu.memory_space<vmem>>, vector<8x128xf32>
    %140 = arith.truncf %137 : vector<8x128xf32> to vector<8x128xbf16>
    %cst_130 = arith.constant dense<0.000000e+00> : vector<8x128xf32>
    %141 = tpu.matmul %140, %129, %cst_130 {dimension_numbers = #tpu.dot_dimension_numbers<[1], [0], [0], [1], [0, 0, 1, 1], [], []>} : vector<8x128xbf16>, vector<128x128xbf16>, vector<8x128xf32> -> vector<8x128xf32>
    %142 = arith.addf %139, %141 : vector<8x128xf32>
    %143 = math.tanh %142 : vector<8x128xf32>
    %c16_131 = arith.constant 16 : index
    %c0_132 = arith.constant 0 : index
    %144 = vector.load %arg11[%c16_131, %c0_132] : memref<64x128xf32, #tpu.memory_space<vmem>>, vector<8x128xf32>
    tpu.vector_store %arg11[%c16_131, %c0_132], %143 {strides = array<i32>} : memref<64x128xf32, #tpu.memory_space<vmem>>, vector<8x128xf32>,
    %c24_133 = arith.constant 24 : index
    %c0_134 = arith.constant 0 : index
    %145 = vector.load %arg11[%c24_133, %c0_134] : memref<64x128xf32, #tpu.memory_space<vmem>>, vector<8x128xf32>
    %146 = arith.truncf %143 : vector<8x128xf32> to vector<8x128xbf16>
    %cst_135 = arith.constant dense<0.000000e+00> : vector<8x128xf32>
    %147 = tpu.matmul %146, %129, %cst_135 {dimension_numbers = #tpu.dot_dimension_numbers<[1], [0], [0], [1], [0, 0, 1, 1], [], []>} : vector<8x128xbf16>, vector<128x128xbf16>, vector<8x128xf32> -> vector<8x128xf32>
    %148 = arith.addf %145, %147 : vector<8x128xf32>
    %149 = math.tanh %148 : vector<8x128xf32>
    %c24_136 = arith.constant 24 : index
    %c0_137 = arith.constant 0 : index
    %150 = vector.load %arg11[%c24_136, %c0_137] : memref<64x128xf32, #tpu.memory_space<vmem>>, vector<8x128xf32>
    tpu.vector_store %arg11[%c24_136, %c0_137], %149 {strides = array<i32>} : memref<64x128xf32, #tpu.memory_space<vmem>>, vector<8x128xf32>,
    %c32_138 = arith.constant 32 : index
    %c0_139 = arith.constant 0 : index
    %151 = vector.load %arg11[%c32_138, %c0_139] : memref<64x128xf32, #tpu.memory_space<vmem>>, vector<8x128xf32>
    %152 = arith.truncf %149 : vector<8x128xf32> to vector<8x128xbf16>
    %cst_140 = arith.constant dense<0.000000e+00> : vector<8x128xf32>
    %153 = tpu.matmul %152, %129, %cst_140 {dimension_numbers = #tpu.dot_dimension_numbers<[1], [0], [0], [1], [0, 0, 1, 1], [], []>} : vector<8x128xbf16>, vector<128x128xbf16>, vector<8x128xf32> -> vector<8x128xf32>
    %154 = arith.addf %151, %153 : vector<8x128xf32>
    %155 = math.tanh %154 : vector<8x128xf32>
    %c32_141 = arith.constant 32 : index
    %c0_142 = arith.constant 0 : index
    %156 = vector.load %arg11[%c32_141, %c0_142] : memref<64x128xf32, #tpu.memory_space<vmem>>, vector<8x128xf32>
    tpu.vector_store %arg11[%c32_141, %c0_142], %155 {strides = array<i32>} : memref<64x128xf32, #tpu.memory_space<vmem>>, vector<8x128xf32>,
    %c40_143 = arith.constant 40 : index
    %c0_144 = arith.constant 0 : index
    %157 = vector.load %arg11[%c40_143, %c0_144] : memref<64x128xf32, #tpu.memory_space<vmem>>, vector<8x128xf32>
    %158 = arith.truncf %155 : vector<8x128xf32> to vector<8x128xbf16>
    %cst_145 = arith.constant dense<0.000000e+00> : vector<8x128xf32>
    %159 = tpu.matmul %158, %129, %cst_145 {dimension_numbers = #tpu.dot_dimension_numbers<[1], [0], [0], [1], [0, 0, 1, 1], [], []>} : vector<8x128xbf16>, vector<128x128xbf16>, vector<8x128xf32> -> vector<8x128xf32>
    %160 = arith.addf %157, %159 : vector<8x128xf32>
    %161 = math.tanh %160 : vector<8x128xf32>
    %c40_146 = arith.constant 40 : index
    %c0_147 = arith.constant 0 : index
    %162 = vector.load %arg11[%c40_146, %c0_147] : memref<64x128xf32, #tpu.memory_space<vmem>>, vector<8x128xf32>
    tpu.vector_store %arg11[%c40_146, %c0_147], %161 {strides = array<i32>} : memref<64x128xf32, #tpu.memory_space<vmem>>, vector<8x128xf32>,
    %c48_148 = arith.constant 48 : index
    %c0_149 = arith.constant 0 : index
    %163 = vector.load %arg11[%c48_148, %c0_149] : memref<64x128xf32, #tpu.memory_space<vmem>>, vector<8x128xf32>
    %164 = arith.truncf %161 : vector<8x128xf32> to vector<8x128xbf16>
    %cst_150 = arith.constant dense<0.000000e+00> : vector<8x128xf32>
    %165 = tpu.matmul %164, %129, %cst_150 {dimension_numbers = #tpu.dot_dimension_numbers<[1], [0], [0], [1], [0, 0, 1, 1], [], []>} : vector<8x128xbf16>, vector<128x128xbf16>, vector<8x128xf32> -> vector<8x128xf32>
    %166 = arith.addf %163, %165 : vector<8x128xf32>
    %167 = math.tanh %166 : vector<8x128xf32>
    %c48_151 = arith.constant 48 : index
    %c0_152 = arith.constant 0 : index
    %168 = vector.load %arg11[%c48_151, %c0_152] : memref<64x128xf32, #tpu.memory_space<vmem>>, vector<8x128xf32>
    tpu.vector_store %arg11[%c48_151, %c0_152], %167 {strides = array<i32>} : memref<64x128xf32, #tpu.memory_space<vmem>>, vector<8x128xf32>,
    %c56_153 = arith.constant 56 : index
    %c0_154 = arith.constant 0 : index
    %169 = vector.load %arg11[%c56_153, %c0_154] : memref<64x128xf32, #tpu.memory_space<vmem>>, vector<8x128xf32>
    %170 = arith.truncf %167 : vector<8x128xf32> to vector<8x128xbf16>
    %cst_155 = arith.constant dense<0.000000e+00> : vector<8x128xf32>
    %171 = tpu.matmul %170, %129, %cst_155 {dimension_numbers = #tpu.dot_dimension_numbers<[1], [0], [0], [1], [0, 0, 1, 1], [], []>} : vector<8x128xbf16>, vector<128x128xbf16>, vector<8x128xf32> -> vector<8x128xf32>
    %172 = arith.addf %169, %171 : vector<8x128xf32>
    %173 = math.tanh %172 : vector<8x128xf32>
    %c56_156 = arith.constant 56 : index
    %c0_157 = arith.constant 0 : index
    %174 = vector.load %arg11[%c56_156, %c0_157] : memref<64x128xf32, #tpu.memory_space<vmem>>, vector<8x128xf32>
    tpu.vector_store %arg11[%c56_156, %c0_157], %173 {strides = array<i32>} : memref<64x128xf32, #tpu.memory_space<vmem>>, vector<8x128xf32>,
    %c0_158 = arith.constant 0 : index
    %c0_159 = arith.constant 0 : index
    %175 = vector.load %arg11[%c0_158, %c0_159] : memref<64x128xf32, #tpu.memory_space<vmem>>, vector<64x128xf32>
    %176 = arith.truncf %175 : vector<64x128xf32> to vector<64x128xbf16>
    %c1_160 = arith.constant 1 : index
    %c0_161 = arith.constant 0 : index
    %c0_162 = arith.constant 0 : index
    %177 = vector.load %arg5[%c1_160, %c0_161, %c0_162] : memref<4x128x128xbf16, #tpu.memory_space<vmem>>, vector<1x128x128xbf16>
    %178 = vector.shape_cast %177 : vector<1x128x128xbf16> to vector<128x128xbf16>
    %cst_163 = arith.constant dense<0.000000e+00> : vector<64x128xf32>
    %179 = tpu.matmul %176, %178, %cst_163 {dimension_numbers = #tpu.dot_dimension_numbers<[1], [0], [0], [1], [0, 0, 1, 1], [], []>} : vector<64x128xbf16>, vector<128x128xbf16>, vector<64x128xf32> -> vector<64x128xf32>
    %c1_164 = arith.constant 1 : index
    %c0_165 = arith.constant 0 : index
    %c0_166 = arith.constant 0 : index
    %180 = vector.load %arg7[%c1_164, %c0_165, %c0_166] : memref<4x1x128xf32, #tpu.memory_space<vmem>>, vector<1x1x128xf32>
    %181 = vector.shape_cast %180 : vector<1x1x128xf32> to vector<1x128xf32>
    %182 = vector.broadcast %181 : vector<1x128xf32> to vector<64x128xf32>
    %183 = arith.addf %179, %182 : vector<64x128xf32>
    %c0_167 = arith.constant 0 : index
    %c0_168 = arith.constant 0 : index
    %184 = vector.load %arg11[%c0_167, %c0_168] : memref<64x128xf32, #tpu.memory_space<vmem>>, vector<64x128xf32>
    tpu.vector_store %arg11[%c0_167, %c0_168], %183 {strides = array<i32>} : memref<64x128xf32, #tpu.memory_space<vmem>>, vector<64x128xf32>,
    %c1_169 = arith.constant 1 : index
    %c0_170 = arith.constant 0 : index
    %c0_171 = arith.constant 0 : index
    %185 = vector.load %arg6[%c1_169, %c0_170, %c0_171] : memref<4x128x128xbf16, #tpu.memory_space<vmem>>, vector<1x128x128xbf16>
    %186 = vector.shape_cast %185 : vector<1x128x128xbf16> to vector<128x128xbf16>
    %c0_172 = arith.constant 0 : index
    %c0_173 = arith.constant 0 : index
    %187 = vector.load %arg11[%c0_172, %c0_173] : memref<64x128xf32, #tpu.memory_space<vmem>>, vector<8x128xf32>
    %188 = math.tanh %187 : vector<8x128xf32>
    %c0_174 = arith.constant 0 : index
    %c0_175 = arith.constant 0 : index
    %189 = vector.load %arg11[%c0_174, %c0_175] : memref<64x128xf32, #tpu.memory_space<vmem>>, vector<8x128xf32>
    tpu.vector_store %arg11[%c0_174, %c0_175], %188 {strides = array<i32>} : memref<64x128xf32, #tpu.memory_space<vmem>>, vector<8x128xf32>,
    %c8_176 = arith.constant 8 : index
    %c0_177 = arith.constant 0 : index
    %190 = vector.load %arg11[%c8_176, %c0_177] : memref<64x128xf32, #tpu.memory_space<vmem>>, vector<8x128xf32>
    %191 = arith.truncf %188 : vector<8x128xf32> to vector<8x128xbf16>
    %cst_178 = arith.constant dense<0.000000e+00> : vector<8x128xf32>
    %192 = tpu.matmul %191, %186, %cst_178 {dimension_numbers = #tpu.dot_dimension_numbers<[1], [0], [0], [1], [0, 0, 1, 1], [], []>} : vector<8x128xbf16>, vector<128x128xbf16>, vector<8x128xf32> -> vector<8x128xf32>
    %193 = arith.addf %190, %192 : vector<8x128xf32>
    %194 = math.tanh %193 : vector<8x128xf32>
    %c8_179 = arith.constant 8 : index
    %c0_180 = arith.constant 0 : index
    %195 = vector.load %arg11[%c8_179, %c0_180] : memref<64x128xf32, #tpu.memory_space<vmem>>, vector<8x128xf32>
    tpu.vector_store %arg11[%c8_179, %c0_180], %194 {strides = array<i32>} : memref<64x128xf32, #tpu.memory_space<vmem>>, vector<8x128xf32>,
    %c16_181 = arith.constant 16 : index
    %c0_182 = arith.constant 0 : index
    %196 = vector.load %arg11[%c16_181, %c0_182] : memref<64x128xf32, #tpu.memory_space<vmem>>, vector<8x128xf32>
    %197 = arith.truncf %194 : vector<8x128xf32> to vector<8x128xbf16>
    %cst_183 = arith.constant dense<0.000000e+00> : vector<8x128xf32>
    %198 = tpu.matmul %197, %186, %cst_183 {dimension_numbers = #tpu.dot_dimension_numbers<[1], [0], [0], [1], [0, 0, 1, 1], [], []>} : vector<8x128xbf16>, vector<128x128xbf16>, vector<8x128xf32> -> vector<8x128xf32>
    %199 = arith.addf %196, %198 : vector<8x128xf32>
    %200 = math.tanh %199 : vector<8x128xf32>
    %c16_184 = arith.constant 16 : index
    %c0_185 = arith.constant 0 : index
    %201 = vector.load %arg11[%c16_184, %c0_185] : memref<64x128xf32, #tpu.memory_space<vmem>>, vector<8x128xf32>
    tpu.vector_store %arg11[%c16_184, %c0_185], %200 {strides = array<i32>} : memref<64x128xf32, #tpu.memory_space<vmem>>, vector<8x128xf32>,
    %c24_186 = arith.constant 24 : index
    %c0_187 = arith.constant 0 : index
    %202 = vector.load %arg11[%c24_186, %c0_187] : memref<64x128xf32, #tpu.memory_space<vmem>>, vector<8x128xf32>
    %203 = arith.truncf %200 : vector<8x128xf32> to vector<8x128xbf16>
    %cst_188 = arith.constant dense<0.000000e+00> : vector<8x128xf32>
    %204 = tpu.matmul %203, %186, %cst_188 {dimension_numbers = #tpu.dot_dimension_numbers<[1], [0], [0], [1], [0, 0, 1, 1], [], []>} : vector<8x128xbf16>, vector<128x128xbf16>, vector<8x128xf32> -> vector<8x128xf32>
    %205 = arith.addf %202, %204 : vector<8x128xf32>
    %206 = math.tanh %205 : vector<8x128xf32>
    %c24_189 = arith.constant 24 : index
    %c0_190 = arith.constant 0 : index
    %207 = vector.load %arg11[%c24_189, %c0_190] : memref<64x128xf32, #tpu.memory_space<vmem>>, vector<8x128xf32>
    tpu.vector_store %arg11[%c24_189, %c0_190], %206 {strides = array<i32>} : memref<64x128xf32, #tpu.memory_space<vmem>>, vector<8x128xf32>,
    %c32_191 = arith.constant 32 : index
    %c0_192 = arith.constant 0 : index
    %208 = vector.load %arg11[%c32_191, %c0_192] : memref<64x128xf32, #tpu.memory_space<vmem>>, vector<8x128xf32>
    %209 = arith.truncf %206 : vector<8x128xf32> to vector<8x128xbf16>
    %cst_193 = arith.constant dense<0.000000e+00> : vector<8x128xf32>
    %210 = tpu.matmul %209, %186, %cst_193 {dimension_numbers = #tpu.dot_dimension_numbers<[1], [0], [0], [1], [0, 0, 1, 1], [], []>} : vector<8x128xbf16>, vector<128x128xbf16>, vector<8x128xf32> -> vector<8x128xf32>
    %211 = arith.addf %208, %210 : vector<8x128xf32>
    %212 = math.tanh %211 : vector<8x128xf32>
    %c32_194 = arith.constant 32 : index
    %c0_195 = arith.constant 0 : index
    %213 = vector.load %arg11[%c32_194, %c0_195] : memref<64x128xf32, #tpu.memory_space<vmem>>, vector<8x128xf32>
    tpu.vector_store %arg11[%c32_194, %c0_195], %212 {strides = array<i32>} : memref<64x128xf32, #tpu.memory_space<vmem>>, vector<8x128xf32>,
    %c40_196 = arith.constant 40 : index
    %c0_197 = arith.constant 0 : index
    %214 = vector.load %arg11[%c40_196, %c0_197] : memref<64x128xf32, #tpu.memory_space<vmem>>, vector<8x128xf32>
    %215 = arith.truncf %212 : vector<8x128xf32> to vector<8x128xbf16>
    %cst_198 = arith.constant dense<0.000000e+00> : vector<8x128xf32>
    %216 = tpu.matmul %215, %186, %cst_198 {dimension_numbers = #tpu.dot_dimension_numbers<[1], [0], [0], [1], [0, 0, 1, 1], [], []>} : vector<8x128xbf16>, vector<128x128xbf16>, vector<8x128xf32> -> vector<8x128xf32>
    %217 = arith.addf %214, %216 : vector<8x128xf32>
    %218 = math.tanh %217 : vector<8x128xf32>
    %c40_199 = arith.constant 40 : index
    %c0_200 = arith.constant 0 : index
    %219 = vector.load %arg11[%c40_199, %c0_200] : memref<64x128xf32, #tpu.memory_space<vmem>>, vector<8x128xf32>
    tpu.vector_store %arg11[%c40_199, %c0_200], %218 {strides = array<i32>} : memref<64x128xf32, #tpu.memory_space<vmem>>, vector<8x128xf32>,
    %c48_201 = arith.constant 48 : index
    %c0_202 = arith.constant 0 : index
    %220 = vector.load %arg11[%c48_201, %c0_202] : memref<64x128xf32, #tpu.memory_space<vmem>>, vector<8x128xf32>
    %221 = arith.truncf %218 : vector<8x128xf32> to vector<8x128xbf16>
    %cst_203 = arith.constant dense<0.000000e+00> : vector<8x128xf32>
    %222 = tpu.matmul %221, %186, %cst_203 {dimension_numbers = #tpu.dot_dimension_numbers<[1], [0], [0], [1], [0, 0, 1, 1], [], []>} : vector<8x128xbf16>, vector<128x128xbf16>, vector<8x128xf32> -> vector<8x128xf32>
    %223 = arith.addf %220, %222 : vector<8x128xf32>
    %224 = math.tanh %223 : vector<8x128xf32>
    %c48_204 = arith.constant 48 : index
    %c0_205 = arith.constant 0 : index
    %225 = vector.load %arg11[%c48_204, %c0_205] : memref<64x128xf32, #tpu.memory_space<vmem>>, vector<8x128xf32>
    tpu.vector_store %arg11[%c48_204, %c0_205], %224 {strides = array<i32>} : memref<64x128xf32, #tpu.memory_space<vmem>>, vector<8x128xf32>,
    %c56_206 = arith.constant 56 : index
    %c0_207 = arith.constant 0 : index
    %226 = vector.load %arg11[%c56_206, %c0_207] : memref<64x128xf32, #tpu.memory_space<vmem>>, vector<8x128xf32>
    %227 = arith.truncf %224 : vector<8x128xf32> to vector<8x128xbf16>
    %cst_208 = arith.constant dense<0.000000e+00> : vector<8x128xf32>
    %228 = tpu.matmul %227, %186, %cst_208 {dimension_numbers = #tpu.dot_dimension_numbers<[1], [0], [0], [1], [0, 0, 1, 1], [], []>} : vector<8x128xbf16>, vector<128x128xbf16>, vector<8x128xf32> -> vector<8x128xf32>
    %229 = arith.addf %226, %228 : vector<8x128xf32>
    %230 = math.tanh %229 : vector<8x128xf32>
    %c56_209 = arith.constant 56 : index
    %c0_210 = arith.constant 0 : index
    %231 = vector.load %arg11[%c56_209, %c0_210] : memref<64x128xf32, #tpu.memory_space<vmem>>, vector<8x128xf32>
    tpu.vector_store %arg11[%c56_209, %c0_210], %230 {strides = array<i32>} : memref<64x128xf32, #tpu.memory_space<vmem>>, vector<8x128xf32>,
    %c0_211 = arith.constant 0 : index
    %c0_212 = arith.constant 0 : index
    %232 = vector.load %arg11[%c0_211, %c0_212] : memref<64x128xf32, #tpu.memory_space<vmem>>, vector<64x128xf32>
    %233 = arith.truncf %232 : vector<64x128xf32> to vector<64x128xbf16>
    %c2_213 = arith.constant 2 : index
    %c0_214 = arith.constant 0 : index
    %c0_215 = arith.constant 0 : index
    %234 = vector.load %arg5[%c2_213, %c0_214, %c0_215] : memref<4x128x128xbf16, #tpu.memory_space<vmem>>, vector<1x128x128xbf16>
    %235 = vector.shape_cast %234 : vector<1x128x128xbf16> to vector<128x128xbf16>
    %cst_216 = arith.constant dense<0.000000e+00> : vector<64x128xf32>
    %236 = tpu.matmul %233, %235, %cst_216 {dimension_numbers = #tpu.dot_dimension_numbers<[1], [0], [0], [1], [0, 0, 1, 1], [], []>} : vector<64x128xbf16>, vector<128x128xbf16>, vector<64x128xf32> -> vector<64x128xf32>
    %c2_217 = arith.constant 2 : index
    %c0_218 = arith.constant 0 : index
    %c0_219 = arith.constant 0 : index
    %237 = vector.load %arg7[%c2_217, %c0_218, %c0_219] : memref<4x1x128xf32, #tpu.memory_space<vmem>>, vector<1x1x128xf32>
    %238 = vector.shape_cast %237 : vector<1x1x128xf32> to vector<1x128xf32>
    %239 = vector.broadcast %238 : vector<1x128xf32> to vector<64x128xf32>
    %240 = arith.addf %236, %239 : vector<64x128xf32>
    %c0_220 = arith.constant 0 : index
    %c0_221 = arith.constant 0 : index
    %241 = vector.load %arg11[%c0_220, %c0_221] : memref<64x128xf32, #tpu.memory_space<vmem>>, vector<64x128xf32>
    tpu.vector_store %arg11[%c0_220, %c0_221], %240 {strides = array<i32>} : memref<64x128xf32, #tpu.memory_space<vmem>>, vector<64x128xf32>,
    %c2_222 = arith.constant 2 : index
    %c0_223 = arith.constant 0 : index
    %c0_224 = arith.constant 0 : index
    %242 = vector.load %arg6[%c2_222, %c0_223, %c0_224] : memref<4x128x128xbf16, #tpu.memory_space<vmem>>, vector<1x128x128xbf16>
    %243 = vector.shape_cast %242 : vector<1x128x128xbf16> to vector<128x128xbf16>
    %c0_225 = arith.constant 0 : index
    %c0_226 = arith.constant 0 : index
    %244 = vector.load %arg11[%c0_225, %c0_226] : memref<64x128xf32, #tpu.memory_space<vmem>>, vector<8x128xf32>
    %245 = math.tanh %244 : vector<8x128xf32>
    %c0_227 = arith.constant 0 : index
    %c0_228 = arith.constant 0 : index
    %246 = vector.load %arg11[%c0_227, %c0_228] : memref<64x128xf32, #tpu.memory_space<vmem>>, vector<8x128xf32>
    tpu.vector_store %arg11[%c0_227, %c0_228], %245 {strides = array<i32>} : memref<64x128xf32, #tpu.memory_space<vmem>>, vector<8x128xf32>,
    %c8_229 = arith.constant 8 : index
    %c0_230 = arith.constant 0 : index
    %247 = vector.load %arg11[%c8_229, %c0_230] : memref<64x128xf32, #tpu.memory_space<vmem>>, vector<8x128xf32>
    %248 = arith.truncf %245 : vector<8x128xf32> to vector<8x128xbf16>
    %cst_231 = arith.constant dense<0.000000e+00> : vector<8x128xf32>
    %249 = tpu.matmul %248, %243, %cst_231 {dimension_numbers = #tpu.dot_dimension_numbers<[1], [0], [0], [1], [0, 0, 1, 1], [], []>} : vector<8x128xbf16>, vector<128x128xbf16>, vector<8x128xf32> -> vector<8x128xf32>
    %250 = arith.addf %247, %249 : vector<8x128xf32>
    %251 = math.tanh %250 : vector<8x128xf32>
    %c8_232 = arith.constant 8 : index
    %c0_233 = arith.constant 0 : index
    %252 = vector.load %arg11[%c8_232, %c0_233] : memref<64x128xf32, #tpu.memory_space<vmem>>, vector<8x128xf32>
    tpu.vector_store %arg11[%c8_232, %c0_233], %251 {strides = array<i32>} : memref<64x128xf32, #tpu.memory_space<vmem>>, vector<8x128xf32>,
    %c16_234 = arith.constant 16 : index
    %c0_235 = arith.constant 0 : index
    %253 = vector.load %arg11[%c16_234, %c0_235] : memref<64x128xf32, #tpu.memory_space<vmem>>, vector<8x128xf32>
    %254 = arith.truncf %251 : vector<8x128xf32> to vector<8x128xbf16>
    %cst_236 = arith.constant dense<0.000000e+00> : vector<8x128xf32>
    %255 = tpu.matmul %254, %243, %cst_236 {dimension_numbers = #tpu.dot_dimension_numbers<[1], [0], [0], [1], [0, 0, 1, 1], [], []>} : vector<8x128xbf16>, vector<128x128xbf16>, vector<8x128xf32> -> vector<8x128xf32>
    %256 = arith.addf %253, %255 : vector<8x128xf32>
    %257 = math.tanh %256 : vector<8x128xf32>
    %c16_237 = arith.constant 16 : index
    %c0_238 = arith.constant 0 : index
    %258 = vector.load %arg11[%c16_237, %c0_238] : memref<64x128xf32, #tpu.memory_space<vmem>>, vector<8x128xf32>
    tpu.vector_store %arg11[%c16_237, %c0_238], %257 {strides = array<i32>} : memref<64x128xf32, #tpu.memory_space<vmem>>, vector<8x128xf32>,
    %c24_239 = arith.constant 24 : index
    %c0_240 = arith.constant 0 : index
    %259 = vector.load %arg11[%c24_239, %c0_240] : memref<64x128xf32, #tpu.memory_space<vmem>>, vector<8x128xf32>
    %260 = arith.truncf %257 : vector<8x128xf32> to vector<8x128xbf16>
    %cst_241 = arith.constant dense<0.000000e+00> : vector<8x128xf32>
    %261 = tpu.matmul %260, %243, %cst_241 {dimension_numbers = #tpu.dot_dimension_numbers<[1], [0], [0], [1], [0, 0, 1, 1], [], []>} : vector<8x128xbf16>, vector<128x128xbf16>, vector<8x128xf32> -> vector<8x128xf32>
    %262 = arith.addf %259, %261 : vector<8x128xf32>
    %263 = math.tanh %262 : vector<8x128xf32>
    %c24_242 = arith.constant 24 : index
    %c0_243 = arith.constant 0 : index
    %264 = vector.load %arg11[%c24_242, %c0_243] : memref<64x128xf32, #tpu.memory_space<vmem>>, vector<8x128xf32>
    tpu.vector_store %arg11[%c24_242, %c0_243], %263 {strides = array<i32>} : memref<64x128xf32, #tpu.memory_space<vmem>>, vector<8x128xf32>,
    %c32_244 = arith.constant 32 : index
    %c0_245 = arith.constant 0 : index
    %265 = vector.load %arg11[%c32_244, %c0_245] : memref<64x128xf32, #tpu.memory_space<vmem>>, vector<8x128xf32>
    %266 = arith.truncf %263 : vector<8x128xf32> to vector<8x128xbf16>
    %cst_246 = arith.constant dense<0.000000e+00> : vector<8x128xf32>
    %267 = tpu.matmul %266, %243, %cst_246 {dimension_numbers = #tpu.dot_dimension_numbers<[1], [0], [0], [1], [0, 0, 1, 1], [], []>} : vector<8x128xbf16>, vector<128x128xbf16>, vector<8x128xf32> -> vector<8x128xf32>
    %268 = arith.addf %265, %267 : vector<8x128xf32>
    %269 = math.tanh %268 : vector<8x128xf32>
    %c32_247 = arith.constant 32 : index
    %c0_248 = arith.constant 0 : index
    %270 = vector.load %arg11[%c32_247, %c0_248] : memref<64x128xf32, #tpu.memory_space<vmem>>, vector<8x128xf32>
    tpu.vector_store %arg11[%c32_247, %c0_248], %269 {strides = array<i32>} : memref<64x128xf32, #tpu.memory_space<vmem>>, vector<8x128xf32>,
    %c40_249 = arith.constant 40 : index
    %c0_250 = arith.constant 0 : index
    %271 = vector.load %arg11[%c40_249, %c0_250] : memref<64x128xf32, #tpu.memory_space<vmem>>, vector<8x128xf32>
    %272 = arith.truncf %269 : vector<8x128xf32> to vector<8x128xbf16>
    %cst_251 = arith.constant dense<0.000000e+00> : vector<8x128xf32>
    %273 = tpu.matmul %272, %243, %cst_251 {dimension_numbers = #tpu.dot_dimension_numbers<[1], [0], [0], [1], [0, 0, 1, 1], [], []>} : vector<8x128xbf16>, vector<128x128xbf16>, vector<8x128xf32> -> vector<8x128xf32>
    %274 = arith.addf %271, %273 : vector<8x128xf32>
    %275 = math.tanh %274 : vector<8x128xf32>
    %c40_252 = arith.constant 40 : index
    %c0_253 = arith.constant 0 : index
    %276 = vector.load %arg11[%c40_252, %c0_253] : memref<64x128xf32, #tpu.memory_space<vmem>>, vector<8x128xf32>
    tpu.vector_store %arg11[%c40_252, %c0_253], %275 {strides = array<i32>} : memref<64x128xf32, #tpu.memory_space<vmem>>, vector<8x128xf32>,
    %c48_254 = arith.constant 48 : index
    %c0_255 = arith.constant 0 : index
    %277 = vector.load %arg11[%c48_254, %c0_255] : memref<64x128xf32, #tpu.memory_space<vmem>>, vector<8x128xf32>
    %278 = arith.truncf %275 : vector<8x128xf32> to vector<8x128xbf16>
    %cst_256 = arith.constant dense<0.000000e+00> : vector<8x128xf32>
    %279 = tpu.matmul %278, %243, %cst_256 {dimension_numbers = #tpu.dot_dimension_numbers<[1], [0], [0], [1], [0, 0, 1, 1], [], []>} : vector<8x128xbf16>, vector<128x128xbf16>, vector<8x128xf32> -> vector<8x128xf32>
    %280 = arith.addf %277, %279 : vector<8x128xf32>
    %281 = math.tanh %280 : vector<8x128xf32>
    %c48_257 = arith.constant 48 : index
    %c0_258 = arith.constant 0 : index
    %282 = vector.load %arg11[%c48_257, %c0_258] : memref<64x128xf32, #tpu.memory_space<vmem>>, vector<8x128xf32>
    tpu.vector_store %arg11[%c48_257, %c0_258], %281 {strides = array<i32>} : memref<64x128xf32, #tpu.memory_space<vmem>>, vector<8x128xf32>,
    %c56_259 = arith.constant 56 : index
    %c0_260 = arith.constant 0 : index
    %283 = vector.load %arg11[%c56_259, %c0_260] : memref<64x128xf32, #tpu.memory_space<vmem>>, vector<8x128xf32>
    %284 = arith.truncf %281 : vector<8x128xf32> to vector<8x128xbf16>
    %cst_261 = arith.constant dense<0.000000e+00> : vector<8x128xf32>
    %285 = tpu.matmul %284, %243, %cst_261 {dimension_numbers = #tpu.dot_dimension_numbers<[1], [0], [0], [1], [0, 0, 1, 1], [], []>} : vector<8x128xbf16>, vector<128x128xbf16>, vector<8x128xf32> -> vector<8x128xf32>
    %286 = arith.addf %283, %285 : vector<8x128xf32>
    %287 = math.tanh %286 : vector<8x128xf32>
    %c56_262 = arith.constant 56 : index
    %c0_263 = arith.constant 0 : index
    %288 = vector.load %arg11[%c56_262, %c0_263] : memref<64x128xf32, #tpu.memory_space<vmem>>, vector<8x128xf32>
    tpu.vector_store %arg11[%c56_262, %c0_263], %287 {strides = array<i32>} : memref<64x128xf32, #tpu.memory_space<vmem>>, vector<8x128xf32>,
    %c0_264 = arith.constant 0 : index
    %c0_265 = arith.constant 0 : index
    %289 = vector.load %arg11[%c0_264, %c0_265] : memref<64x128xf32, #tpu.memory_space<vmem>>, vector<64x128xf32>
    %290 = arith.truncf %289 : vector<64x128xf32> to vector<64x128xbf16>
    %c3_266 = arith.constant 3 : index
    %c0_267 = arith.constant 0 : index
    %c0_268 = arith.constant 0 : index
    %291 = vector.load %arg5[%c3_266, %c0_267, %c0_268] : memref<4x128x128xbf16, #tpu.memory_space<vmem>>, vector<1x128x128xbf16>
    %292 = vector.shape_cast %291 : vector<1x128x128xbf16> to vector<128x128xbf16>
    %cst_269 = arith.constant dense<0.000000e+00> : vector<64x128xf32>
    %293 = tpu.matmul %290, %292, %cst_269 {dimension_numbers = #tpu.dot_dimension_numbers<[1], [0], [0], [1], [0, 0, 1, 1], [], []>} : vector<64x128xbf16>, vector<128x128xbf16>, vector<64x128xf32> -> vector<64x128xf32>
    %c3_270 = arith.constant 3 : index
    %c0_271 = arith.constant 0 : index
    %c0_272 = arith.constant 0 : index
    %294 = vector.load %arg7[%c3_270, %c0_271, %c0_272] : memref<4x1x128xf32, #tpu.memory_space<vmem>>, vector<1x1x128xf32>
    %295 = vector.shape_cast %294 : vector<1x1x128xf32> to vector<1x128xf32>
    %296 = vector.broadcast %295 : vector<1x128xf32> to vector<64x128xf32>
    %297 = arith.addf %293, %296 : vector<64x128xf32>
    %c0_273 = arith.constant 0 : index
    %c0_274 = arith.constant 0 : index
    %298 = vector.load %arg11[%c0_273, %c0_274] : memref<64x128xf32, #tpu.memory_space<vmem>>, vector<64x128xf32>
    tpu.vector_store %arg11[%c0_273, %c0_274], %297 {strides = array<i32>} : memref<64x128xf32, #tpu.memory_space<vmem>>, vector<64x128xf32>,
    %c3_275 = arith.constant 3 : index
    %c0_276 = arith.constant 0 : index
    %c0_277 = arith.constant 0 : index
    %299 = vector.load %arg6[%c3_275, %c0_276, %c0_277] : memref<4x128x128xbf16, #tpu.memory_space<vmem>>, vector<1x128x128xbf16>
    %300 = vector.shape_cast %299 : vector<1x128x128xbf16> to vector<128x128xbf16>
    %c0_278 = arith.constant 0 : index
    %c0_279 = arith.constant 0 : index
    %301 = vector.load %arg11[%c0_278, %c0_279] : memref<64x128xf32, #tpu.memory_space<vmem>>, vector<8x128xf32>
    %302 = math.tanh %301 : vector<8x128xf32>
    %c0_280 = arith.constant 0 : index
    %c0_281 = arith.constant 0 : index
    %303 = vector.load %arg11[%c0_280, %c0_281] : memref<64x128xf32, #tpu.memory_space<vmem>>, vector<8x128xf32>
    tpu.vector_store %arg11[%c0_280, %c0_281], %302 {strides = array<i32>} : memref<64x128xf32, #tpu.memory_space<vmem>>, vector<8x128xf32>,
    %c8_282 = arith.constant 8 : index
    %c0_283 = arith.constant 0 : index
    %304 = vector.load %arg11[%c8_282, %c0_283] : memref<64x128xf32, #tpu.memory_space<vmem>>, vector<8x128xf32>
    %305 = arith.truncf %302 : vector<8x128xf32> to vector<8x128xbf16>
    %cst_284 = arith.constant dense<0.000000e+00> : vector<8x128xf32>
    %306 = tpu.matmul %305, %300, %cst_284 {dimension_numbers = #tpu.dot_dimension_numbers<[1], [0], [0], [1], [0, 0, 1, 1], [], []>} : vector<8x128xbf16>, vector<128x128xbf16>, vector<8x128xf32> -> vector<8x128xf32>
    %307 = arith.addf %304, %306 : vector<8x128xf32>
    %308 = math.tanh %307 : vector<8x128xf32>
    %c8_285 = arith.constant 8 : index
    %c0_286 = arith.constant 0 : index
    %309 = vector.load %arg11[%c8_285, %c0_286] : memref<64x128xf32, #tpu.memory_space<vmem>>, vector<8x128xf32>
    tpu.vector_store %arg11[%c8_285, %c0_286], %308 {strides = array<i32>} : memref<64x128xf32, #tpu.memory_space<vmem>>, vector<8x128xf32>,
    %c16_287 = arith.constant 16 : index
    %c0_288 = arith.constant 0 : index
    %310 = vector.load %arg11[%c16_287, %c0_288] : memref<64x128xf32, #tpu.memory_space<vmem>>, vector<8x128xf32>
    %311 = arith.truncf %308 : vector<8x128xf32> to vector<8x128xbf16>
    %cst_289 = arith.constant dense<0.000000e+00> : vector<8x128xf32>
    %312 = tpu.matmul %311, %300, %cst_289 {dimension_numbers = #tpu.dot_dimension_numbers<[1], [0], [0], [1], [0, 0, 1, 1], [], []>} : vector<8x128xbf16>, vector<128x128xbf16>, vector<8x128xf32> -> vector<8x128xf32>
    %313 = arith.addf %310, %312 : vector<8x128xf32>
    %314 = math.tanh %313 : vector<8x128xf32>
    %c16_290 = arith.constant 16 : index
    %c0_291 = arith.constant 0 : index
    %315 = vector.load %arg11[%c16_290, %c0_291] : memref<64x128xf32, #tpu.memory_space<vmem>>, vector<8x128xf32>
    tpu.vector_store %arg11[%c16_290, %c0_291], %314 {strides = array<i32>} : memref<64x128xf32, #tpu.memory_space<vmem>>, vector<8x128xf32>,
    %c24_292 = arith.constant 24 : index
    %c0_293 = arith.constant 0 : index
    %316 = vector.load %arg11[%c24_292, %c0_293] : memref<64x128xf32, #tpu.memory_space<vmem>>, vector<8x128xf32>
    %317 = arith.truncf %314 : vector<8x128xf32> to vector<8x128xbf16>
    %cst_294 = arith.constant dense<0.000000e+00> : vector<8x128xf32>
    %318 = tpu.matmul %317, %300, %cst_294 {dimension_numbers = #tpu.dot_dimension_numbers<[1], [0], [0], [1], [0, 0, 1, 1], [], []>} : vector<8x128xbf16>, vector<128x128xbf16>, vector<8x128xf32> -> vector<8x128xf32>
    %319 = arith.addf %316, %318 : vector<8x128xf32>
    %320 = math.tanh %319 : vector<8x128xf32>
    %c24_295 = arith.constant 24 : index
    %c0_296 = arith.constant 0 : index
    %321 = vector.load %arg11[%c24_295, %c0_296] : memref<64x128xf32, #tpu.memory_space<vmem>>, vector<8x128xf32>
    tpu.vector_store %arg11[%c24_295, %c0_296], %320 {strides = array<i32>} : memref<64x128xf32, #tpu.memory_space<vmem>>, vector<8x128xf32>,
    %c32_297 = arith.constant 32 : index
    %c0_298 = arith.constant 0 : index
    %322 = vector.load %arg11[%c32_297, %c0_298] : memref<64x128xf32, #tpu.memory_space<vmem>>, vector<8x128xf32>
    %323 = arith.truncf %320 : vector<8x128xf32> to vector<8x128xbf16>
    %cst_299 = arith.constant dense<0.000000e+00> : vector<8x128xf32>
    %324 = tpu.matmul %323, %300, %cst_299 {dimension_numbers = #tpu.dot_dimension_numbers<[1], [0], [0], [1], [0, 0, 1, 1], [], []>} : vector<8x128xbf16>, vector<128x128xbf16>, vector<8x128xf32> -> vector<8x128xf32>
    %325 = arith.addf %322, %324 : vector<8x128xf32>
    %326 = math.tanh %325 : vector<8x128xf32>
    %c32_300 = arith.constant 32 : index
    %c0_301 = arith.constant 0 : index
    %327 = vector.load %arg11[%c32_300, %c0_301] : memref<64x128xf32, #tpu.memory_space<vmem>>, vector<8x128xf32>
    tpu.vector_store %arg11[%c32_300, %c0_301], %326 {strides = array<i32>} : memref<64x128xf32, #tpu.memory_space<vmem>>, vector<8x128xf32>,
    %c40_302 = arith.constant 40 : index
    %c0_303 = arith.constant 0 : index
    %328 = vector.load %arg11[%c40_302, %c0_303] : memref<64x128xf32, #tpu.memory_space<vmem>>, vector<8x128xf32>
    %329 = arith.truncf %326 : vector<8x128xf32> to vector<8x128xbf16>
    %cst_304 = arith.constant dense<0.000000e+00> : vector<8x128xf32>
    %330 = tpu.matmul %329, %300, %cst_304 {dimension_numbers = #tpu.dot_dimension_numbers<[1], [0], [0], [1], [0, 0, 1, 1], [], []>} : vector<8x128xbf16>, vector<128x128xbf16>, vector<8x128xf32> -> vector<8x128xf32>
    %331 = arith.addf %328, %330 : vector<8x128xf32>
    %332 = math.tanh %331 : vector<8x128xf32>
    %c40_305 = arith.constant 40 : index
    %c0_306 = arith.constant 0 : index
    %333 = vector.load %arg11[%c40_305, %c0_306] : memref<64x128xf32, #tpu.memory_space<vmem>>, vector<8x128xf32>
    tpu.vector_store %arg11[%c40_305, %c0_306], %332 {strides = array<i32>} : memref<64x128xf32, #tpu.memory_space<vmem>>, vector<8x128xf32>,
    %c48_307 = arith.constant 48 : index
    %c0_308 = arith.constant 0 : index
    %334 = vector.load %arg11[%c48_307, %c0_308] : memref<64x128xf32, #tpu.memory_space<vmem>>, vector<8x128xf32>
    %335 = arith.truncf %332 : vector<8x128xf32> to vector<8x128xbf16>
    %cst_309 = arith.constant dense<0.000000e+00> : vector<8x128xf32>
    %336 = tpu.matmul %335, %300, %cst_309 {dimension_numbers = #tpu.dot_dimension_numbers<[1], [0], [0], [1], [0, 0, 1, 1], [], []>} : vector<8x128xbf16>, vector<128x128xbf16>, vector<8x128xf32> -> vector<8x128xf32>
    %337 = arith.addf %334, %336 : vector<8x128xf32>
    %338 = math.tanh %337 : vector<8x128xf32>
    %c48_310 = arith.constant 48 : index
    %c0_311 = arith.constant 0 : index
    %339 = vector.load %arg11[%c48_310, %c0_311] : memref<64x128xf32, #tpu.memory_space<vmem>>, vector<8x128xf32>
    tpu.vector_store %arg11[%c48_310, %c0_311], %338 {strides = array<i32>} : memref<64x128xf32, #tpu.memory_space<vmem>>, vector<8x128xf32>,
    %c56_312 = arith.constant 56 : index
    %c0_313 = arith.constant 0 : index
    %340 = vector.load %arg11[%c56_312, %c0_313] : memref<64x128xf32, #tpu.memory_space<vmem>>, vector<8x128xf32>
    %341 = arith.truncf %338 : vector<8x128xf32> to vector<8x128xbf16>
    %cst_314 = arith.constant dense<0.000000e+00> : vector<8x128xf32>
    %342 = tpu.matmul %341, %300, %cst_314 {dimension_numbers = #tpu.dot_dimension_numbers<[1], [0], [0], [1], [0, 0, 1, 1], [], []>} : vector<8x128xbf16>, vector<128x128xbf16>, vector<8x128xf32> -> vector<8x128xf32>
    %343 = arith.addf %340, %342 : vector<8x128xf32>
    %344 = math.tanh %343 : vector<8x128xf32>
    %c56_315 = arith.constant 56 : index
    %c0_316 = arith.constant 0 : index
    %345 = vector.load %arg11[%c56_315, %c0_316] : memref<64x128xf32, #tpu.memory_space<vmem>>, vector<8x128xf32>
    tpu.vector_store %arg11[%c56_315, %c0_316], %344 {strides = array<i32>} : memref<64x128xf32, #tpu.memory_space<vmem>>, vector<8x128xf32>,
    %c0_317 = arith.constant 0 : index
    %c0_318 = arith.constant 0 : index
    %346 = vector.load %arg8[%c0_317, %c0_318] : memref<1x128xf32, #tpu.memory_space<vmem>>, vector<1x128xf32>
    %347 = vector.broadcast %346 : vector<1x128xf32> to vector<8x128xf32>
    %348 = arith.mulf %344, %347 : vector<8x128xf32>
    %cst_319 = arith.constant dense<0.000000e+00> : vector<8xf32>
    %349 = vector.multi_reduction <add>, %348, %cst_319 [1] : vector<8x128xf32> to vector<8xf32>
    %350 = vector.shape_cast %349 : vector<8xf32> to vector<8x1xf32>
    %c0_320 = arith.constant 0 : index
    %c0_321 = arith.constant 0 : index
    %351 = vector.load %arg9[%c0_320, %c0_321] : memref<1x1xf32, #tpu.memory_space<vmem>>, vector<1x1xf32>
    %352 = vector.broadcast %351 : vector<1x1xf32> to vector<8x1xf32>
    %353 = arith.addf %350, %352 : vector<8x1xf32>
    %cst_322 = arith.constant 0.000000e+00 : f32
    %354 = vector.broadcast %cst_322 : f32 to vector<8x1xf32>
    %355 = arith.maximumf %353, %354 : vector<8x1xf32>
    %c0_323 = arith.constant 0 : index
    %c0_324 = arith.constant 0 : index
    %356 = vector.load %arg10[%c0_323, %c0_324] : memref<8x1xf32, #tpu.memory_space<vmem>>, vector<8x1xf32>
    tpu.vector_store %arg10[%c0_323, %c0_324], %355 {strides = array<i32>} : memref<8x1xf32, #tpu.memory_space<vmem>>, vector<8x1xf32>,
    return
  }
  func.func @transform_0(%arg0: i32) -> (i32, i32, i32) {
    %c0_i32 = arith.constant 0 : i32
    %c0_i32_0 = arith.constant 0 : i32
    %c0_i32_1 = arith.constant 0 : i32
    return %c0_i32, %arg0, %c0_i32_0 : i32, i32, i32
  }
  func.func @transform_1(%arg0: i32) -> (i32, i32) {
    %c0_i32 = arith.constant 0 : i32
    %c0_i32_0 = arith.constant 0 : i32
    %c0_i32_1 = arith.constant 0 : i32
    return %c0_i32, %c0_i32_0 : i32, i32
  }
  func.func @transform_2(%arg0: i32) -> (i32, i32) {
    %c0_i32 = arith.constant 0 : i32
    %c0_i32_0 = arith.constant 0 : i32
    %c0_i32_1 = arith.constant 0 : i32
    return %c0_i32, %c0_i32_0 : i32, i32
  }
  func.func @transform_3(%arg0: i32) -> (i32, i32) {
    %c0_i32 = arith.constant 0 : i32
    %c0_i32_0 = arith.constant 0 : i32
    %c0_i32_1 = arith.constant 0 : i32
    return %c0_i32, %c0_i32_0 : i32, i32
  }
  func.func @transform_4(%arg0: i32) -> (i32, i32, i32) {
    %c0_i32 = arith.constant 0 : i32
    %c0_i32_0 = arith.constant 0 : i32
    %c0_i32_1 = arith.constant 0 : i32
    %c0_i32_2 = arith.constant 0 : i32
    return %c0_i32, %c0_i32_0, %c0_i32_1 : i32, i32, i32
  }
  func.func @transform_5(%arg0: i32) -> (i32, i32, i32) {
    %c0_i32 = arith.constant 0 : i32
    %c0_i32_0 = arith.constant 0 : i32
    %c0_i32_1 = arith.constant 0 : i32
    %c0_i32_2 = arith.constant 0 : i32
    return %c0_i32, %c0_i32_0, %c0_i32_1 : i32, i32, i32
  }
  func.func @transform_6(%arg0: i32) -> (i32, i32, i32) {
    %c0_i32 = arith.constant 0 : i32
    %c0_i32_0 = arith.constant 0 : i32
    %c0_i32_1 = arith.constant 0 : i32
    %c0_i32_2 = arith.constant 0 : i32
    return %c0_i32, %c0_i32_0, %c0_i32_1 : i32, i32, i32
  }
  func.func @transform_7(%arg0: i32) -> (i32, i32) {
    %c0_i32 = arith.constant 0 : i32
    %c0_i32_0 = arith.constant 0 : i32
    %c0_i32_1 = arith.constant 0 : i32
    return %c0_i32, %c0_i32_0 : i32, i32
  }
  func.func @transform_8(%arg0: i32) -> (i32, i32) {
    %c0_i32 = arith.constant 0 : i32
    %c0_i32_0 = arith.constant 0 : i32
    %c0_i32_1 = arith.constant 0 : i32
    return %c0_i32, %c0_i32_0 : i32, i32
  }
  func.func @transform_9(%arg0: i32) -> (i32, i32) {
    %c0_i32 = arith.constant 0 : i32
    %c0_i32_0 = arith.constant 0 : i32
    return %arg0, %c0_i32 : i32, i32
  }
}

</mosaic_0001>

<bundles_post_ra>
// kernel: tpu_custom_call.1
= control target key start
LH: loop header
LB: loop body
LE: loop exit
PB: predicated region body
PF: predicated region fallthrough
CT: control target
= control target key end

     0   :  { %s6412_s0 = inlined_call_operand.vmem [shape: f32[8,16,4], index: 0, kind: input, shape index: {}]   ;;  %s6413_s1 = inlined_call_operand.vmem [shape: bf16[4,128], index: 1, kind: input, shape index: {}]   ;;  %s6414_s2 = inlined_call_operand.vmem [shape: bf16[128,128], index: 2, kind: input, shape index: {}]   ;;  %s6415_s3 = inlined_call_operand.vmem [shape: f32[1,128], index: 3, kind: input, shape index: {}]   ;;  %s6416_s4 = inlined_call_operand.hbm [shape: bf16[4,128,128], index: 4, kind: input, shape index: {}]   ;;  %s6417_s5 = inlined_call_operand.hbm [shape: bf16[4,128,128], index: 5, kind: input, shape index: {}]   ;;  %s6418_s6 = inlined_call_operand.vmem [shape: f32[4,1,128], index: 6, kind: input, shape index: {}]   ;;  %s6419_s7 = inlined_call_operand.vmem [shape: f32[1,128], index: 7, kind: input, shape index: {}]   ;;  %s6420_s8 = inlined_call_operand.<no memory space> [shape: f32[1,1], index: 8, kind: input, shape index: {}]   ;;  %s6421_s9 = inlined_call_operand.vmem [shape: f32[16,1], index: 9, kind: output, shape index: {}]  }
   0x1   :  { %v14_v0 = vstv %s6420_s8 }
   0x2   :  { %15 = vst [vmem:[#allocation3] sm:$0x1] %v14_v0 }
   0x3   :  { %16 = vsyncpa [#allocation6], 0 }
   0x4   :  { %17 = vsyncpa [#allocation8], 0  ;;  %s5258_s11 = smov 0   ;;  %s5260_s12 = smov 0  }
   0x5   :  { %s5262_s13 = smov 0  }
   0x6 LB: > { %s5274_s8 = sadd.s32 4294967295, %s5197_s13   ;;  %s5277_s14 = sadd.s32 1, %s5197_s13   ;;  %s5197_s13 = sphi %s5262_s13, %s6435_s13   ;;  %s5193_s12 = sphi %s5260_s12, %s6434_s12   ;;  %s5189_s11 = sphi %s5258_s11, %s6433_s11  }
   0x7   : > { %s27_s15 = ssub.s32 %s5197_s13, %s5277_s14  ;;  %s30_s16 = sadd.s32 1, %s5193_s12 }
   0x8   : > { %p28_p0 = scmp.eq.s32.totalorder %s27_s15, 0  ;;  %p37_p1 = scmp.ne.s32.totalorder %s5193_s12, %s5189_s11 }
   0x9   : > { %p38_p2 = scmp.eq.s32.totalorder %s5197_s13, 0  ;;  %p3538_p3 = scmp.ge.s32.totalorder %s5197_s13, 1 }
   0xa   : > { %s5287_s17 = scalar_select %p28_p0, %s5193_s12, %s30_s16  }
   0xb   : > { %p5289_p4 = por %p38_p2, %p37_p1  ;;  %p248_p5 = scmp.lt.s32.totalorder %s5197_s13, 3 }
   0xc   : > { %p6422_p6 = scmp.eq.s32.totalorder %s5274_s8, 0  ;;  %s5199_s20 = smov [#allocation5]  }
   0xd   : > { %s6424_s18 = scalar_select %p5289_p4, 1, 0 }
   0xe   : > { %p5295_p7 = pnand %p3538_p3, %p248_p5  ;;  %s269_s21 = sshll.u32 %s5199_s20, 4  ;;  %s270_s21 = int_to_ptr.vmem [resolvable:$true] %s269_s21 }
   0xf   : > { %s5200_s23 = smov [#allocation7]   ;;  %s5111_s27 = scalar_lea.hbm %s6416_s4, 4096 }
  0x10   : > { %s6425_s19 = scalar_select %p5295_p7, 1, 0 }
  0x11   : > { %p4918_p8 = pneg %p5295_p7  ;;  %s282_s24 = sshll.u32 %s5200_s23, 4  ;;  %s5307_s24 = int_to_ptr.vmem [resolvable:$true] %s282_s24 }
  0x12   : > { %p5112_p10 = scmp.ne.s32.totalorder %s6416_s4, %s5111_s27  ;;  %p5118_p0 = scmp.lt.u32.totalorder %s5111_s27, %s6416_s4 }
  0x13   : > { %p5303_p9 = pnand %p6422_p6, %p4918_p8 }
  0x15   : > { %p5113_p11 = pneg %p5303_p9 }
  0x17   : > { %p5114_p12 = pnand %p5113_p11, %p5112_p10 }
  0x19   : > { %p5115_p13 = pneg %p5114_p12 }
  0x1b   : > { %p5120_p1 = pnand %p5118_p0, %p5115_p13 }
  0x1d   : > { %5123 = shalt.err (!%p5120_p1)
}
  0x1e   : > { %s5124_s15 = scalar_lea.vmem %s270_s21, 4096  ;;  %p5132_p8 = scmp.lt.s32.totalorder %s270_s21, %s270_s21 }
  0x1f   : > { %p5125_p2 = scmp.ne.s32.totalorder %s270_s21, %s5124_s15  ;;  %p5133_p6 = scmp.lt.s32.totalorder %s5124_s15, %s5124_s15 }
  0x21   : > { %p5127_p3 = pnand %p5125_p2, %p5113_p11  ;;  %p5134_p7 = por %p5133_p6, %p5132_p8 }
  0x23   : > { %p5128_p5 = pneg %p5127_p3 }
  0x25   : > { %p5135_p4 = pnand %p5134_p7, %p5128_p5 }
  0x27   : > { %5138 = shalt.err (!%p5135_p4)
}
  0x28   : > { %s5201_s16 = smov 64   ;;  %s5202_s20 = smov 4  }
  0x29   : > { %4921 = dma.hbm_to_vmem [thread:$0]  (!%p5303_p9), %s6416_s4, 4096, %s270_s21, [#allocation6], %s5201_s16, %s5201_s16, %s5202_s20  }
  0x2a   : > { %s5139_s28 = scalar_lea.hbm %s6417_s5, 4096 }
  0x2b   : > { %p5140_p10 = scmp.ne.s32.totalorder %s6417_s5, %s5139_s28  ;;  %p5146_p7 = scmp.lt.u32.totalorder %s5139_s28, %s6417_s5 }
  0x2d   : > { %p5142_p4 = pnand %p5140_p10, %p5113_p11 }
  0x2f   : > { %p5143_p6 = pneg %p5142_p4 }
  0x31   : > { %p5148_p12 = pnand %p5146_p7, %p5143_p6 }
  0x33   : > { %5151 = shalt.err (!%p5148_p12)
}
  0x34   : > { %s5152_s21 = scalar_lea.vmem %s5307_s24, 4096  ;;  %p5160_p2 = scmp.lt.s32.totalorder %s5307_s24, %s5307_s24 }
  0x35   : > { %p5153_p13 = scmp.ne.s32.totalorder %s5307_s24, %s5152_s21  ;;  %p5161_p3 = scmp.lt.s32.totalorder %s5152_s21, %s5152_s21 }
  0x37   : > { %p5155_p0 = pnand %p5153_p13, %p5113_p11  ;;  %p5162_p5 = por %p5161_p3, %p5160_p2 }
  0x39   : > { %p5156_p1 = pneg %p5155_p0 }
  0x3b   : > { %p5163_p8 = pnand %p5162_p5, %p5156_p1 }
  0x3d   : > { %5166 = shalt.err (!%p5163_p8)
}
  0x3e   : > { %4924 = dma.hbm_to_vmem [thread:$0]  (!%p5303_p9), %s6417_s5, 4096, %s5307_s24, [#allocation8], %s5201_s16, %s5201_s16, %s5202_s20  }
  0x3f   : > { %p3541_p10 = scmp.ge.s32.totalorder %s5197_s13, 2 }
  0x40   : > { %p6427_p4 = scmp.ne.s32.totalorder (!%p3541_p10), %s6424_s18, 0 }
  0x41   : > { %301 = sbr.rel (%p3541_p10) target bundleno = 80 (0x50), region = 48 }
  0x48   : > { %304 = sbr.rel (!%p6427_p4) target bundleno = 80 (0x50), region = 52  ;;  %s306_s26 = sand.u32 (%p6427_p4), 1, %s5193_s12  }
  0x49   : > { %s3543_s27 = sshll.u32 (%p6427_p4), %s5197_s13, 3  ;;  %s3542_s28 = sshll.u32 (%p6427_p4), %s306_s26, 6 }
  0x4a   : > { %s310_s22 = scalar_lea.vmem (%p6427_p4), %s6412_s0, %s3543_s27  ;;  %s308_s10 = scalar_lea.vmem (%p6427_p4), [#allocation4], %s3542_s28 }
  0x4b   : > { %v352_v1 = vld [vmem:[%s310_s22] sm:$0xff] (%p6427_p4)  ;;  %v354_v2 = vld [vmem:[%s310_s22 + $0x10] sm:$0xff] (%p6427_p4) }
  0x4c   : > { %v356_v3 = vld [vmem:[%s310_s22 + $0x20] sm:$0xff] (%p6427_p4)  ;;  %353 = vst [vmem:[%s308_s10] sm:$0xff] (%p6427_p4), %v352_v1  ;;  %355 = vst [vmem:[%s308_s10 + $0x8] sm:$0xff] (%p6427_p4), %v354_v2  ;;  %v358_v4 = vld [vmem:[%s310_s22 + $0x30] sm:$0xff] (%p6427_p4) }
  0x4d   : > { %357 = vst [vmem:[%s308_s10 + $0x10] sm:$0xff] (%p6427_p4), %v356_v3  ;;  %v360_v5 = vld [vmem:[%s310_s22 + $0x40] sm:$0xff] (%p6427_p4)  ;;  %v362_v6 = vld [vmem:[%s310_s22 + $0x50] sm:$0xff] (%p6427_p4)  ;;  %359 = vst [vmem:[%s308_s10 + $0x18] sm:$0xff] (%p6427_p4), %v358_v4 }
  0x4e   : > { %361 = vst [vmem:[%s308_s10 + $0x20] sm:$0xff] (%p6427_p4), %v360_v5  ;;  %363 = vst [vmem:[%s308_s10 + $0x28] sm:$0xff] (%p6427_p4), %v362_v6  ;;  %v364_v7 = vld [vmem:[%s310_s22 + $0x60] sm:$0xff] (%p6427_p4)  ;;  %v366_v8 = vld [vmem:[%s310_s22 + $0x70] sm:$0xff] (%p6427_p4) }
  0x4f   : > { %365 = vst [vmem:[%s308_s10 + $0x30] sm:$0xff] %v364_v7  ;;  %367 = vst [vmem:[%s308_s10 + $0x38] sm:$0xff] %v366_v8 }
  0x50 PF: > { %p6428_p9 = scmp.ne.s32.totalorder %s6425_s19, 0 }
  0x51   : > { %s379_s13 = sand.u32 (!%p6428_p9), 1, %s5189_s11   ;;  %p6429_p11 = scmp.eq.s32.totalorder (!%p6428_p9), %s5274_s8, 0 }
  0x52   : > { %376 = sbr.rel (%p6428_p9) target bundleno = 7845 (0x1ea5), region = 90  ;;  %s3545_s18 = sshll.u32 (!%p6428_p9), %s379_s13, 6 }
  0x53   : > { %s5367_s24 = scalar_lea.vmem (!%p6428_p9), [#allocation4], %s3545_s18 }
  0x59   : > { %5180 = dma.done.wait (%p6429_p11), [#allocation6], 4096   ;;  %p6430_p6 = pmov %p6429_p11 }
  0x5b   : > { %5182 = vsyncadd (%p6430_p6), [#allocation6], 4294963200  ;;  %p6431_p7 = pmov %p6430_p6 }
  0x5c   : > { %p6432_p12 = pmov %p6430_p6 }
  0x5d   : > { %5184 = dma.done.wait (%p6431_p7), [#allocation8], 4096  }
  0x5e   : > { %5186 = vsyncadd (%p6432_p12), [#allocation8], 4294963200  ;;  %v5203_v9 = vmov 0.0   ;;  %vm5204_vm0 = vmmov 0   ;;  %vm440_vm1 = vcmask 1041408   ;;  %v426_v11 = vld [vmem:[%s5367_s24] sm:$0xff] }
  0x5f   : > { %4034 = vmatprep.subr.bf16.mxu1 %v5203_v9  ;;  %4036 = vmatprep.mubr.msk.bf16.mxu1 %vm5204_vm0, %v5203_v9  ;;  %v428_v10 = vld [vmem:[%s6413_s1] sm:$0x3]  ;;  %v427_v14 = vpack.c.bf16 %v426_v11, %v426_v11  ;;  %vm436_vm2 = vcmask 31744   ;;  %v3551_v20 = vld [vmem:[%s5367_s24 + $0x8] sm:$0xff]  ;;  %v3554_v26 = vld [vmem:[%s5367_s24 + $0x10] sm:$0xff]  ;;  %p421_p13 = scmp.lt.s32.totalorder %s5274_s8, 1 }
  0x60   : > { %4058 = vmatprep.subr.bf16.mxu0 %v5203_v9  ;;  %4060 = vmatprep.mubr.msk.bf16.mxu0 %vm5204_vm0, %v5203_v9  ;;  %v488_v12 = vld [vmem:[%s6413_s1] sm:$0x3]  ;;  %v442_v13 = vsel %vm440_vm1, %v428_v10, 0  ;;  %v487_v25 = vpack.c.bf16 %v3551_v20, %v3551_v20  ;;  %v545_v27 = vpack.c.bf16 %v3554_v26, %v3554_v26  ;;  %v3563_v30 = vld [vmem:[%s5367_s24 + $0x28] sm:$0xff]  ;;  %v5460_v37 = vld [vmem:[%s6414_s2 + $0x18] sm:$0xff]   ;;  %vm3453_vm3 = vcmask 7168  }
  0x61   : > { %4035 = vmatpush3.bf16.msra.mxu1 %v442_v13  ;;  %v500_v15 = vsel %vm440_vm1, %v488_v12, 0  ;;  %v546_v16 = vld [vmem:[%s6413_s1] sm:$0x3]  ;;  %v719_v31 = vpack.c.bf16 %v3563_v30, %v3563_v30  ;;  %v5442_v35 = vld [vmem:[%s6414_s2 + $0x8] sm:$0xff]   ;;  %v5452_v36 = vld [vmem:[%s6414_s2 + $0x10] sm:$0xff]   ;;  %s6437_s8 = smov (!%p421_p13, %s5274_s8), 1 }
  0x62   : > { %4040 = vmatprep.subr.bf16.mxu1 %v5203_v9  ;;  %v604_v17 = vld [vmem:[%s6413_s1] sm:$0x3]  ;;  %v558_v21 = vsel %vm440_vm1, %v546_v16, 0  ;;  %v5475_v39 = vld [vmem:[%s6414_s2 + $0x28] sm:$0xff]   ;;  %v5481_v40 = vld [vmem:[%s6414_s2 + $0x30] sm:$0xff]   ;;  %s3548_s27 = sshll.u32 %s6437_s8, 3 }
  0x63   : > { %v720_v18 = vld [vmem:[%s6413_s1] sm:$0x3]  ;;  %v616_v22 = vsel %vm440_vm1, %v604_v17, 0  ;;  %v5488_v41 = vld [vmem:[%s6414_s2 + $0x38] sm:$0xff]   ;;  %s424_s30 = scalar_lea.vmem %s6421_s9, %s3548_s27 }
  0x64   : > { %4037 = vmatmul.mubr.msk.bf16.vlgmr.msra.gmra.mrb[0].mxu1 %vm436_vm2, %v427_v14  ;;  %v836_v19 = vld [vmem:[%s6413_s1] sm:$0x3]  ;;  %v732_v23 = vsel %vm440_vm1, %v720_v18, 0  ;;  %v3566_v48 = vld [vmem:[%s5367_s24 + $0x30] sm:$0xff] }
  0x65   : > { %4041 = vmatpush3.bf16.msra.mxu1 %v500_v15  ;;  %4042 = vmatprep.mubr.msk.bf16.mxu1 %vm5204_vm0, %v5203_v9  ;;  %v848_v24 = vsel %vm440_vm1, %v836_v19, 0  ;;  %v3557_v28 = vld [vmem:[%s5367_s24 + $0x18] sm:$0xff]  ;;  %v3560_v43 = vld [vmem:[%s5367_s24 + $0x20] sm:$0xff]  ;;  %v777_v49 = vpack.c.bf16 %v3566_v48, %v3566_v48 }
  0x66   : > { %4046 = vmatprep.subr.bf16.mxu1 %v5203_v9  ;;  %v603_v29 = vpack.c.bf16 %v3557_v28, %v3557_v28  ;;  %v3569_v32 = vld [vmem:[%s5367_s24 + $0x38] sm:$0xff]  ;;  %v661_v46 = vpack.c.bf16 %v3560_v43, %v3560_v43  ;;  %v4967_v28 = vld [vmem:[#allocation5] sm:$0xff]  }
  0x67   : > { %v5437_v33 = vld [vmem:[%s6414_s2] sm:$0xff]   ;;  %v835_v34 = vpack.c.bf16 %v3569_v32, %v3569_v32 }
  0x68   : > { %v5468_v38 = vld [vmem:[%s6414_s2 + $0x20] sm:$0xff]  }
  0x69   : > { %v662_v42 = vld [vmem:[%s6413_s1] sm:$0x3] }
  0x6a   : > { %v778_v44 = vld [vmem:[%s6413_s1] sm:$0x3]  ;;  %v674_v45 = vsel %vm440_vm1, %v662_v42, 0  ;;  %v4973_v42 = vld [vmem:[#allocation5 + $0x30] sm:$0xff]  }
  0x6b   : > { %4059 = vmatpush3.bf16.msra.mxu0 %v674_v45  ;;  %v790_v47 = vsel %vm440_vm1, %v778_v44, 0  ;;  %v5530_v50 = vld [vmem:[%s6415_s3] ss:$0 sm:$0xff] }
  0x6c   : > { %4043 = vmatmul.mubr.msk.bf16.vlgmr.msra.gmra.mrb[4].mxu1 %vm436_vm2, %v487_v25  ;;  %4070 = vmatprep.subr.bf16.mxu0 %v5203_v9  ;;  %v4974_v43 = vld [vmem:[#allocation5 + $0x38] sm:$0xff]  }
  0x6d   : > { %4047 = vmatpush3.bf16.msra.mxu1 %v558_v21  ;;  %4048 = vmatprep.mubr.msk.bf16.mxu1 %vm5204_vm0, %v5203_v9 }
  0x6e   : > { %4052 = vmatprep.subr.bf16.mxu1 %v5203_v9  ;;  %4061 = vmatmul.mubr.msk.bf16.vlgmr.msra.gmra.mrb[0].mxu0 %vm436_vm2, %v661_v46  ;;  %v5648_v46 = vld [vmem:[#allocation7] sm:$0xff]  }
  0x6f   : > { %4071 = vmatpush3.bf16.msra.mxu0 %v790_v47  ;;  %4072 = vmatprep.mubr.msk.bf16.mxu0 %vm5204_vm0, %v5203_v9  ;;  %v5651_v47 = vld [vmem:[#allocation7 + $0x8] sm:$0xff]  }
  0x70   : > { %4102 = vmatprep.subr.bf16.mxu0 %v5203_v9 }
  0x74   : > { %4049 = vmatmul.mubr.msk.bf16.vlgmr.msra.gmra.mrb[8].mxu1 %vm436_vm2, %v545_v27 }
  0x75   : > { %4053 = vmatpush3.bf16.msra.mxu1 %v616_v22  ;;  %4054 = vmatprep.mubr.msk.bf16.mxu1 %vm5204_vm0, %v5203_v9 }
  0x76   : > { %4064 = vmatprep.subr.bf16.mxu1 %v5203_v9  ;;  %4073 = vmatmul.mubr.msk.bf16.vlgmr.msra.gmra.mrb[4].mxu0 %vm436_vm2, %v777_v49 }
  0x77   : > { %4103 = vmatpush3.bf16.msra.mxu0 %v5437_v33  ;;  %4118 = vmatprep.mubr.msk.bf16.mxu0 %vm5204_vm0, %v5203_v9 }
  0x78   : > { %4104 = vmatprep.subr.bf16.mxu0 %v5203_v9 }
  0x7b   : > { %4105 = vmatpush3.bf16.msra.mxu0 %v5442_v35 }
  0x7c   : > { %4055 = vmatmul.mubr.msk.bf16.vlgmr.msra.gmra.mrb[12].mxu1 %vm436_vm2, %v603_v29  ;;  %4106 = vmatprep.subr.bf16.mxu0 %v5203_v9 }
  0x7d   : > { %4065 = vmatpush3.bf16.msra.mxu1 %v732_v23  ;;  %4066 = vmatprep.mubr.msk.bf16.mxu1 %vm5204_vm0, %v5203_v9 }
  0x7e   : > { %4076 = vmatprep.subr.bf16.mxu1 %v5203_v9 }
  0x7f   : > { %4107 = vmatpush3.bf16.msra.mxu0 %v5452_v36 }
  0x80   : > { %4108 = vmatprep.subr.bf16.mxu0 %v5203_v9 }
  0x83   : > { %4109 = vmatpush3.bf16.msra.mxu0 %v5460_v37 }
  0x84   : > { %4067 = vmatmul.mubr.msk.bf16.vlgmr.msra.gmra.mrb[16].mxu1 %vm436_vm2, %v719_v31  ;;  %4110 = vmatprep.subr.bf16.mxu0 %v5203_v9 }
  0x85   : > { %4077 = vmatpush3.bf16.msra.mxu1 %v848_v24  ;;  %4078 = vmatprep.mubr.msk.bf16.mxu1 %vm5204_vm0, %v5203_v9 }
  0x86   : > { %4082 = vmatprep.subr.bf16.mxu1 %v5203_v9 }
  0x87   : > { %4111 = vmatpush3.bf16.msra.mxu0 %v5468_v38 }
  0x88   : > { %4112 = vmatprep.subr.bf16.mxu0 %v5203_v9 }
  0x8b   : > { %4113 = vmatpush3.bf16.msra.mxu0 %v5475_v39 }
  0x8c   : > { %4079 = vmatmul.mubr.msk.bf16.vlgmr.msra.gmra.mrb[20].mxu1 %vm436_vm2, %v835_v34  ;;  %4114 = vmatprep.subr.bf16.mxu0 %v5203_v9 }
  0x8d   : > { %4083 = vmatpush3.bf16.msra.mxu1 %v5437_v33  ;;  %4098 = vmatprep.mubr.msk.bf16.mxu1 %vm5204_vm0, %v5203_v9 }
  0x8e   : > { %4084 = vmatprep.subr.bf16.mxu1 %v5203_v9 }
  0x8f   : > { %4115 = vmatpush3.bf16.msra.mxu0 %v5481_v40 }
  0x90   : > { %4116 = vmatprep.subr.bf16.mxu0 %v5203_v9 }
  0x91   : > { %4085 = vmatpush3.bf16.msra.mxu1 %v5442_v35 }
  0x92   : > { %4086 = vmatprep.subr.bf16.mxu1 %v5203_v9 }
  0x93   : > { %4117 = vmatpush3.bf16.msra.mxu0 %v5488_v41 }
  0x94   : > { %4142 = vmatprep.subr.bf16.mxu0 %v5203_v9 }
  0x95   : > { %4087 = vmatpush3.bf16.msra.mxu1 %v5452_v36 }
  0x96   : > { %4088 = vmatprep.subr.bf16.mxu1 %v5203_v9 }
  0x99   : > { %4089 = vmatpush3.bf16.msra.mxu1 %v5460_v37 }
  0x9a   : > { %4090 = vmatprep.subr.bf16.mxu1 %v5203_v9 }
  0x9d   : > { %4091 = vmatpush3.bf16.msra.mxu1 %v5468_v38 }
  0x9e   : > { %4092 = vmatprep.subr.bf16.mxu1 %v5203_v9 }
  0xa1   : > { %4093 = vmatpush3.bf16.msra.mxu1 %v5475_v39 }
  0xa2   : > { %4094 = vmatprep.subr.bf16.mxu1 %v5203_v9 }
  0xa5   : > { %4095 = vmatpush3.bf16.msra.mxu1 %v5481_v40 }
  0xa6   : > { %4096 = vmatprep.subr.bf16.mxu1 %v5203_v9 }
  0xa9   : > { %4097 = vmatpush3.bf16.msra.mxu1 %v5488_v41 }
  0xaa   : > { %4122 = vmatprep.subr.bf16.mxu1 %v5203_v9 }
 0x137   : > { %v478_v51 = vpop.f32.mrb[0].mxu1 }
 0x138   : > { %v479_v52 = vadd.f32 %v5530_v50, %v478_v51  ;;  %v4038_v53 = vpop.f32.mrb[1].mxu1 }
 0x139   : > { %v481_v54 = vpop.f32.mrb[2].mxu1 }
 0x13a   : > { %5031 = vtanh.f32 %v479_v52  ;;  %v4039_v55 = vpop.f32.mrb[3].mxu1 }
 0x144   : > { %v5533_v56 = vpop.eup %5031 }
 0x145   : > { %v911_v57 = vpack.c.bf16 %v5533_v56, %v5533_v56 }
 0x147   : > { %4099 = vmatmul.mubr.bf16.vlgmr.msra.gmra.mrb[4].mxu1 %v911_v57  ;;  %v594_v58 = vpop.f32.mrb[8].mxu1 }
 0x148   : > { %v4050_v59 = vpop.f32.mrb[9].mxu1  ;;  %4123 = vmatpush3.bf16.msra.mxu1 %v5437_v33  ;;  %4138 = vmatprep.mubr.msk.bf16.mxu1 %vm5204_vm0, %v5203_v9  ;;  %v595_v5 = vadd.f32 %v5530_v50, %v594_v58 }
 0x149   : > { %v597_v60 = vpop.f32.mrb[10].mxu1  ;;  %4124 = vmatprep.subr.bf16.mxu1 %v5203_v9 }
 0x14a   : > { %v4051_v61 = vpop.f32.mrb[11].mxu1  ;;  %v5669_v60 = vld [vmem:[#allocation7 + $0x10] sm:$0xff]  }
 0x14b   : > { %v5674_v61 = vld [vmem:[#allocation7 + $0x18] sm:$0xff]  }
 0x14c   : > { %4125 = vmatpush3.bf16.msra.mxu1 %v5442_v35 }
 0x14d   : > { %4126 = vmatprep.subr.bf16.mxu1 %v5203_v9 }
 0x150   : > { %4127 = vmatpush3.bf16.msra.mxu1 %v5452_v36 }
 0x151   : > { %4128 = vmatprep.subr.bf16.mxu1 %v5203_v9 }
 0x154   : > { %4129 = vmatpush3.bf16.msra.mxu1 %v5460_v37 }
 0x155   : > { %4130 = vmatprep.subr.bf16.mxu1 %v5203_v9 }
 0x158   : > { %4131 = vmatpush3.bf16.msra.mxu1 %v5468_v38 }
 0x159   : > { %4132 = vmatprep.subr.bf16.mxu1 %v5203_v9 }
 0x15c   : > { %4133 = vmatpush3.bf16.msra.mxu1 %v5475_v39 }
 0x15d   : > { %4134 = vmatprep.subr.bf16.mxu1 %v5203_v9 }
 0x160   : > { %4135 = vmatpush3.bf16.msra.mxu1 %v5481_v40 }
 0x161   : > { %4136 = vmatprep.subr.bf16.mxu1 %v5203_v9 }
 0x164   : > { %4137 = vmatpush3.bf16.msra.mxu1 %v5488_v41 }
 0x165   : > { %4162 = vmatprep.subr.bf16.mxu1 %v5203_v9 }
 0x21a   : > { %v994_v62 = vpop.f32.mrb[4].mxu1 }
 0x21b   : > { %v4878_v63 = vadd.f32 %v5530_v50, %v994_v62  ;;  %v4100_v0 = vpop.f32.mrb[5].mxu1  ;;  %v5678_v62 = vld [vmem:[#allocation7 + $0x20] sm:$0xff]  }
 0x21c   : > { %v997_v1 = vpop.f32.mrb[6].mxu1  ;;  %v5693_v0 = vld [vmem:[#allocation7 + $0x30] sm:$0xff]  }
 0x21d   : > { %5033 = vtanh.f32 %v4878_v63  ;;  %v4101_v2 = vpop.f32.mrb[7].mxu1  ;;  %v5684_v63 = vld [vmem:[#allocation7 + $0x28] sm:$0xff]   ;;  %v5696_v1 = vld [vmem:[#allocation7 + $0x38] sm:$0xff]  }
 0x227   : > { %v5556_v3 = vpop.eup %5033 }
 0x228   : > { %v1004_v4 = vpack.c.bf16 %v5556_v3, %v5556_v3 }
 0x22a   : > { %4119 = vmatmul.mubr.bf16.vlgmr.msra.gmra.mrb[8].mxu0 %v1004_v4 }
 0x22b   : > { %4143 = vmatpush3.bf16.msra.mxu0 %v5437_v33  ;;  %4158 = vmatprep.mubr.msk.bf16.mxu0 %vm5204_vm0, %v5203_v9 }
 0x22c   : > { %4144 = vmatprep.subr.bf16.mxu0 %v5203_v9 }
 0x22f   : > { %4145 = vmatpush3.bf16.msra.mxu0 %v5442_v35 }
 0x230   : > { %4146 = vmatprep.subr.bf16.mxu0 %v5203_v9 }
 0x233   : > { %4147 = vmatpush3.bf16.msra.mxu0 %v5452_v36 }
 0x234   : > { %4148 = vmatprep.subr.bf16.mxu0 %v5203_v9 }
 0x237   : > { %4149 = vmatpush3.bf16.msra.mxu0 %v5460_v37 }
 0x238   : > { %4150 = vmatprep.subr.bf16.mxu0 %v5203_v9 }
 0x23b   : > { %4151 = vmatpush3.bf16.msra.mxu0 %v5468_v38 }
 0x23c   : > { %4152 = vmatprep.subr.bf16.mxu0 %v5203_v9 }
 0x23f   : > { %4153 = vmatpush3.bf16.msra.mxu0 %v5475_v39 }
 0x240   : > { %4154 = vmatprep.subr.bf16.mxu0 %v5203_v9 }
 0x243   : > { %4155 = vmatpush3.bf16.msra.mxu0 %v5481_v40 }
 0x244   : > { %4156 = vmatprep.subr.bf16.mxu0 %v5203_v9 }
 0x247   : > { %4157 = vmatpush3.bf16.msra.mxu0 %v5488_v41 }
 0x248   : > { %4182 = vmatprep.subr.bf16.mxu0 %v5203_v9 }
 0x2fd   : > { %v1039_v6 = vpop.f32.mrb[8].mxu0 }
 0x2fe   : > { %v1045_v7 = vadd.f32 %v1039_v6, %v595_v5  ;;  %v4120_v8 = vpop.f32.mrb[9].mxu0  ;;  %v5709_v5 = vld [vmem:[%s6418_s6] ss:$0 sm:$0xff] }
 0x2ff   : > { %v1042_v10 = vpop.f32.mrb[10].mxu0 }
 0x300   : > { %5035 = vtanh.f32 %v1045_v7  ;;  %v4121_v11 = vpop.f32.mrb[11].mxu0 }
 0x30a   : > { %v5579_v12 = vpop.eup %5035 }
 0x30b   : > { %v1049_v13 = vpack.c.bf16 %v5579_v12, %v5579_v12 }
 0x30d   : > { %4139 = vmatmul.mubr.bf16.vlgmr.msra.gmra.mrb[12].mxu1 %v1049_v13 }
 0x30e   : > { %4163 = vmatpush3.bf16.msra.mxu1 %v5437_v33  ;;  %4178 = vmatprep.mubr.msk.bf16.mxu1 %vm5204_vm0, %v5203_v9 }
 0x30f   : > { %4164 = vmatprep.subr.bf16.mxu1 %v5203_v9 }
 0x312   : > { %4165 = vmatpush3.bf16.msra.mxu1 %v5442_v35 }
 0x313   : > { %4166 = vmatprep.subr.bf16.mxu1 %v5203_v9 }
 0x316   : > { %4167 = vmatpush3.bf16.msra.mxu1 %v5452_v36 }
 0x317   : > { %4168 = vmatprep.subr.bf16.mxu1 %v5203_v9 }
 0x31a   : > { %4169 = vmatpush3.bf16.msra.mxu1 %v5460_v37 }
 0x31b   : > { %4170 = vmatprep.subr.bf16.mxu1 %v5203_v9 }
 0x31e   : > { %4171 = vmatpush3.bf16.msra.mxu1 %v5468_v38 }
 0x31f   : > { %4172 = vmatprep.subr.bf16.mxu1 %v5203_v9 }
 0x322   : > { %4173 = vmatpush3.bf16.msra.mxu1 %v5475_v39 }
 0x323   : > { %4174 = vmatprep.subr.bf16.mxu1 %v5203_v9 }
 0x326   : > { %4175 = vmatpush3.bf16.msra.mxu1 %v5481_v40 }
 0x327   : > { %4176 = vmatprep.subr.bf16.mxu1 %v5203_v9 }
 0x32a   : > { %4177 = vmatpush3.bf16.msra.mxu1 %v5488_v41 }
 0x32b   : > { %4202 = vmatprep.subr.bf16.mxu1 %v5203_v9 }
 0x3e0   : > { %v1084_v14 = vpop.f32.mrb[12].mxu1 }
 0x3e1   : > { %v4881_v15 = vadd.f32 %v5530_v50, %v1084_v14  ;;  %v4140_v16 = vpop.f32.mrb[13].mxu1 }
 0x3e2   : > { %v1087_v17 = vpop.f32.mrb[14].mxu1 }
 0x3e3   : > { %5037 = vtanh.f32 %v4881_v15  ;;  %v4141_v18 = vpop.f32.mrb[15].mxu1 }
 0x3ed   : > { %v5602_v19 = vpop.eup %5037 }
 0x3ee   : > { %v1094_v20 = vpack.c.bf16 %v5602_v19, %v5602_v19  ;;  %v1282_v44 = vpack.c.bf16 %v5602_v19, %v5579_v12 }
 0x3f0   : > { %4159 = vmatmul.mubr.bf16.vlgmr.msra.gmra.mrb[0].mxu0 %v1094_v20 }
 0x3f1   : > { %4183 = vmatpush3.bf16.msra.mxu0 %v5437_v33  ;;  %4198 = vmatprep.mubr.msk.bf16.mxu0 %vm5204_vm0, %v5203_v9 }
 0x3f2   : > { %4184 = vmatprep.subr.bf16.mxu0 %v5203_v9 }
 0x3f5   : > { %4185 = vmatpush3.bf16.msra.mxu0 %v5442_v35 }
 0x3f6   : > { %4186 = vmatprep.subr.bf16.mxu0 %v5203_v9 }
 0x3f9   : > { %4187 = vmatpush3.bf16.msra.mxu0 %v5452_v36 }
 0x3fa   : > { %4188 = vmatprep.subr.bf16.mxu0 %v5203_v9 }
 0x3fd   : > { %4189 = vmatpush3.bf16.msra.mxu0 %v5460_v37 }
 0x3fe   : > { %4190 = vmatprep.subr.bf16.mxu0 %v5203_v9 }
 0x401   : > { %4191 = vmatpush3.bf16.msra.mxu0 %v5468_v38 }
 0x402   : > { %4192 = vmatprep.subr.bf16.mxu0 %v5203_v9 }
 0x405   : > { %4193 = vmatpush3.bf16.msra.mxu0 %v5475_v39 }
 0x406   : > { %4194 = vmatprep.subr.bf16.mxu0 %v5203_v9 }
 0x409   : > { %4195 = vmatpush3.bf16.msra.mxu0 %v5481_v40 }
 0x40a   : > { %4196 = vmatprep.subr.bf16.mxu0 %v5203_v9 }
 0x40d   : > { %4197 = vmatpush3.bf16.msra.mxu0 %v5488_v41 }
 0x40e   : > { %4222 = vmatprep.subr.bf16.mxu0 %v4967_v28 }
 0x4c3   : > { %v1129_v21 = vpop.f32.mrb[0].mxu0 }
 0x4c4   : > { %v4882_v22 = vadd.f32 %v5530_v50, %v1129_v21  ;;  %v4160_v23 = vpop.f32.mrb[1].mxu0 }
 0x4c5   : > { %v1132_v24 = vpop.f32.mrb[2].mxu0 }
 0x4c6   : > { %5039 = vtanh.f32 %v4882_v22  ;;  %v4161_v25 = vpop.f32.mrb[3].mxu0 }
 0x4d0   : > { %v5040_v26 = vpop.eup %5039 }
 0x4d1   : > { %v1139_v27 = vpack.c.bf16 %v5040_v26, %v5040_v26 }
 0x4d3   : > { %4179 = vmatmul.mubr.bf16.vlgmr.msra.gmra.mrb[16].mxu1 %v1139_v27 }
 0x4d4   : > { %4203 = vmatpush3.bf16.msra.mxu1 %v5437_v33  ;;  %4218 = vmatprep.mubr.msk.bf16.mxu1 %vm5204_vm0, %v5203_v9 }
 0x4d5   : > { %4204 = vmatprep.subr.bf16.mxu1 %v5203_v9 }
 0x4d8   : > { %4205 = vmatpush3.bf16.msra.mxu1 %v5442_v35 }
 0x4d9   : > { %4206 = vmatprep.subr.bf16.mxu1 %v5203_v9 }
 0x4dc   : > { %4207 = vmatpush3.bf16.msra.mxu1 %v5452_v36  ;;  %v4968_v36 = vld [vmem:[#allocation5 + $0x8] sm:$0xff]  }
 0x4dd   : > { %4208 = vmatprep.subr.bf16.mxu1 %v5203_v9 }
 0x4e0   : > { %4209 = vmatpush3.bf16.msra.mxu1 %v5460_v37  ;;  %v1281_v37 = vpack.c.bf16 %v5556_v3, %v5533_v56 }
 0x4e1   : > { %4210 = vmatprep.subr.bf16.mxu1 %v5203_v9 }
 0x4e4   : > { %4211 = vmatpush3.bf16.msra.mxu1 %v5468_v38  ;;  %v4969_v38 = vld [vmem:[#allocation5 + $0x10] sm:$0xff]  }
 0x4e5   : > { %4212 = vmatprep.subr.bf16.mxu1 %v5203_v9 }
 0x4e8   : > { %4213 = vmatpush3.bf16.msra.mxu1 %v5475_v39  ;;  %v4970_v39 = vld [vmem:[#allocation5 + $0x18] sm:$0xff]  }
 0x4e9   : > { %4214 = vmatprep.subr.bf16.mxu1 %v5203_v9 }
 0x4ec   : > { %4215 = vmatpush3.bf16.msra.mxu1 %v5481_v40  ;;  %v4971_v40 = vld [vmem:[#allocation5 + $0x20] sm:$0xff]  }
 0x4ed   : > { %4216 = vmatprep.subr.bf16.mxu1 %v5203_v9 }
 0x4f0   : > { %4217 = vmatpush3.bf16.msra.mxu1 %v5488_v41  ;;  %v4972_v41 = vld [vmem:[#allocation5 + $0x28] sm:$0xff]  }
 0x4f1   : > { %4266 = vmatprep.subr.bf16.mxu1 %v5203_v9 }
 0x5a6   : > { %v1174_v29 = vpop.f32.mrb[16].mxu1 }
 0x5a7   : > { %v4883_v30 = vadd.f32 %v5530_v50, %v1174_v29  ;;  %v4180_v31 = vpop.f32.mrb[17].mxu1 }
 0x5a8   : > { %v1177_v32 = vpop.f32.mrb[18].mxu1 }
 0x5a9   : > { %5041 = vtanh.f32 %v4883_v30  ;;  %v4181_v33 = vpop.f32.mrb[19].mxu1 }
 0x5b3   : > { %v5042_v34 = vpop.eup %5041 }
 0x5b4   : > { %v1184_v35 = vpack.c.bf16 %v5042_v34, %v5042_v34  ;;  %v1283_v45 = vpack.c.bf16 %v5042_v34, %v5040_v26 }
 0x5b6   : > { %4199 = vmatmul.mubr.bf16.vlgmr.msra.gmra.mrb[4].mxu0 %v1184_v35 }
 0x5b7   : > { %4223 = vmatpush3.bf16.msra.mxu0 %v4967_v28  ;;  %4238 = vmatprep.mubr.bf16.mxu0 %v1281_v37 }
 0x5b8   : > { %4224 = vmatprep.subr.bf16.mxu0 %v4968_v36 }
 0x5bb   : > { %4225 = vmatpush3.bf16.msra.mxu0 %v4968_v36 }
 0x5bc   : > { %4226 = vmatprep.subr.bf16.mxu0 %v4969_v38 }
 0x5bf   : > { %4227 = vmatpush3.bf16.msra.mxu0 %v4969_v38 }
 0x5c0   : > { %4228 = vmatprep.subr.bf16.mxu0 %v4970_v39 }
 0x5c3   : > { %4229 = vmatpush3.bf16.msra.mxu0 %v4970_v39 }
 0x5c4   : > { %4230 = vmatprep.subr.bf16.mxu0 %v4971_v40 }
 0x5c7   : > { %4231 = vmatpush3.bf16.msra.mxu0 %v4971_v40 }
 0x5c8   : > { %4232 = vmatprep.subr.bf16.mxu0 %v4972_v41 }
 0x5cb   : > { %4233 = vmatpush3.bf16.msra.mxu0 %v4972_v41 }
 0x5cc   : > { %4234 = vmatprep.subr.bf16.mxu0 %v4973_v42 }
 0x5cf   : > { %4235 = vmatpush3.bf16.msra.mxu0 %v4973_v42 }
 0x5d0   : > { %4236 = vmatprep.subr.bf16.mxu0 %v4974_v43 }
 0x5d3   : > { %4237 = vmatpush3.bf16.msra.mxu0 %v4974_v43 }
 0x5d4   : > { %4246 = vmatprep.subr.bf16.mxu0 %v5203_v9 }
 0x5d6   : > { %4239 = vmatmul.mubr.bf16.vlgmr.msra.gmra.mrb[12].mxu0 %v1282_v44 }
 0x5d7   : > { %4242 = vmatprep.mubr.bf16.mxu0 %v1283_v45  ;;  %4247 = vmatpush3.bf16.msra.mxu0 %v5648_v46 }
 0x5d8   : > { %4248 = vmatprep.subr.bf16.mxu0 %v5203_v9 }
 0x5db   : > { %4249 = vmatpush3.bf16.msra.mxu0 %v5651_v47 }
 0x5dc   : > { %4250 = vmatprep.subr.bf16.mxu0 %v5203_v9 }
 0x5df   : > { %4251 = vmatpush3.bf16.msra.mxu0 %v5669_v60 }
 0x5e0   : > { %4252 = vmatprep.subr.bf16.mxu0 %v5203_v9 }
 0x5e3   : > { %4253 = vmatpush3.bf16.msra.mxu0 %v5674_v61 }
 0x5e4   : > { %4254 = vmatprep.subr.bf16.mxu0 %v5203_v9 }
 0x5e7   : > { %4255 = vmatpush3.bf16.msra.mxu0 %v5678_v62 }
 0x5e8   : > { %4256 = vmatprep.subr.bf16.mxu0 %v5203_v9 }
 0x5eb   : > { %4257 = vmatpush3.bf16.msra.mxu0 %v5684_v63 }
 0x5ec   : > { %4258 = vmatprep.subr.bf16.mxu0 %v5203_v9 }
 0x5ef   : > { %4259 = vmatpush3.bf16.msra.mxu0 %v5693_v0 }
 0x5f0   : > { %4260 = vmatprep.subr.bf16.mxu0 %v5203_v9 }
 0x5f3   : > { %4261 = vmatpush3.bf16.msra.mxu0 %v5696_v1 }
 0x5f4   : > { %4286 = vmatprep.subr.bf16.mxu0 %v5203_v9 }
 0x689   : > { %v1219_v48 = vpop.f32.mrb[4].mxu0 }
 0x68a   : > { %v4884_v49 = vadd.f32 %v5530_v50, %v1219_v48  ;;  %v4200_v51 = vpop.f32.mrb[5].mxu0 }
 0x68b   : > { %v1222_v52 = vpop.f32.mrb[6].mxu0 }
 0x68c   : > { %5043 = vtanh.f32 %v4884_v49  ;;  %v4201_v53 = vpop.f32.mrb[7].mxu0 }
 0x696   : > { %v5044_v54 = vpop.eup %5043 }
 0x697   : > { %v1229_v55 = vpack.c.bf16 %v5044_v54, %v5044_v54 }
 0x699   : > { %4219 = vmatmul.mubr.bf16.vlgmr.msra.gmra.mrb[20].mxu1 %v1229_v55 }
 0x69a   : > { %4267 = vmatpush3.bf16.msra.mxu1 %v5648_v46  ;;  %4282 = vmatprep.mubr.msk.bf16.mxu1 %vm5204_vm0, %v5203_v9 }
 0x69b   : > { %4268 = vmatprep.subr.bf16.mxu1 %v5203_v9 }
 0x69e   : > { %4269 = vmatpush3.bf16.msra.mxu1 %v5651_v47 }
 0x69f   : > { %4270 = vmatprep.subr.bf16.mxu1 %v5203_v9 }
 0x6a2   : > { %4271 = vmatpush3.bf16.msra.mxu1 %v5669_v60 }
 0x6a3   : > { %4272 = vmatprep.subr.bf16.mxu1 %v5203_v9 }
 0x6a6   : > { %4273 = vmatpush3.bf16.msra.mxu1 %v5674_v61 }
 0x6a7   : > { %4274 = vmatprep.subr.bf16.mxu1 %v5203_v9 }
 0x6a9   : > { %v5663_v56 = vpop.f32.mrb[12].mxu0 }
 0x6aa   : > { %v1390_v57 = vpop.f32.mrb[13].mxu0  ;;  %4275 = vmatpush3.bf16.msra.mxu1 %v5678_v62  ;;  %v1399_v25 = vadd.f32 %v5663_v56, %v5709_v5 }
 0x6ab   : > { %v5665_v58 = vpop.f32.mrb[14].mxu0  ;;  %4276 = vmatprep.subr.bf16.mxu1 %v5203_v9  ;;  %v1391_v8 = vadd.f32 %v5709_v5, %v1390_v57 }
 0x6ac   : > { %v5667_v59 = vpop.f32.mrb[15].mxu0  ;;  %v1402_v33 = vadd.f32 %v5665_v58, %v5709_v5 }
 0x6ad   : > { %v1394_v17 = vadd.f32 %v5709_v5, %v5667_v59  ;;  %v4984_v59 = vld [vmem:[#allocation5 + $0x48] sm:$0xff]  }
 0x6ae   : > { %4277 = vmatpush3.bf16.msra.mxu1 %v5684_v63 }
 0x6af   : > { %4278 = vmatprep.subr.bf16.mxu1 %v5203_v9 }
 0x6b2   : > { %4279 = vmatpush3.bf16.msra.mxu1 %v5693_v0 }
 0x6b3   : > { %4280 = vmatprep.subr.bf16.mxu1 %v5203_v9 }
 0x6b6   : > { %4281 = vmatpush3.bf16.msra.mxu1 %v5696_v1 }
 0x6b7   : > { %4306 = vmatprep.subr.bf16.mxu1 %v5203_v9 }
 0x76c   : > { %v1264_v2 = vpop.f32.mrb[20].mxu1 }
 0x76d   : > { %v4885_v3 = vadd.f32 %v5530_v50, %v1264_v2  ;;  %v4220_v4 = vpop.f32.mrb[21].mxu1  ;;  %v4990_v2 = vld [vmem:[#allocation5 + $0x78] sm:$0xff]  }
 0x76e   : > { %v1267_v6 = vpop.f32.mrb[22].mxu1 }
 0x76f   : > { %5045 = vtanh.f32 %v4885_v3  ;;  %v4221_v7 = vpop.f32.mrb[23].mxu1  ;;  %v5842_v6 = vld [vmem:[#allocation7 + $0x40] sm:$0xff]  }
 0x770   : > { %5047 = vtanh.f32 %v1391_v8  ;;  %v5846_v7 = vld [vmem:[#allocation7 + $0x48] sm:$0xff]   ;;  %v5850_v8 = vld [vmem:[#allocation7 + $0x50] sm:$0xff]  }
 0x779   : > { %v5046_v10 = vpop.eup %5045 }
 0x77a   : > { %v1284_v11 = vpack.c.bf16 %v5046_v10, %v5044_v54  ;;  %v5714_v12 = vpop.eup %5047  ;;  %v5854_v10 = vld [vmem:[#allocation7 + $0x58] sm:$0xff]  }
 0x77b   : > { %v1449_v50 = vpack.c.bf16 %v5714_v12, %v5714_v12 }
 0x77c   : > { %4243 = vmatmul.mubr.bf16.gmra.mrb[16].mxu0 %v1284_v11  ;;  %v5858_v11 = vld [vmem:[#allocation7 + $0x60] sm:$0xff]  }
 0x77d   : > { %4262 = vmatprep.mubr.msk.bf16.mxu0 %vm5204_vm0, %v5203_v9 }
 0x784   : > { %4263 = vmatmul.mubr.bf16.vlgmr.msra.gmra.mrb[20].mxu0 %v1449_v50  ;;  %v5866_v50 = vld [vmem:[#allocation7 + $0x70] sm:$0xff]  }
 0x785   : > { %4287 = vmatpush3.bf16.msra.mxu0 %v5648_v46  ;;  %4302 = vmatprep.mubr.msk.bf16.mxu0 %vm5204_vm0, %v5203_v9 }
 0x786   : > { %4288 = vmatprep.subr.bf16.mxu0 %v5203_v9 }
 0x789   : > { %4289 = vmatpush3.bf16.msra.mxu0 %v5651_v47 }
 0x78a   : > { %4290 = vmatprep.subr.bf16.mxu0 %v5203_v9 }
 0x78d   : > { %4291 = vmatpush3.bf16.msra.mxu0 %v5669_v60 }
 0x78e   : > { %4292 = vmatprep.subr.bf16.mxu0 %v5203_v9 }
 0x791   : > { %4293 = vmatpush3.bf16.msra.mxu0 %v5674_v61 }
 0x792   : > { %4294 = vmatprep.subr.bf16.mxu0 %v5203_v9 }
 0x795   : > { %4295 = vmatpush3.bf16.msra.mxu0 %v5678_v62 }
 0x796   : > { %4296 = vmatprep.subr.bf16.mxu0 %v5203_v9 }
 0x799   : > { %4297 = vmatpush3.bf16.msra.mxu0 %v5684_v63 }
 0x79a   : > { %4298 = vmatprep.subr.bf16.mxu0 %v5203_v9 }
 0x79d   : > { %4299 = vmatpush3.bf16.msra.mxu0 %v5693_v0 }
 0x79e   : > { %4300 = vmatprep.subr.bf16.mxu0 %v5203_v9 }
 0x7a1   : > { %4301 = vmatpush3.bf16.msra.mxu0 %v5696_v1 }
 0x7a2   : > { %4326 = vmatprep.subr.bf16.mxu0 %v5203_v9 }
 0x84f   : > { %v5736_v13 = vpop.f32.mrb[16].mxu0 }
 0x850   : > { %v5738_v14 = vpop.f32.mrb[17].mxu0 }
 0x851   : > { %v5740_v15 = vpop.f32.mrb[18].mxu0  ;;  %v1407_v41 = vadd.f32 %v5709_v5, %v5738_v14  ;;  %v5870_v14 = vld [vmem:[#allocation7 + $0x78] sm:$0xff]  }
 0x852   : > { %v5742_v16 = vpop.f32.mrb[19].mxu0 }
 0x857   : > { %v1532_v18 = vpop.f32.mrb[20].mxu0 }
 0x858   : > { %v1538_v19 = vadd.f32 %v1532_v18, %v1394_v17  ;;  %v4264_v20 = vpop.f32.mrb[21].mxu0 }
 0x859   : > { %v1535_v21 = vpop.f32.mrb[22].mxu0 }
 0x85a   : > { %5049 = vtanh.f32 %v1538_v19  ;;  %v4265_v22 = vpop.f32.mrb[23].mxu0 }
 0x864   : > { %v5746_v23 = vpop.eup %5049 }
 0x865   : > { %v1542_v24 = vpack.c.bf16 %v5746_v23, %v5746_v23 }
 0x867   : > { %4283 = vmatmul.mubr.bf16.vlgmr.msra.gmra.mrb[24].mxu1 %v1542_v24 }
 0x868   : > { %4307 = vmatpush3.bf16.msra.mxu1 %v5648_v46  ;;  %4322 = vmatprep.mubr.msk.bf16.mxu1 %vm5204_vm0, %v5203_v9 }
 0x869   : > { %4308 = vmatprep.subr.bf16.mxu1 %v5203_v9 }
 0x86c   : > { %4309 = vmatpush3.bf16.msra.mxu1 %v5651_v47 }
 0x86d   : > { %4310 = vmatprep.subr.bf16.mxu1 %v5203_v9 }
 0x870   : > { %4311 = vmatpush3.bf16.msra.mxu1 %v5669_v60 }
 0x871   : > { %4312 = vmatprep.subr.bf16.mxu1 %v5203_v9 }
 0x874   : > { %4313 = vmatpush3.bf16.msra.mxu1 %v5674_v61 }
 0x875   : > { %4314 = vmatprep.subr.bf16.mxu1 %v5203_v9 }
 0x878   : > { %4315 = vmatpush3.bf16.msra.mxu1 %v5678_v62 }
 0x879   : > { %4316 = vmatprep.subr.bf16.mxu1 %v5203_v9 }
 0x87c   : > { %4317 = vmatpush3.bf16.msra.mxu1 %v5684_v63 }
 0x87d   : > { %4318 = vmatprep.subr.bf16.mxu1 %v5203_v9 }
 0x880   : > { %4319 = vmatpush3.bf16.msra.mxu1 %v5693_v0 }
 0x881   : > { %4320 = vmatprep.subr.bf16.mxu1 %v5203_v9 }
 0x884   : > { %4321 = vmatpush3.bf16.msra.mxu1 %v5696_v1 }
 0x885   : > { %4346 = vmatprep.subr.bf16.mxu1 %v5203_v9 }
 0x93a   : > { %v1577_v26 = vpop.f32.mrb[24].mxu1 }
 0x93b   : > { %v1583_v27 = vadd.f32 %v1577_v26, %v1399_v25  ;;  %v4284_v28 = vpop.f32.mrb[25].mxu1 }
 0x93c   : > { %v1580_v29 = vpop.f32.mrb[26].mxu1 }
 0x93d   : > { %5051 = vtanh.f32 %v1583_v27  ;;  %v4285_v30 = vpop.f32.mrb[27].mxu1 }
 0x947   : > { %v5770_v31 = vpop.eup %5051 }
 0x948   : > { %v1587_v32 = vpack.c.bf16 %v5770_v31, %v5770_v31 }
 0x94a   : > { %4303 = vmatmul.mubr.bf16.vlgmr.msra.gmra.mrb[24].mxu0 %v1587_v32 }
 0x94b   : > { %4327 = vmatpush3.bf16.msra.mxu0 %v5648_v46  ;;  %4342 = vmatprep.mubr.msk.bf16.mxu0 %vm5204_vm0, %v5203_v9 }
 0x94c   : > { %4328 = vmatprep.subr.bf16.mxu0 %v5203_v9 }
 0x94f   : > { %4329 = vmatpush3.bf16.msra.mxu0 %v5651_v47 }
 0x950   : > { %4330 = vmatprep.subr.bf16.mxu0 %v5203_v9 }
 0x953   : > { %4331 = vmatpush3.bf16.msra.mxu0 %v5669_v60 }
 0x954   : > { %4332 = vmatprep.subr.bf16.mxu0 %v5203_v9 }
 0x957   : > { %4333 = vmatpush3.bf16.msra.mxu0 %v5674_v61 }
 0x958   : > { %4334 = vmatprep.subr.bf16.mxu0 %v5203_v9 }
 0x95b   : > { %4335 = vmatpush3.bf16.msra.mxu0 %v5678_v62 }
 0x95c   : > { %4336 = vmatprep.subr.bf16.mxu0 %v5203_v9 }
 0x95f   : > { %4337 = vmatpush3.bf16.msra.mxu0 %v5684_v63 }
 0x960   : > { %4338 = vmatprep.subr.bf16.mxu0 %v5203_v9 }
 0x963   : > { %4339 = vmatpush3.bf16.msra.mxu0 %v5693_v0 }
 0x964   : > { %4340 = vmatprep.subr.bf16.mxu0 %v5203_v9 }
 0x967   : > { %4341 = vmatpush3.bf16.msra.mxu0 %v5696_v1 }
 0x968   : > { %4366 = vmatprep.subr.bf16.mxu0 %v5203_v9 }
 0xa1d   : > { %v1622_v34 = vpop.f32.mrb[24].mxu0 }
 0xa1e   : > { %v1628_v35 = vadd.f32 %v1622_v34, %v1402_v33  ;;  %v4304_v36 = vpop.f32.mrb[25].mxu0 }
 0xa1f   : > { %v1625_v37 = vpop.f32.mrb[26].mxu0 }
 0xa20   : > { %5053 = vtanh.f32 %v1628_v35  ;;  %v4305_v38 = vpop.f32.mrb[27].mxu0 }
 0xa2a   : > { %v5794_v39 = vpop.eup %5053 }
 0xa2b   : > { %v1632_v40 = vpack.c.bf16 %v5794_v39, %v5794_v39  ;;  %v1820_v3 = vpack.c.bf16 %v5794_v39, %v5770_v31  ;;  %v1418_v31 = vadd.f32 %v5740_v15, %v5709_v5 }
 0xa2d   : > { %4323 = vmatmul.mubr.bf16.vlgmr.msra.gmra.mrb[28].mxu1 %v1632_v40 }
 0xa2e   : > { %4347 = vmatpush3.bf16.msra.mxu1 %v5648_v46  ;;  %4362 = vmatprep.mubr.msk.bf16.mxu1 %vm5204_vm0, %v5203_v9 }
 0xa2f   : > { %4348 = vmatprep.subr.bf16.mxu1 %v5203_v9 }
 0xa32   : > { %4349 = vmatpush3.bf16.msra.mxu1 %v5651_v47 }
 0xa33   : > { %4350 = vmatprep.subr.bf16.mxu1 %v5203_v9 }
 0xa36   : > { %4351 = vmatpush3.bf16.msra.mxu1 %v5669_v60 }
 0xa37   : > { %4352 = vmatprep.subr.bf16.mxu1 %v5203_v9 }
 0xa3a   : > { %4353 = vmatpush3.bf16.msra.mxu1 %v5674_v61 }
 0xa3b   : > { %4354 = vmatprep.subr.bf16.mxu1 %v5203_v9 }
 0xa3e   : > { %4355 = vmatpush3.bf16.msra.mxu1 %v5678_v62 }
 0xa3f   : > { %4356 = vmatprep.subr.bf16.mxu1 %v5203_v9 }
 0xa42   : > { %4357 = vmatpush3.bf16.msra.mxu1 %v5684_v63 }
 0xa43   : > { %4358 = vmatprep.subr.bf16.mxu1 %v5203_v9 }
 0xa46   : > { %4359 = vmatpush3.bf16.msra.mxu1 %v5693_v0 }
 0xa47   : > { %4360 = vmatprep.subr.bf16.mxu1 %v5203_v9 }
 0xa4a   : > { %4361 = vmatpush3.bf16.msra.mxu1 %v5696_v1 }
 0xb00   : > { %v1667_v42 = vpop.f32.mrb[28].mxu1 }
 0xb01   : > { %v1673_v43 = vadd.f32 %v1667_v42, %v1407_v41  ;;  %v4324_v44 = vpop.f32.mrb[29].mxu1 }
 0xb02   : > { %v1670_v45 = vpop.f32.mrb[30].mxu1 }
 0xb03   : > { %5055 = vtanh.f32 %v1673_v43  ;;  %v4325_v48 = vpop.f32.mrb[31].mxu1 }
 0xb0d   : > { %v5056_v49 = vpop.eup %5055 }
 0xb0e   : > { %v1677_v51 = vpack.c.bf16 %v5056_v49, %v5056_v49 }
 0xb10   : > { %4343 = vmatmul.mubr.bf16.vlgmr.msra.gmra.mrb[28].mxu0 %v1677_v51 }
 0xb11   : > { %4367 = vmatpush3.bf16.msra.mxu0 %v5648_v46  ;;  %4382 = vmatprep.mubr.msk.bf16.mxu0 %vm5204_vm0, %v5203_v9  ;;  %v4983_v46 = vld [vmem:[#allocation5 + $0x40] sm:$0xff]  }
 0xb12   : > { %4368 = vmatprep.subr.bf16.mxu0 %v5203_v9  ;;  %4386 = vmatprep.subr.bf16.mxu1 %v4983_v46 }
 0xb15   : > { %4369 = vmatpush3.bf16.msra.mxu0 %v5651_v47  ;;  %v1410_v47 = vadd.f32 %v5709_v5, %v5742_v16  ;;  %v1415_v16 = vadd.f32 %v5736_v13, %v5709_v5  ;;  %v5889_v13 = vld [vmem:[%s6418_s6 + $0x1] ss:$0 sm:$0xff] }
 0xb16   : > { %4370 = vmatprep.subr.bf16.mxu0 %v5203_v9 }
 0xb19   : > { %4371 = vmatpush3.bf16.msra.mxu0 %v5669_v60  ;;  %v1819_v60 = vpack.c.bf16 %v5746_v23, %v5714_v12  ;;  %v5862_v12 = vld [vmem:[#allocation7 + $0x68] sm:$0xff]  }
 0xb1a   : > { %4372 = vmatprep.subr.bf16.mxu0 %v5203_v9 }
 0xb1d   : > { %4373 = vmatpush3.bf16.msra.mxu0 %v5674_v61  ;;  %v4985_v61 = vld [vmem:[#allocation5 + $0x50] sm:$0xff]  }
 0xb1e   : > { %4374 = vmatprep.subr.bf16.mxu0 %v5203_v9 }
 0xb21   : > { %4375 = vmatpush3.bf16.msra.mxu0 %v5678_v62  ;;  %v4986_v62 = vld [vmem:[#allocation5 + $0x58] sm:$0xff]  }
 0xb22   : > { %4376 = vmatprep.subr.bf16.mxu0 %v5203_v9 }
 0xb25   : > { %4377 = vmatpush3.bf16.msra.mxu0 %v5684_v63  ;;  %v4987_v63 = vld [vmem:[#allocation5 + $0x60] sm:$0xff]  }
 0xb26   : > { %4378 = vmatprep.subr.bf16.mxu0 %v5203_v9 }
 0xb29   : > { %4379 = vmatpush3.bf16.msra.mxu0 %v5693_v0  ;;  %v4988_v0 = vld [vmem:[#allocation5 + $0x68] sm:$0xff]  }
 0xb2a   : > { %4380 = vmatprep.subr.bf16.mxu0 %v5203_v9 }
 0xb2d   : > { %4381 = vmatpush3.bf16.msra.mxu0 %v5696_v1  ;;  %v4989_v1 = vld [vmem:[#allocation5 + $0x70] sm:$0xff]  }
 0xb2e   : > { %4410 = vmatprep.subr.bf16.mxu0 %v5203_v9 }
 0xbe3   : > { %v1712_v52 = vpop.f32.mrb[28].mxu0 }
 0xbe4   : > { %v1718_v53 = vadd.f32 %v1712_v52, %v1410_v47  ;;  %v4344_v54 = vpop.f32.mrb[29].mxu0 }
 0xbe5   : > { %v1715_v55 = vpop.f32.mrb[30].mxu0 }
 0xbe6   : > { %5057 = vtanh.f32 %v1718_v53  ;;  %v4345_v56 = vpop.f32.mrb[31].mxu0 }
 0xbf0   : > { %v5058_v57 = vpop.eup %5057 }
 0xbf1   : > { %v1722_v58 = vpack.c.bf16 %v5058_v57, %v5058_v57  ;;  %v1821_v4 = vpack.c.bf16 %v5058_v57, %v5056_v49 }
 0xbf3   : > { %4363 = vmatmul.mubr.bf16.vlgmr.msra.gmra.mrb[32].mxu1 %v1722_v58 }
 0xbf4   : > { %4387 = vmatpush3.bf16.msra.mxu1 %v4983_v46  ;;  %4402 = vmatprep.mubr.bf16.mxu1 %v1819_v60 }
 0xbf5   : > { %4388 = vmatprep.subr.bf16.mxu1 %v4984_v59 }
 0xbf8   : > { %4389 = vmatpush3.bf16.msra.mxu1 %v4984_v59 }
 0xbf9   : > { %4390 = vmatprep.subr.bf16.mxu1 %v4985_v61 }
 0xbfc   : > { %4391 = vmatpush3.bf16.msra.mxu1 %v4985_v61 }
 0xbfd   : > { %4392 = vmatprep.subr.bf16.mxu1 %v4986_v62 }
 0xc00   : > { %4393 = vmatpush3.bf16.msra.mxu1 %v4986_v62 }
 0xc01   : > { %4394 = vmatprep.subr.bf16.mxu1 %v4987_v63 }
 0xc04   : > { %4395 = vmatpush3.bf16.msra.mxu1 %v4987_v63 }
 0xc05   : > { %4396 = vmatprep.subr.bf16.mxu1 %v4988_v0 }
 0xc08   : > { %4397 = vmatpush3.bf16.msra.mxu1 %v4988_v0 }
 0xc09   : > { %4398 = vmatprep.subr.bf16.mxu1 %v4989_v1 }
 0xc0c   : > { %4399 = vmatpush3.bf16.msra.mxu1 %v4989_v1 }
 0xc0d   : > { %4400 = vmatprep.subr.bf16.mxu1 %v4990_v2 }
 0xc10   : > { %4401 = vmatpush3.bf16.msra.mxu1 %v4990_v2 }
 0xc11   : > { %4430 = vmatprep.subr.bf16.mxu1 %v5203_v9 }
 0xc13   : > { %4403 = vmatmul.mubr.bf16.vlgmr.msra.gmra.mrb[36].mxu1 %v1820_v3 }
 0xc14   : > { %4406 = vmatprep.mubr.bf16.mxu1 %v1821_v4  ;;  %4431 = vmatpush3.bf16.msra.mxu1 %v5842_v6 }
 0xc15   : > { %4432 = vmatprep.subr.bf16.mxu1 %v5203_v9 }
 0xc18   : > { %4433 = vmatpush3.bf16.msra.mxu1 %v5846_v7 }
 0xc19   : > { %4434 = vmatprep.subr.bf16.mxu1 %v5203_v9 }
 0xc1c   : > { %4435 = vmatpush3.bf16.msra.mxu1 %v5850_v8 }
 0xc1d   : > { %4436 = vmatprep.subr.bf16.mxu1 %v5203_v9 }
 0xc20   : > { %4437 = vmatpush3.bf16.msra.mxu1 %v5854_v10 }
 0xc21   : > { %4438 = vmatprep.subr.bf16.mxu1 %v5203_v9 }
 0xc24   : > { %4439 = vmatpush3.bf16.msra.mxu1 %v5858_v11 }
 0xc25   : > { %4440 = vmatprep.subr.bf16.mxu1 %v5203_v9 }
 0xc28   : > { %4441 = vmatpush3.bf16.msra.mxu1 %v5862_v12 }
 0xc29   : > { %4442 = vmatprep.subr.bf16.mxu1 %v5203_v9 }
 0xc2c   : > { %4443 = vmatpush3.bf16.msra.mxu1 %v5866_v50 }
 0xc2d   : > { %4444 = vmatprep.subr.bf16.mxu1 %v5203_v9 }
 0xc30   : > { %4445 = vmatpush3.bf16.msra.mxu1 %v5870_v14 }
 0xc31   : > { %4470 = vmatprep.subr.bf16.mxu1 %v5203_v9 }
 0xcc6   : > { %v1757_v17 = vpop.f32.mrb[32].mxu1 }
 0xcc7   : > { %v1763_v18 = vadd.f32 %v1757_v17, %v1415_v16  ;;  %v4364_v19 = vpop.f32.mrb[33].mxu1 }
 0xcc8   : > { %v1760_v20 = vpop.f32.mrb[34].mxu1 }
 0xcc9   : > { %5059 = vtanh.f32 %v1763_v18  ;;  %v4365_v21 = vpop.f32.mrb[35].mxu1 }
 0xcd3   : > { %v5060_v22 = vpop.eup %5059 }
 0xcd4   : > { %v1767_v23 = vpack.c.bf16 %v5060_v22, %v5060_v22 }
 0xcd6   : > { %4383 = vmatmul.mubr.bf16.vlgmr.msra.gmra.mrb[32].mxu0 %v1767_v23 }
 0xcd7   : > { %4411 = vmatpush3.bf16.msra.mxu0 %v5842_v6  ;;  %4426 = vmatprep.mubr.msk.bf16.mxu0 %vm5204_vm0, %v5203_v9 }
 0xcd8   : > { %4412 = vmatprep.subr.bf16.mxu0 %v5203_v9 }
 0xcdb   : > { %4413 = vmatpush3.bf16.msra.mxu0 %v5846_v7 }
 0xcdc   : > { %4414 = vmatprep.subr.bf16.mxu0 %v5203_v9 }
 0xcdf   : > { %4415 = vmatpush3.bf16.msra.mxu0 %v5850_v8 }
 0xce0   : > { %4416 = vmatprep.subr.bf16.mxu0 %v5203_v9 }
 0xce3   : > { %4417 = vmatpush3.bf16.msra.mxu0 %v5854_v10 }
 0xce4   : > { %4418 = vmatprep.subr.bf16.mxu0 %v5203_v9 }
 0xce6   : > { %v5891_v24 = vpop.f32.mrb[36].mxu1 }
 0xce7   : > { %v1930_v25 = vpop.f32.mrb[37].mxu1  ;;  %4419 = vmatpush3.bf16.msra.mxu0 %v5858_v11  ;;  %v1939_v46 = vadd.f32 %v5891_v24, %v5889_v13 }
 0xce8   : > { %v1931_v26 = vadd.f32 %v5889_v13, %v1930_v25  ;;  %v5895_v27 = vpop.f32.mrb[38].mxu1  ;;  %4420 = vmatprep.subr.bf16.mxu0 %v5203_v9  ;;  %v5002_v25 = vld [vmem:[#allocation5 + $0x98] sm:$0xff]  }
 0xce9   : > { %v1933_v28 = vpop.f32.mrb[39].mxu1  ;;  %v1942_v58 = vadd.f32 %v5895_v27, %v5889_v13  ;;  %v5004_v27 = vld [vmem:[#allocation5 + $0xa8] sm:$0xff]  }
 0xcea   : > { %5061 = vtanh.f32 %v1931_v26  ;;  %v1934_v39 = vadd.f32 %v5889_v13, %v1933_v28  ;;  %v5003_v26 = vld [vmem:[#allocation5 + $0xa0] sm:$0xff]   ;;  %v5005_v28 = vld [vmem:[#allocation5 + $0xb0] sm:$0xff]  }
 0xceb   : > { %4421 = vmatpush3.bf16.msra.mxu0 %v5862_v12 }
 0xcec   : > { %4422 = vmatprep.subr.bf16.mxu0 %v5203_v9 }
 0xcef   : > { %4423 = vmatpush3.bf16.msra.mxu0 %v5866_v50 }
 0xcf0   : > { %4424 = vmatprep.subr.bf16.mxu0 %v5203_v9 }
 0xcf3   : > { %4425 = vmatpush3.bf16.msra.mxu0 %v5870_v14 }
 0xcf4   : > { %v5903_v29 = vpop.eup %5061  ;;  %4450 = vmatprep.subr.bf16.mxu0 %v5203_v9 }
 0xcf5   : > { %v1990_v30 = vpack.c.bf16 %v5903_v29, %v5903_v29 }
 0xcf7   : > { %4427 = vmatmul.mubr.bf16.vlgmr.msra.gmra.mrb[36].mxu0 %v1990_v30 }
 0xcf8   : > { %4451 = vmatpush3.bf16.msra.mxu0 %v5842_v6  ;;  %4466 = vmatprep.mubr.msk.bf16.mxu0 %vm5204_vm0, %v5203_v9 }
 0xcf9   : > { %4452 = vmatprep.subr.bf16.mxu0 %v5203_v9 }
 0xcfc   : > { %4453 = vmatpush3.bf16.msra.mxu0 %v5846_v7 }
 0xcfd   : > { %4454 = vmatprep.subr.bf16.mxu0 %v5203_v9 }
 0xd00   : > { %4455 = vmatpush3.bf16.msra.mxu0 %v5850_v8 }
 0xd01   : > { %4456 = vmatprep.subr.bf16.mxu0 %v5203_v9 }
 0xd04   : > { %4457 = vmatpush3.bf16.msra.mxu0 %v5854_v10 }
 0xd05   : > { %4458 = vmatprep.subr.bf16.mxu0 %v5203_v9 }
 0xd08   : > { %4459 = vmatpush3.bf16.msra.mxu0 %v5858_v11 }
 0xd09   : > { %4460 = vmatprep.subr.bf16.mxu0 %v5203_v9 }
 0xd0c   : > { %4461 = vmatpush3.bf16.msra.mxu0 %v5862_v12 }
 0xd0d   : > { %4462 = vmatprep.subr.bf16.mxu0 %v5203_v9 }
 0xd10   : > { %4463 = vmatpush3.bf16.msra.mxu0 %v5866_v50 }
 0xd11   : > { %4464 = vmatprep.subr.bf16.mxu0 %v5203_v9 }
 0xd14   : > { %4465 = vmatpush3.bf16.msra.mxu0 %v5870_v14 }
 0xd15   : > { %4490 = vmatprep.subr.bf16.mxu0 %v5203_v9 }
 0xda9   : > { %v1802_v32 = vpop.f32.mrb[32].mxu0 }
 0xdaa   : > { %v1808_v33 = vadd.f32 %v1802_v32, %v1418_v31  ;;  %v4384_v34 = vpop.f32.mrb[33].mxu0  ;;  %v6032_v32 = vld [vmem:[#allocation7 + $0x80] sm:$0xff]  }
 0xdab   : > { %v1805_v35 = vpop.f32.mrb[34].mxu0  ;;  %v6040_v34 = vld [vmem:[#allocation7 + $0x90] sm:$0xff]  }
 0xdac   : > { %5063 = vtanh.f32 %v1808_v33  ;;  %v4385_v36 = vpop.f32.mrb[35].mxu0  ;;  %v6036_v33 = vld [vmem:[#allocation7 + $0x88] sm:$0xff]   ;;  %v6044_v35 = vld [vmem:[#allocation7 + $0x98] sm:$0xff]  }
 0xdad   : > { %v6048_v36 = vld [vmem:[#allocation7 + $0xa0] sm:$0xff]  }
 0xdb6   : > { %v5064_v37 = vpop.eup %5063 }
 0xdb7   : > { %v1822_v38 = vpack.c.bf16 %v5064_v37, %v5060_v22  ;;  %v6052_v37 = vld [vmem:[#allocation7 + $0xa8] sm:$0xff]  }
 0xdb9   : > { %4407 = vmatmul.mubr.bf16.gmra.mrb[40].mxu1 %v1822_v38  ;;  %v6056_v38 = vld [vmem:[#allocation7 + $0xb0] sm:$0xff]  }
 0xdba   : > { %4446 = vmatprep.mubr.msk.bf16.mxu1 %vm5204_vm0, %v5203_v9 }
 0xdca   : > { %v2073_v40 = vpop.f32.mrb[36].mxu0 }
 0xdcb   : > { %v2079_v41 = vadd.f32 %v2073_v40, %v1934_v39  ;;  %v4428_v42 = vpop.f32.mrb[37].mxu0  ;;  %v6060_v39 = vld [vmem:[#allocation7 + $0xb8] sm:$0xff]  }
 0xdcc   : > { %v2076_v43 = vpop.f32.mrb[38].mxu0 }
 0xdcd   : > { %5065 = vtanh.f32 %v2079_v41  ;;  %v4429_v5 = vpop.f32.mrb[39].mxu0 }
 0xdd7   : > { %v5931_v15 = vpop.eup %5065 }
 0xdd8   : > { %v2083_v44 = vpack.c.bf16 %v5931_v15, %v5931_v15  ;;  %v2360_v24 = vpack.c.bf16 %v5931_v15, %v5903_v29  ;;  %v5006_v29 = vld [vmem:[#allocation5 + $0xb8] sm:$0xff]  }
 0xdda   : > { %4447 = vmatmul.mubr.bf16.vlgmr.msra.gmra.mrb[44].mxu1 %v2083_v44 }
 0xddb   : > { %4471 = vmatpush3.bf16.msra.mxu1 %v5842_v6  ;;  %4486 = vmatprep.mubr.msk.bf16.mxu1 %vm5204_vm0, %v5203_v9 }
 0xddc   : > { %4472 = vmatprep.subr.bf16.mxu1 %v5203_v9 }
 0xddf   : > { %4473 = vmatpush3.bf16.msra.mxu1 %v5846_v7 }
 0xde0   : > { %4474 = vmatprep.subr.bf16.mxu1 %v5203_v9 }
 0xde3   : > { %4475 = vmatpush3.bf16.msra.mxu1 %v5850_v8 }
 0xde4   : > { %4476 = vmatprep.subr.bf16.mxu1 %v5203_v9 }
 0xde7   : > { %4477 = vmatpush3.bf16.msra.mxu1 %v5854_v10 }
 0xde8   : > { %4478 = vmatprep.subr.bf16.mxu1 %v5203_v9 }
 0xdeb   : > { %4479 = vmatpush3.bf16.msra.mxu1 %v5858_v11 }
 0xdec   : > { %4480 = vmatprep.subr.bf16.mxu1 %v5203_v9 }
 0xdef   : > { %4481 = vmatpush3.bf16.msra.mxu1 %v5862_v12 }
 0xdf0   : > { %4482 = vmatprep.subr.bf16.mxu1 %v5203_v9 }
 0xdf3   : > { %4483 = vmatpush3.bf16.msra.mxu1 %v5866_v50 }
 0xdf4   : > { %4484 = vmatprep.subr.bf16.mxu1 %v5203_v9 }
 0xdf7   : > { %4485 = vmatpush3.bf16.msra.mxu1 %v5870_v14 }
 0xdf8   : > { %4510 = vmatprep.subr.bf16.mxu1 %v5203_v9 }
 0xe8c   : > { %v5953_v45 = vpop.f32.mrb[40].mxu1 }
 0xe8d   : > { %v1946_v48 = vpop.f32.mrb[41].mxu1  ;;  %v1955_v40 = vadd.f32 %v5953_v45, %v5889_v13  ;;  %v6079_v45 = vld [vmem:[%s6418_s6 + $0x2] ss:$0 sm:$0xff] }
 0xe8e   : > { %v5955_v49 = vpop.f32.mrb[42].mxu1  ;;  %v1947_v2 = vadd.f32 %v5889_v13, %v1946_v48 }
 0xe8f   : > { %v5957_v51 = vpop.f32.mrb[43].mxu1 }
 0xead   : > { %v2118_v47 = vpop.f32.mrb[44].mxu1 }
 0xeae   : > { %v2124_v52 = vadd.f32 %v2118_v47, %v1939_v46  ;;  %v4448_v53 = vpop.f32.mrb[45].mxu1 }
 0xeaf   : > { %v2121_v54 = vpop.f32.mrb[46].mxu1 }
 0xeb0   : > { %5067 = vtanh.f32 %v2124_v52  ;;  %v4449_v55 = vpop.f32.mrb[47].mxu1 }
 0xeba   : > { %v5961_v56 = vpop.eup %5067 }
 0xebb   : > { %v2128_v57 = vpack.c.bf16 %v5961_v56, %v5961_v56 }
 0xebd   : > { %4467 = vmatmul.mubr.bf16.vlgmr.msra.gmra.mrb[40].mxu0 %v2128_v57 }
 0xebe   : > { %4491 = vmatpush3.bf16.msra.mxu0 %v5842_v6  ;;  %4506 = vmatprep.mubr.msk.bf16.mxu0 %vm5204_vm0, %v5203_v9 }
 0xebf   : > { %4492 = vmatprep.subr.bf16.mxu0 %v5203_v9 }
 0xec2   : > { %4493 = vmatpush3.bf16.msra.mxu0 %v5846_v7 }
 0xec3   : > { %4494 = vmatprep.subr.bf16.mxu0 %v5203_v9 }
 0xec6   : > { %4495 = vmatpush3.bf16.msra.mxu0 %v5850_v8 }
 0xec7   : > { %4496 = vmatprep.subr.bf16.mxu0 %v5203_v9 }
 0xeca   : > { %4497 = vmatpush3.bf16.msra.mxu0 %v5854_v10 }
 0xecb   : > { %4498 = vmatprep.subr.bf16.mxu0 %v5203_v9 }
 0xece   : > { %4499 = vmatpush3.bf16.msra.mxu0 %v5858_v11 }
 0xecf   : > { %4500 = vmatprep.subr.bf16.mxu0 %v5203_v9 }
 0xed2   : > { %4501 = vmatpush3.bf16.msra.mxu0 %v5862_v12 }
 0xed3   : > { %4502 = vmatprep.subr.bf16.mxu0 %v5203_v9 }
 0xed6   : > { %4503 = vmatpush3.bf16.msra.mxu0 %v5866_v50 }
 0xed7   : > { %4504 = vmatprep.subr.bf16.mxu0 %v5203_v9 }
 0xeda   : > { %4505 = vmatpush3.bf16.msra.mxu0 %v5870_v14 }
 0xedb   : > { %4530 = vmatprep.subr.bf16.mxu0 %v5203_v9 }
 0xf90   : > { %v2163_v59 = vpop.f32.mrb[40].mxu0 }
 0xf91   : > { %v2169_v60 = vadd.f32 %v2163_v59, %v1942_v58  ;;  %v4468_v61 = vpop.f32.mrb[41].mxu0 }
 0xf92   : > { %v2166_v62 = vpop.f32.mrb[42].mxu0 }
 0xf93   : > { %5069 = vtanh.f32 %v2169_v60  ;;  %v4469_v63 = vpop.f32.mrb[43].mxu0 }
 0xf9d   : > { %v5985_v0 = vpop.eup %5069 }
 0xf9e   : > { %v2173_v1 = vpack.c.bf16 %v5985_v0, %v5985_v0  ;;  %v2361_v30 = vpack.c.bf16 %v5985_v0, %v5961_v56  ;;  %v1958_v56 = vadd.f32 %v5955_v49, %v5889_v13 }
 0xfa0   : > { %4487 = vmatmul.mubr.bf16.vlgmr.msra.gmra.mrb[48].mxu1 %v2173_v1 }
 0xfa1   : > { %4511 = vmatpush3.bf16.msra.mxu1 %v5842_v6  ;;  %4526 = vmatprep.mubr.msk.bf16.mxu1 %vm5204_vm0, %v5203_v9 }
 0xfa2   : > { %4512 = vmatprep.subr.bf16.mxu1 %v5203_v9 }
 0xfa5   : > { %4513 = vmatpush3.bf16.msra.mxu1 %v5846_v7 }
 0xfa6   : > { %4514 = vmatprep.subr.bf16.mxu1 %v5203_v9 }
 0xfa9   : > { %4515 = vmatpush3.bf16.msra.mxu1 %v5850_v8 }
 0xfaa   : > { %4516 = vmatprep.subr.bf16.mxu1 %v5203_v9 }
 0xfad   : > { %4517 = vmatpush3.bf16.msra.mxu1 %v5854_v10 }
 0xfae   : > { %4518 = vmatprep.subr.bf16.mxu1 %v5203_v9 }
 0xfb1   : > { %4519 = vmatpush3.bf16.msra.mxu1 %v5858_v11 }
 0xfb2   : > { %4520 = vmatprep.subr.bf16.mxu1 %v5203_v9 }
 0xfb5   : > { %4521 = vmatpush3.bf16.msra.mxu1 %v5862_v12 }
 0xfb6   : > { %4522 = vmatprep.subr.bf16.mxu1 %v5203_v9 }
 0xfb9   : > { %4523 = vmatpush3.bf16.msra.mxu1 %v5866_v50 }
 0xfba   : > { %4524 = vmatprep.subr.bf16.mxu1 %v5203_v9 }
 0xfbd   : > { %4525 = vmatpush3.bf16.msra.mxu1 %v5870_v14 }
0x1073   : > { %v2208_v3 = vpop.f32.mrb[48].mxu1 }
0x1074   : > { %v2214_v4 = vadd.f32 %v2208_v3, %v1947_v2  ;;  %v4488_v16 = vpop.f32.mrb[49].mxu1 }
0x1075   : > { %v2211_v17 = vpop.f32.mrb[50].mxu1 }
0x1076   : > { %5071 = vtanh.f32 %v2214_v4  ;;  %v4489_v18 = vpop.f32.mrb[51].mxu1 }
0x1080   : > { %v5072_v19 = vpop.eup %5071 }
0x1081   : > { %v2218_v20 = vpack.c.bf16 %v5072_v19, %v5072_v19 }
0x1083   : > { %4507 = vmatmul.mubr.bf16.vlgmr.msra.gmra.mrb[44].mxu0 %v2218_v20 }
0x1084   : > { %4531 = vmatpush3.bf16.msra.mxu0 %v5842_v6  ;;  %4546 = vmatprep.mubr.msk.bf16.mxu0 %vm5204_vm0, %v5203_v9  ;;  %v4999_v6 = vld [vmem:[#allocation5 + $0x80] sm:$0xff]  }
0x1085   : > { %4532 = vmatprep.subr.bf16.mxu0 %v5203_v9  ;;  %4550 = vmatprep.subr.bf16.mxu1 %v4999_v6 }
0x1088   : > { %4533 = vmatpush3.bf16.msra.mxu0 %v5846_v7  ;;  %v1950_v7 = vadd.f32 %v5889_v13, %v5957_v51 }
0x1089   : > { %4534 = vmatprep.subr.bf16.mxu0 %v5203_v9 }
0x108c   : > { %4535 = vmatpush3.bf16.msra.mxu0 %v5850_v8 }
0x108d   : > { %4536 = vmatprep.subr.bf16.mxu0 %v5203_v9 }
0x1090   : > { %4537 = vmatpush3.bf16.msra.mxu0 %v5854_v10 }
0x1091   : > { %4538 = vmatprep.subr.bf16.mxu0 %v5203_v9 }
0x1094   : > { %4539 = vmatpush3.bf16.msra.mxu0 %v5858_v11 }
0x1095   : > { %4540 = vmatprep.subr.bf16.mxu0 %v5203_v9 }
0x1098   : > { %4541 = vmatpush3.bf16.msra.mxu0 %v5862_v12 }
0x1099   : > { %4542 = vmatprep.subr.bf16.mxu0 %v5203_v9 }
0x109c   : > { %4543 = vmatpush3.bf16.msra.mxu0 %v5866_v50  ;;  %v5000_v50 = vld [vmem:[#allocation5 + $0x88] sm:$0xff]  }
0x109d   : > { %4544 = vmatprep.subr.bf16.mxu0 %v5203_v9 }
0x10a0   : > { %4545 = vmatpush3.bf16.msra.mxu0 %v5870_v14  ;;  %v5001_v14 = vld [vmem:[#allocation5 + $0x90] sm:$0xff]  }
0x10a1   : > { %4574 = vmatprep.subr.bf16.mxu0 %v5203_v9 }
0x1156   : > { %v2253_v8 = vpop.f32.mrb[44].mxu0 }
0x1157   : > { %v2259_v10 = vadd.f32 %v2253_v8, %v1950_v7  ;;  %v4508_v11 = vpop.f32.mrb[45].mxu0 }
0x1158   : > { %v2256_v21 = vpop.f32.mrb[46].mxu0 }
0x1159   : > { %5073 = vtanh.f32 %v2259_v10  ;;  %v4509_v12 = vpop.f32.mrb[47].mxu0 }
0x1163   : > { %v5074_v22 = vpop.eup %5073 }
0x1164   : > { %v2263_v23 = vpack.c.bf16 %v5074_v22, %v5074_v22  ;;  %v2362_v31 = vpack.c.bf16 %v5074_v22, %v5072_v19 }
0x1166   : > { %4527 = vmatmul.mubr.bf16.vlgmr.msra.gmra.mrb[52].mxu1 %v2263_v23 }
0x1167   : > { %4551 = vmatpush3.bf16.msra.mxu1 %v4999_v6  ;;  %4566 = vmatprep.mubr.bf16.mxu1 %v2360_v24 }
0x1168   : > { %4552 = vmatprep.subr.bf16.mxu1 %v5000_v50 }
0x116b   : > { %4553 = vmatpush3.bf16.msra.mxu1 %v5000_v50 }
0x116c   : > { %4554 = vmatprep.subr.bf16.mxu1 %v5001_v14 }
0x116f   : > { %4555 = vmatpush3.bf16.msra.mxu1 %v5001_v14 }
0x1170   : > { %4556 = vmatprep.subr.bf16.mxu1 %v5002_v25 }
0x1173   : > { %4557 = vmatpush3.bf16.msra.mxu1 %v5002_v25 }
0x1174   : > { %4558 = vmatprep.subr.bf16.mxu1 %v5003_v26 }
0x1177   : > { %4559 = vmatpush3.bf16.msra.mxu1 %v5003_v26 }
0x1178   : > { %4560 = vmatprep.subr.bf16.mxu1 %v5004_v27 }
0x117b   : > { %4561 = vmatpush3.bf16.msra.mxu1 %v5004_v27 }
0x117c   : > { %4562 = vmatprep.subr.bf16.mxu1 %v5005_v28 }
0x117f   : > { %4563 = vmatpush3.bf16.msra.mxu1 %v5005_v28 }
0x1180   : > { %4564 = vmatprep.subr.bf16.mxu1 %v5006_v29 }
0x1183   : > { %4565 = vmatpush3.bf16.msra.mxu1 %v5006_v29 }
0x1184   : > { %4594 = vmatprep.subr.bf16.mxu1 %v5203_v9 }
0x1186   : > { %4567 = vmatmul.mubr.bf16.vlgmr.msra.gmra.mrb[56].mxu1 %v2361_v30 }
0x1187   : > { %4570 = vmatprep.mubr.bf16.mxu1 %v2362_v31  ;;  %4595 = vmatpush3.bf16.msra.mxu1 %v6032_v32 }
0x1188   : > { %4596 = vmatprep.subr.bf16.mxu1 %v5203_v9 }
0x118b   : > { %4597 = vmatpush3.bf16.msra.mxu1 %v6036_v33 }
0x118c   : > { %4598 = vmatprep.subr.bf16.mxu1 %v5203_v9 }
0x118f   : > { %4599 = vmatpush3.bf16.msra.mxu1 %v6040_v34 }
0x1190   : > { %4600 = vmatprep.subr.bf16.mxu1 %v5203_v9 }
0x1193   : > { %4601 = vmatpush3.bf16.msra.mxu1 %v6044_v35 }
0x1194   : > { %4602 = vmatprep.subr.bf16.mxu1 %v5203_v9 }
0x1197   : > { %4603 = vmatpush3.bf16.msra.mxu1 %v6048_v36 }
0x1198   : > { %4604 = vmatprep.subr.bf16.mxu1 %v5203_v9 }
0x119b   : > { %4605 = vmatpush3.bf16.msra.mxu1 %v6052_v37 }
0x119c   : > { %4606 = vmatprep.subr.bf16.mxu1 %v5203_v9 }
0x119f   : > { %4607 = vmatpush3.bf16.msra.mxu1 %v6056_v38 }
0x11a0   : > { %4608 = vmatprep.subr.bf16.mxu1 %v5203_v9 }
0x11a3   : > { %4609 = vmatpush3.bf16.msra.mxu1 %v6060_v39 }
0x11a4   : > { %4634 = vmatprep.subr.bf16.mxu1 %v5203_v9 }
0x1239   : > { %v2298_v41 = vpop.f32.mrb[52].mxu1 }
0x123a   : > { %v2304_v42 = vadd.f32 %v2298_v41, %v1955_v40  ;;  %v4528_v43 = vpop.f32.mrb[53].mxu1 }
0x123b   : > { %v2301_v5 = vpop.f32.mrb[54].mxu1 }
0x123c   : > { %5075 = vtanh.f32 %v2304_v42  ;;  %v4529_v15 = vpop.f32.mrb[55].mxu1 }
0x1246   : > { %v5076_v44 = vpop.eup %5075 }
0x1247   : > { %v2308_v48 = vpack.c.bf16 %v5076_v44, %v5076_v44 }
0x1249   : > { %4547 = vmatmul.mubr.bf16.vlgmr.msra.gmra.mrb[48].mxu0 %v2308_v48 }
0x124a   : > { %4575 = vmatpush3.bf16.msra.mxu0 %v6032_v32  ;;  %4590 = vmatprep.mubr.msk.bf16.mxu0 %vm5204_vm0, %v5203_v9 }
0x124b   : > { %4576 = vmatprep.subr.bf16.mxu0 %v5203_v9 }
0x124e   : > { %4577 = vmatpush3.bf16.msra.mxu0 %v6036_v33 }
0x124f   : > { %4578 = vmatprep.subr.bf16.mxu0 %v5203_v9 }
0x1252   : > { %4579 = vmatpush3.bf16.msra.mxu0 %v6040_v34 }
0x1253   : > { %4580 = vmatprep.subr.bf16.mxu0 %v5203_v9 }
0x1256   : > { %4581 = vmatpush3.bf16.msra.mxu0 %v6044_v35 }
0x1257   : > { %4582 = vmatprep.subr.bf16.mxu0 %v5203_v9 }
0x1259   : > { %v6081_v51 = vpop.f32.mrb[56].mxu1 }
0x125a   : > { %v2471_v46 = vpop.f32.mrb[57].mxu1  ;;  %4583 = vmatpush3.bf16.msra.mxu0 %v6048_v36  ;;  %v2480_v6 = vadd.f32 %v6081_v51, %v6079_v45 }
0x125b   : > { %v2472_v47 = vadd.f32 %v6079_v45, %v2471_v46  ;;  %v6085_v52 = vpop.f32.mrb[58].mxu1  ;;  %4584 = vmatprep.subr.bf16.mxu0 %v5203_v9  ;;  %v5018_v46 = vld [vmem:[#allocation5 + $0xd8] sm:$0xff]  }
0x125c   : > { %v2474_v53 = vpop.f32.mrb[59].mxu1  ;;  %v2483_v23 = vadd.f32 %v6085_v52, %v6079_v45  ;;  %v5020_v52 = vld [vmem:[#allocation5 + $0xe8] sm:$0xff]  }
0x125d   : > { %5077 = vtanh.f32 %v2472_v47  ;;  %v2475_v0 = vadd.f32 %v6079_v45, %v2474_v53  ;;  %v5019_v47 = vld [vmem:[#allocation5 + $0xe0] sm:$0xff]   ;;  %v5021_v53 = vld [vmem:[#allocation5 + $0xf0] sm:$0xff]  }
0x125e   : > { %4585 = vmatpush3.bf16.msra.mxu0 %v6052_v37 }
0x125f   : > { %4586 = vmatprep.subr.bf16.mxu0 %v5203_v9 }
0x1262   : > { %4587 = vmatpush3.bf16.msra.mxu0 %v6056_v38 }
0x1263   : > { %4588 = vmatprep.subr.bf16.mxu0 %v5203_v9 }
0x1266   : > { %4589 = vmatpush3.bf16.msra.mxu0 %v6060_v39 }
0x1267   : > { %v6093_v54 = vpop.eup %5077  ;;  %4614 = vmatprep.subr.bf16.mxu0 %v5203_v9 }
0x1268   : > { %v2531_v55 = vpack.c.bf16 %v6093_v54, %v6093_v54 }
0x126a   : > { %4591 = vmatmul.mubr.bf16.vlgmr.msra.gmra.mrb[52].mxu0 %v2531_v55 }
0x126b   : > { %4615 = vmatpush3.bf16.msra.mxu0 %v6032_v32  ;;  %4630 = vmatprep.mubr.msk.bf16.mxu0 %vm5204_vm0, %v5203_v9 }
0x126c   : > { %4616 = vmatprep.subr.bf16.mxu0 %v5203_v9 }
0x126f   : > { %4617 = vmatpush3.bf16.msra.mxu0 %v6036_v33 }
0x1270   : > { %4618 = vmatprep.subr.bf16.mxu0 %v5203_v9 }
0x1273   : > { %4619 = vmatpush3.bf16.msra.mxu0 %v6040_v34 }
0x1274   : > { %4620 = vmatprep.subr.bf16.mxu0 %v5203_v9 }
0x1277   : > { %4621 = vmatpush3.bf16.msra.mxu0 %v6044_v35 }
0x1278   : > { %4622 = vmatprep.subr.bf16.mxu0 %v5203_v9 }
0x127b   : > { %4623 = vmatpush3.bf16.msra.mxu0 %v6048_v36 }
0x127c   : > { %4624 = vmatprep.subr.bf16.mxu0 %v5203_v9 }
0x127f   : > { %4625 = vmatpush3.bf16.msra.mxu0 %v6052_v37 }
0x1280   : > { %4626 = vmatprep.subr.bf16.mxu0 %v5203_v9 }
0x1283   : > { %4627 = vmatpush3.bf16.msra.mxu0 %v6056_v38 }
0x1284   : > { %4628 = vmatprep.subr.bf16.mxu0 %v5203_v9 }
0x1287   : > { %4629 = vmatpush3.bf16.msra.mxu0 %v6060_v39 }
0x1288   : > { %4654 = vmatprep.subr.bf16.mxu0 %v5203_v9 }
0x131c   : > { %v2343_v57 = vpop.f32.mrb[48].mxu0 }
0x131d   : > { %v2349_v58 = vadd.f32 %v2343_v57, %v1958_v56  ;;  %v4548_v59 = vpop.f32.mrb[49].mxu0  ;;  %v6222_v57 = vld [vmem:[#allocation7 + $0xc0] sm:$0xff]  }
0x131e   : > { %v2346_v60 = vpop.f32.mrb[50].mxu0  ;;  %v6230_v59 = vld [vmem:[#allocation7 + $0xd0] sm:$0xff]  }
0x131f   : > { %5079 = vtanh.f32 %v2349_v58  ;;  %v4549_v61 = vpop.f32.mrb[51].mxu0  ;;  %v6226_v58 = vld [vmem:[#allocation7 + $0xc8] sm:$0xff]   ;;  %v6234_v60 = vld [vmem:[#allocation7 + $0xd8] sm:$0xff]  }
0x1320   : > { %v6238_v61 = vld [vmem:[#allocation7 + $0xe0] sm:$0xff]  }
0x1329   : > { %v5080_v62 = vpop.eup %5079 }
0x132a   : > { %v2363_v63 = vpack.c.bf16 %v5080_v62, %v5076_v44  ;;  %v6242_v62 = vld [vmem:[#allocation7 + $0xe8] sm:$0xff]  }
0x132c   : > { %4571 = vmatmul.mubr.bf16.gmra.mrb[60].mxu1 %v2363_v63  ;;  %v6246_v63 = vld [vmem:[#allocation7 + $0xf0] sm:$0xff]  }
0x132d   : > { %4610 = vmatprep.mubr.msk.bf16.mxu1 %vm5204_vm0, %v5203_v9 }
0x133d   : > { %v2614_v1 = vpop.f32.mrb[52].mxu0 }
0x133e   : > { %v2620_v2 = vadd.f32 %v2614_v1, %v2475_v0  ;;  %v4592_v3 = vpop.f32.mrb[53].mxu0  ;;  %v6250_v0 = vld [vmem:[#allocation7 + $0xf8] sm:$0xff]  }
0x133f   : > { %v2617_v4 = vpop.f32.mrb[54].mxu0 }
0x1340   : > { %5081 = vtanh.f32 %v2620_v2  ;;  %v4593_v13 = vpop.f32.mrb[55].mxu0 }
0x134a   : > { %v6121_v49 = vpop.eup %5081 }
0x134b   : > { %v2624_v16 = vpack.c.bf16 %v6121_v49, %v6121_v49  ;;  %v2901_v51 = vpack.c.bf16 %v6121_v49, %v6093_v54  ;;  %v5022_v54 = vld [vmem:[#allocation5 + $0xf8] sm:$0xff]  }
0x134d   : > { %4611 = vmatmul.mubr.bf16.vlgmr.msra.gmra.mrb[64].mxu1 %v2624_v16 }
0x134e   : > { %4635 = vmatpush3.bf16.msra.mxu1 %v6032_v32  ;;  %4650 = vmatprep.mubr.msk.bf16.mxu1 %vm5204_vm0, %v5203_v9 }
0x134f   : > { %4636 = vmatprep.subr.bf16.mxu1 %v5203_v9 }
0x1352   : > { %4637 = vmatpush3.bf16.msra.mxu1 %v6036_v33 }
0x1353   : > { %4638 = vmatprep.subr.bf16.mxu1 %v5203_v9 }
0x1356   : > { %4639 = vmatpush3.bf16.msra.mxu1 %v6040_v34 }
0x1357   : > { %4640 = vmatprep.subr.bf16.mxu1 %v5203_v9 }
0x135a   : > { %4641 = vmatpush3.bf16.msra.mxu1 %v6044_v35 }
0x135b   : > { %4642 = vmatprep.subr.bf16.mxu1 %v5203_v9 }
0x135e   : > { %4643 = vmatpush3.bf16.msra.mxu1 %v6048_v36 }
0x135f   : > { %4644 = vmatprep.subr.bf16.mxu1 %v5203_v9 }
0x1362   : > { %4645 = vmatpush3.bf16.msra.mxu1 %v6052_v37 }
0x1363   : > { %4646 = vmatprep.subr.bf16.mxu1 %v5203_v9 }
0x1366   : > { %4647 = vmatpush3.bf16.msra.mxu1 %v6056_v38 }
0x1367   : > { %4648 = vmatprep.subr.bf16.mxu1 %v5203_v9 }
0x136a   : > { %4649 = vmatpush3.bf16.msra.mxu1 %v6060_v39 }
0x136b   : > { %4674 = vmatprep.subr.bf16.mxu1 %v5203_v9 }
0x13ff   : > { %v6143_v17 = vpop.f32.mrb[60].mxu1 }
0x1400   : > { %v2487_v18 = vpop.f32.mrb[61].mxu1  ;;  %v2496_v1 = vadd.f32 %v6143_v17, %v6079_v45  ;;  %v6269_v17 = vld [vmem:[%s6418_s6 + $0x3] ss:$0 sm:$0xff] }
0x1401   : > { %v6145_v19 = vpop.f32.mrb[62].mxu1  ;;  %v2488_v29 = vadd.f32 %v6079_v45, %v2487_v18 }
0x1402   : > { %v6147_v20 = vpop.f32.mrb[63].mxu1 }
0x1420   : > { %v2659_v7 = vpop.f32.mrb[64].mxu1 }
0x1421   : > { %v2665_v8 = vadd.f32 %v2659_v7, %v2480_v6  ;;  %v4612_v10 = vpop.f32.mrb[65].mxu1 }
0x1422   : > { %v2662_v11 = vpop.f32.mrb[66].mxu1 }
0x1423   : > { %5083 = vtanh.f32 %v2665_v8  ;;  %v4613_v21 = vpop.f32.mrb[67].mxu1 }
0x142d   : > { %v6151_v12 = vpop.eup %5083 }
0x142e   : > { %v2669_v22 = vpack.c.bf16 %v6151_v12, %v6151_v12 }
0x1430   : > { %4631 = vmatmul.mubr.bf16.vlgmr.msra.gmra.mrb[56].mxu0 %v2669_v22 }
0x1431   : > { %4655 = vmatpush3.bf16.msra.mxu0 %v6032_v32  ;;  %4670 = vmatprep.mubr.msk.bf16.mxu0 %vm5204_vm0, %v5203_v9 }
0x1432   : > { %4656 = vmatprep.subr.bf16.mxu0 %v5203_v9 }
0x1435   : > { %4657 = vmatpush3.bf16.msra.mxu0 %v6036_v33 }
0x1436   : > { %4658 = vmatprep.subr.bf16.mxu0 %v5203_v9 }
0x1439   : > { %4659 = vmatpush3.bf16.msra.mxu0 %v6040_v34 }
0x143a   : > { %4660 = vmatprep.subr.bf16.mxu0 %v5203_v9 }
0x143d   : > { %4661 = vmatpush3.bf16.msra.mxu0 %v6044_v35 }
0x143e   : > { %4662 = vmatprep.subr.bf16.mxu0 %v5203_v9 }
0x1441   : > { %4663 = vmatpush3.bf16.msra.mxu0 %v6048_v36 }
0x1442   : > { %4664 = vmatprep.subr.bf16.mxu0 %v5203_v9 }
0x1445   : > { %4665 = vmatpush3.bf16.msra.mxu0 %v6052_v37 }
0x1446   : > { %4666 = vmatprep.subr.bf16.mxu0 %v5203_v9 }
0x1449   : > { %4667 = vmatpush3.bf16.msra.mxu0 %v6056_v38 }
0x144a   : > { %4668 = vmatprep.subr.bf16.mxu0 %v5203_v9 }
0x144d   : > { %4669 = vmatpush3.bf16.msra.mxu0 %v6060_v39 }
0x144e   : > { %4694 = vmatprep.subr.bf16.mxu0 %v5203_v9 }
0x1503   : > { %v2704_v50 = vpop.f32.mrb[56].mxu0 }
0x1504   : > { %v2710_v24 = vadd.f32 %v2704_v50, %v2483_v23  ;;  %v4632_v14 = vpop.f32.mrb[57].mxu0 }
0x1505   : > { %v2707_v25 = vpop.f32.mrb[58].mxu0 }
0x1506   : > { %5085 = vtanh.f32 %v2710_v24  ;;  %v4633_v26 = vpop.f32.mrb[59].mxu0 }
0x1510   : > { %v6175_v27 = vpop.eup %5085 }
0x1511   : > { %v2714_v28 = vpack.c.bf16 %v6175_v27, %v6175_v27  ;;  %v2902_v55 = vpack.c.bf16 %v6175_v27, %v6151_v12  ;;  %v2499_v12 = vadd.f32 %v6145_v19, %v6079_v45 }
0x1513   : > { %4651 = vmatmul.mubr.bf16.vlgmr.msra.gmra.mrb[68].mxu1 %v2714_v28 }
0x1514   : > { %4675 = vmatpush3.bf16.msra.mxu1 %v6032_v32  ;;  %4690 = vmatprep.mubr.msk.bf16.mxu1 %vm5204_vm0, %v5203_v9 }
0x1515   : > { %4676 = vmatprep.subr.bf16.mxu1 %v5203_v9 }
0x1518   : > { %4677 = vmatpush3.bf16.msra.mxu1 %v6036_v33 }
0x1519   : > { %4678 = vmatprep.subr.bf16.mxu1 %v5203_v9 }
0x151c   : > { %4679 = vmatpush3.bf16.msra.mxu1 %v6040_v34 }
0x151d   : > { %4680 = vmatprep.subr.bf16.mxu1 %v5203_v9 }
0x1520   : > { %4681 = vmatpush3.bf16.msra.mxu1 %v6044_v35 }
0x1521   : > { %4682 = vmatprep.subr.bf16.mxu1 %v5203_v9 }
0x1524   : > { %4683 = vmatpush3.bf16.msra.mxu1 %v6048_v36 }
0x1525   : > { %4684 = vmatprep.subr.bf16.mxu1 %v5203_v9 }
0x1528   : > { %4685 = vmatpush3.bf16.msra.mxu1 %v6052_v37 }
0x1529   : > { %4686 = vmatprep.subr.bf16.mxu1 %v5203_v9 }
0x152c   : > { %4687 = vmatpush3.bf16.msra.mxu1 %v6056_v38 }
0x152d   : > { %4688 = vmatprep.subr.bf16.mxu1 %v5203_v9 }
0x1530   : > { %4689 = vmatpush3.bf16.msra.mxu1 %v6060_v39 }
0x15e6   : > { %v2749_v30 = vpop.f32.mrb[68].mxu1 }
0x15e7   : > { %v2755_v31 = vadd.f32 %v2749_v30, %v2488_v29  ;;  %v4652_v40 = vpop.f32.mrb[69].mxu1 }
0x15e8   : > { %v2752_v41 = vpop.f32.mrb[70].mxu1 }
0x15e9   : > { %5087 = vtanh.f32 %v2755_v31  ;;  %v4653_v42 = vpop.f32.mrb[71].mxu1 }
0x15f3   : > { %v5088_v43 = vpop.eup %5087 }
0x15f4   : > { %v2759_v5 = vpack.c.bf16 %v5088_v43, %v5088_v43 }
0x15f6   : > { %4671 = vmatmul.mubr.bf16.vlgmr.msra.gmra.mrb[60].mxu0 %v2759_v5 }
0x15f7   : > { %4695 = vmatpush3.bf16.msra.mxu0 %v6032_v32  ;;  %4710 = vmatprep.mubr.msk.bf16.mxu0 %vm5204_vm0, %v5203_v9  ;;  %v5015_v32 = vld [vmem:[#allocation5 + $0xc0] sm:$0xff]  }
0x15f8   : > { %4696 = vmatprep.subr.bf16.mxu0 %v5203_v9  ;;  %4714 = vmatprep.subr.bf16.mxu1 %v5015_v32 }
0x15fb   : > { %4697 = vmatpush3.bf16.msra.mxu0 %v6036_v33  ;;  %v2491_v33 = vadd.f32 %v6079_v45, %v6147_v20 }
0x15fc   : > { %4698 = vmatprep.subr.bf16.mxu0 %v5203_v9 }
0x15ff   : > { %4699 = vmatpush3.bf16.msra.mxu0 %v6040_v34 }
0x1600   : > { %4700 = vmatprep.subr.bf16.mxu0 %v5203_v9 }
0x1603   : > { %4701 = vmatpush3.bf16.msra.mxu0 %v6044_v35 }
0x1604   : > { %4702 = vmatprep.subr.bf16.mxu0 %v5203_v9 }
0x1607   : > { %4703 = vmatpush3.bf16.msra.mxu0 %v6048_v36 }
0x1608   : > { %4704 = vmatprep.subr.bf16.mxu0 %v5203_v9 }
0x160b   : > { %4705 = vmatpush3.bf16.msra.mxu0 %v6052_v37 }
0x160c   : > { %4706 = vmatprep.subr.bf16.mxu0 %v5203_v9 }
0x160f   : > { %4707 = vmatpush3.bf16.msra.mxu0 %v6056_v38  ;;  %v5016_v38 = vld [vmem:[#allocation5 + $0xc8] sm:$0xff]  }
0x1610   : > { %4708 = vmatprep.subr.bf16.mxu0 %v5203_v9 }
0x1613   : > { %4709 = vmatpush3.bf16.msra.mxu0 %v6060_v39  ;;  %v5017_v39 = vld [vmem:[#allocation5 + $0xd0] sm:$0xff]  }
0x1614   : > { %4738 = vmatprep.subr.bf16.mxu0 %v5203_v9 }
0x16c9   : > { %v2794_v34 = vpop.f32.mrb[60].mxu0 }
0x16ca   : > { %v2800_v35 = vadd.f32 %v2794_v34, %v2491_v33  ;;  %v4672_v36 = vpop.f32.mrb[61].mxu0 }
0x16cb   : > { %v2797_v15 = vpop.f32.mrb[62].mxu0 }
0x16cc   : > { %5089 = vtanh.f32 %v2800_v35  ;;  %v4673_v37 = vpop.f32.mrb[63].mxu0 }
0x16d6   : > { %v5090_v44 = vpop.eup %5089 }
0x16d7   : > { %v2804_v48 = vpack.c.bf16 %v5090_v44, %v5090_v44  ;;  %v2903_v56 = vpack.c.bf16 %v5090_v44, %v5088_v43 }
0x16d9   : > { %4691 = vmatmul.mubr.bf16.vlgmr.msra.gmra.mrb[72].mxu1 %v2804_v48 }
0x16da   : > { %4715 = vmatpush3.bf16.msra.mxu1 %v5015_v32  ;;  %4730 = vmatprep.mubr.bf16.mxu1 %v2901_v51 }
0x16db   : > { %4716 = vmatprep.subr.bf16.mxu1 %v5016_v38 }
0x16de   : > { %4717 = vmatpush3.bf16.msra.mxu1 %v5016_v38 }
0x16df   : > { %4718 = vmatprep.subr.bf16.mxu1 %v5017_v39 }
0x16e2   : > { %4719 = vmatpush3.bf16.msra.mxu1 %v5017_v39 }
0x16e3   : > { %4720 = vmatprep.subr.bf16.mxu1 %v5018_v46 }
0x16e6   : > { %4721 = vmatpush3.bf16.msra.mxu1 %v5018_v46 }
0x16e7   : > { %4722 = vmatprep.subr.bf16.mxu1 %v5019_v47 }
0x16ea   : > { %4723 = vmatpush3.bf16.msra.mxu1 %v5019_v47 }
0x16eb   : > { %4724 = vmatprep.subr.bf16.mxu1 %v5020_v52 }
0x16ee   : > { %4725 = vmatpush3.bf16.msra.mxu1 %v5020_v52 }
0x16ef   : > { %4726 = vmatprep.subr.bf16.mxu1 %v5021_v53 }
0x16f2   : > { %4727 = vmatpush3.bf16.msra.mxu1 %v5021_v53 }
0x16f3   : > { %4728 = vmatprep.subr.bf16.mxu1 %v5022_v54 }
0x16f6   : > { %4729 = vmatpush3.bf16.msra.mxu1 %v5022_v54 }
0x16f7   : > { %4758 = vmatprep.subr.bf16.mxu1 %v5203_v9 }
0x16f9   : > { %4731 = vmatmul.mubr.bf16.vlgmr.msra.gmra.mrb[76].mxu1 %v2902_v55 }
0x16fa   : > { %4734 = vmatprep.mubr.bf16.mxu1 %v2903_v56  ;;  %4759 = vmatpush3.bf16.msra.mxu1 %v6222_v57 }
0x16fb   : > { %4760 = vmatprep.subr.bf16.mxu1 %v5203_v9 }
0x16fe   : > { %4761 = vmatpush3.bf16.msra.mxu1 %v6226_v58 }
0x16ff   : > { %4762 = vmatprep.subr.bf16.mxu1 %v5203_v9 }
0x1702   : > { %4763 = vmatpush3.bf16.msra.mxu1 %v6230_v59 }
0x1703   : > { %4764 = vmatprep.subr.bf16.mxu1 %v5203_v9 }
0x1706   : > { %4765 = vmatpush3.bf16.msra.mxu1 %v6234_v60 }
0x1707   : > { %4766 = vmatprep.subr.bf16.mxu1 %v5203_v9 }
0x170a   : > { %4767 = vmatpush3.bf16.msra.mxu1 %v6238_v61 }
0x170b   : > { %4768 = vmatprep.subr.bf16.mxu1 %v5203_v9 }
0x170e   : > { %4769 = vmatpush3.bf16.msra.mxu1 %v6242_v62 }
0x170f   : > { %4770 = vmatprep.subr.bf16.mxu1 %v5203_v9 }
0x1712   : > { %4771 = vmatpush3.bf16.msra.mxu1 %v6246_v63 }
0x1713   : > { %4772 = vmatprep.subr.bf16.mxu1 %v5203_v9 }
0x1716   : > { %4773 = vmatpush3.bf16.msra.mxu1 %v6250_v0 }
0x1717   : > { %4798 = vmatprep.subr.bf16.mxu1 %v5203_v9 }
0x17ac   : > { %v2839_v2 = vpop.f32.mrb[72].mxu1 }
0x17ad   : > { %v2845_v3 = vadd.f32 %v2839_v2, %v2496_v1  ;;  %v4692_v4 = vpop.f32.mrb[73].mxu1 }
0x17ae   : > { %v2842_v13 = vpop.f32.mrb[74].mxu1 }
0x17af   : > { %5091 = vtanh.f32 %v2845_v3  ;;  %v4693_v49 = vpop.f32.mrb[75].mxu1 }
0x17b9   : > { %v5092_v16 = vpop.eup %5091 }
0x17ba   : > { %v2849_v18 = vpack.c.bf16 %v5092_v16, %v5092_v16 }
0x17bc   : > { %4711 = vmatmul.mubr.bf16.vlgmr.msra.gmra.mrb[64].mxu0 %v2849_v18 }
0x17bd   : > { %4739 = vmatpush3.bf16.msra.mxu0 %v6222_v57  ;;  %4754 = vmatprep.mubr.msk.bf16.mxu0 %vm5204_vm0, %v5203_v9 }
0x17be   : > { %4740 = vmatprep.subr.bf16.mxu0 %v5203_v9 }
0x17c1   : > { %4741 = vmatpush3.bf16.msra.mxu0 %v6226_v58 }
0x17c2   : > { %4742 = vmatprep.subr.bf16.mxu0 %v5203_v9 }
0x17c5   : > { %4743 = vmatpush3.bf16.msra.mxu0 %v6230_v59 }
0x17c6   : > { %4744 = vmatprep.subr.bf16.mxu0 %v5203_v9 }
0x17c9   : > { %4745 = vmatpush3.bf16.msra.mxu0 %v6234_v60 }
0x17ca   : > { %4746 = vmatprep.subr.bf16.mxu0 %v5203_v9 }
0x17cc   : > { %v6271_v20 = vpop.f32.mrb[76].mxu1 }
0x17cd   : > { %v3012_v6 = vpop.f32.mrb[77].mxu1  ;;  %4747 = vmatpush3.bf16.msra.mxu0 %v6238_v61  ;;  %v3021_v32 = vadd.f32 %v6271_v20, %v6269_v17 }
0x17ce   : > { %v3013_v7 = vadd.f32 %v6269_v17, %v3012_v6  ;;  %v6275_v8 = vpop.f32.mrb[78].mxu1  ;;  %4748 = vmatprep.subr.bf16.mxu0 %v5203_v9 }
0x17cf   : > { %v3015_v10 = vpop.f32.mrb[79].mxu1  ;;  %v3024_v48 = vadd.f32 %v6275_v8, %v6269_v17 }
0x17d0   : > { %5093 = vtanh.f32 %v3013_v7  ;;  %v3016_v27 = vadd.f32 %v6269_v17, %v3015_v10 }
0x17d1   : > { %4749 = vmatpush3.bf16.msra.mxu0 %v6242_v62 }
0x17d2   : > { %4750 = vmatprep.subr.bf16.mxu0 %v5203_v9 }
0x17d5   : > { %4751 = vmatpush3.bf16.msra.mxu0 %v6246_v63 }
0x17d6   : > { %4752 = vmatprep.subr.bf16.mxu0 %v5203_v9 }
0x17d9   : > { %4753 = vmatpush3.bf16.msra.mxu0 %v6250_v0 }
0x17da   : > { %v5094_v11 = vpop.eup %5093  ;;  %4778 = vmatprep.subr.bf16.mxu0 %v5203_v9 }
0x17db   : > { %v3072_v21 = vpack.c.bf16 %v5094_v11, %v5094_v11 }
0x17dd   : > { %4755 = vmatmul.mubr.bf16.vlgmr.msra.gmra.mrb[68].mxu0 %v3072_v21 }
0x17de   : > { %4779 = vmatpush3.bf16.msra.mxu0 %v6222_v57  ;;  %4794 = vmatprep.mubr.msk.bf16.mxu0 %vm5204_vm0, %v5203_v9 }
0x17df   : > { %4780 = vmatprep.subr.bf16.mxu0 %v5203_v9 }
0x17e2   : > { %4781 = vmatpush3.bf16.msra.mxu0 %v6226_v58 }
0x17e3   : > { %4782 = vmatprep.subr.bf16.mxu0 %v5203_v9 }
0x17e6   : > { %4783 = vmatpush3.bf16.msra.mxu0 %v6230_v59 }
0x17e7   : > { %4784 = vmatprep.subr.bf16.mxu0 %v5203_v9 }
0x17ea   : > { %4785 = vmatpush3.bf16.msra.mxu0 %v6234_v60 }
0x17eb   : > { %4786 = vmatprep.subr.bf16.mxu0 %v5203_v9 }
0x17ee   : > { %4787 = vmatpush3.bf16.msra.mxu0 %v6238_v61 }
0x17ef   : > { %4788 = vmatprep.subr.bf16.mxu0 %v5203_v9 }
0x17f2   : > { %4789 = vmatpush3.bf16.msra.mxu0 %v6242_v62 }
0x17f3   : > { %4790 = vmatprep.subr.bf16.mxu0 %v5203_v9 }
0x17f6   : > { %4791 = vmatpush3.bf16.msra.mxu0 %v6246_v63 }
0x17f7   : > { %4792 = vmatprep.subr.bf16.mxu0 %v5203_v9 }
0x17fa   : > { %4793 = vmatpush3.bf16.msra.mxu0 %v6250_v0 }
0x17fb   : > { %4818 = vmatprep.subr.bf16.mxu0 %v5203_v9 }
0x188f   : > { %v2884_v22 = vpop.f32.mrb[64].mxu0 }
0x1890   : > { %v2890_v23 = vadd.f32 %v2884_v22, %v2499_v12  ;;  %v4712_v50 = vpop.f32.mrb[65].mxu0 }
0x1891   : > { %v2887_v24 = vpop.f32.mrb[66].mxu0  ;;  %v3651_v50 = vld [vmem:[%s6419_s7] ss:$0 sm:$0xff] }
0x1892   : > { %5095 = vtanh.f32 %v2890_v23  ;;  %v4713_v14 = vpop.f32.mrb[67].mxu0 }
0x189c   : > { %v5096_v25 = vpop.eup %5095 }
0x189d   : > { %v2904_v26 = vpack.c.bf16 %v5096_v25, %v5092_v16  ;;  %v3652_v25 = vld [vmem:[#allocation3] ss:$0 sm:$0xff] }
0x189f   : > { %4735 = vmatmul.mubr.bf16.gmra.mrb[80].mxu1 %v2904_v26 }
0x18a0   : > { %4774 = vmatprep.mubr.msk.bf16.mxu1 %vm5204_vm0, %v5203_v9 }
0x18b0   : > { %v3155_v28 = vpop.f32.mrb[68].mxu0 }
0x18b1   : > { %v3161_v29 = vadd.f32 %v3155_v28, %v3016_v27  ;;  %v4756_v30 = vpop.f32.mrb[69].mxu0 }
0x18b2   : > { %v3158_v31 = vpop.f32.mrb[70].mxu0 }
0x18b3   : > { %5097 = vtanh.f32 %v3161_v29  ;;  %v4757_v45 = vpop.f32.mrb[71].mxu0 }
0x18bd   : > { %v5098_v19 = vpop.eup %5097 }
0x18be   : > { %v3165_v40 = vpack.c.bf16 %v5098_v19, %v5098_v19 }
0x18c0   : > { %4775 = vmatmul.mubr.bf16.vlgmr.msra.gmra.mrb[84].mxu1 %v3165_v40 }
0x18c1   : > { %4799 = vmatpush3.bf16.msra.mxu1 %v6222_v57  ;;  %4814 = vmatprep.mubr.msk.bf16.mxu1 %vm5204_vm0, %v5203_v9 }
0x18c2   : > { %4800 = vmatprep.subr.bf16.mxu1 %v5203_v9 }
0x18c5   : > { %4801 = vmatpush3.bf16.msra.mxu1 %v6226_v58 }
0x18c6   : > { %4802 = vmatprep.subr.bf16.mxu1 %v5203_v9 }
0x18c9   : > { %4803 = vmatpush3.bf16.msra.mxu1 %v6230_v59 }
0x18ca   : > { %4804 = vmatprep.subr.bf16.mxu1 %v5203_v9 }
0x18cd   : > { %4805 = vmatpush3.bf16.msra.mxu1 %v6234_v60 }
0x18ce   : > { %4806 = vmatprep.subr.bf16.mxu1 %v5203_v9 }
0x18d1   : > { %4807 = vmatpush3.bf16.msra.mxu1 %v6238_v61 }
0x18d2   : > { %4808 = vmatprep.subr.bf16.mxu1 %v5203_v9 }
0x18d5   : > { %4809 = vmatpush3.bf16.msra.mxu1 %v6242_v62 }
0x18d6   : > { %4810 = vmatprep.subr.bf16.mxu1 %v5203_v9 }
0x18d9   : > { %4811 = vmatpush3.bf16.msra.mxu1 %v6246_v63 }
0x18da   : > { %4812 = vmatprep.subr.bf16.mxu1 %v5203_v9 }
0x18dd   : > { %4813 = vmatpush3.bf16.msra.mxu1 %v6250_v0 }
0x18de   : > { %4838 = vmatprep.subr.bf16.mxu1 %v5203_v9 }
0x1972   : > { %v6325_v41 = vpop.f32.mrb[80].mxu1 }
0x1973   : > { %v3028_v42 = vpop.f32.mrb[81].mxu1 }
0x1974   : > { %v6327_v43 = vpop.f32.mrb[82].mxu1  ;;  %v3029_v54 = vadd.f32 %v6269_v17, %v3028_v42 }
0x1975   : > { %v6329_v5 = vpop.f32.mrb[83].mxu1  ;;  %v3040_v10 = vadd.f32 %v6327_v43, %v6269_v17 }
0x1993   : > { %v3200_v33 = vpop.f32.mrb[84].mxu1 }
0x1994   : > { %v3206_v34 = vadd.f32 %v3200_v33, %v3021_v32  ;;  %v4776_v35 = vpop.f32.mrb[85].mxu1 }
0x1995   : > { %v3203_v36 = vpop.f32.mrb[86].mxu1 }
0x1996   : > { %5099 = vtanh.f32 %v3206_v34  ;;  %v4777_v15 = vpop.f32.mrb[87].mxu1 }
0x19a0   : > { %v5100_v37 = vpop.eup %5099 }
0x19a1   : > { %v3210_v44 = vpack.c.bf16 %v5100_v37, %v5100_v37 }
0x19a3   : > { %4795 = vmatmul.mubr.bf16.vlgmr.msra.gmra.mrb[72].mxu0 %v3210_v44 }
0x19a4   : > { %4819 = vmatpush3.bf16.msra.mxu0 %v6222_v57  ;;  %4834 = vmatprep.mubr.msk.bf16.mxu0 %vm5204_vm0, %v5203_v9 }
0x19a5   : > { %4820 = vmatprep.subr.bf16.mxu0 %v5203_v9 }
0x19a8   : > { %4821 = vmatpush3.bf16.msra.mxu0 %v6226_v58 }
0x19a9   : > { %4822 = vmatprep.subr.bf16.mxu0 %v5203_v9 }
0x19ac   : > { %4823 = vmatpush3.bf16.msra.mxu0 %v6230_v59 }
0x19ad   : > { %4824 = vmatprep.subr.bf16.mxu0 %v5203_v9 }
0x19b0   : > { %4825 = vmatpush3.bf16.msra.mxu0 %v6234_v60 }
0x19b1   : > { %4826 = vmatprep.subr.bf16.mxu0 %v5203_v9 }
0x19b4   : > { %4827 = vmatpush3.bf16.msra.mxu0 %v6238_v61 }
0x19b5   : > { %4828 = vmatprep.subr.bf16.mxu0 %v5203_v9 }
0x19b8   : > { %4829 = vmatpush3.bf16.msra.mxu0 %v6242_v62 }
0x19b9   : > { %4830 = vmatprep.subr.bf16.mxu0 %v5203_v9 }
0x19bc   : > { %4831 = vmatpush3.bf16.msra.mxu0 %v6246_v63 }
0x19bd   : > { %4832 = vmatprep.subr.bf16.mxu0 %v5203_v9 }
0x19c0   : > { %4833 = vmatpush3.bf16.msra.mxu0 %v6250_v0 }
0x19c1   : > { %4858 = vmatprep.subr.bf16.mxu0 %v5203_v9 }
0x1a76   : > { %v3245_v38 = vpop.f32.mrb[72].mxu0 }
0x1a77   : > { %v3251_v51 = vadd.f32 %v3245_v38, %v3024_v48  ;;  %v4796_v39 = vpop.f32.mrb[73].mxu0 }
0x1a78   : > { %v3248_v46 = vpop.f32.mrb[74].mxu0 }
0x1a79   : > { %5101 = vtanh.f32 %v3251_v51  ;;  %v4797_v47 = vpop.f32.mrb[75].mxu0 }
0x1a83   : > { %v5102_v52 = vpop.eup %5101 }
0x1a84   : > { %v3255_v53 = vpack.c.bf16 %v5102_v52, %v5102_v52 }
0x1a86   : > { %4815 = vmatmul.mubr.bf16.vlgmr.msra.gmra.mrb[88].mxu1 %v3255_v53 }
0x1a87   : > { %4839 = vmatpush3.bf16.msra.mxu1 %v6222_v57  ;;  %4854 = vmatprep.mubr.msk.bf16.mxu1 %vm5204_vm0, %v5203_v9 }
0x1a88   : > { %4840 = vmatprep.subr.bf16.mxu1 %v5203_v9 }
0x1a8b   : > { %4841 = vmatpush3.bf16.msra.mxu1 %v6226_v58 }
0x1a8c   : > { %4842 = vmatprep.subr.bf16.mxu1 %v5203_v9 }
0x1a8f   : > { %4843 = vmatpush3.bf16.msra.mxu1 %v6230_v59 }
0x1a90   : > { %4844 = vmatprep.subr.bf16.mxu1 %v5203_v9 }
0x1a93   : > { %4845 = vmatpush3.bf16.msra.mxu1 %v6234_v60 }
0x1a94   : > { %4846 = vmatprep.subr.bf16.mxu1 %v5203_v9 }
0x1a97   : > { %4847 = vmatpush3.bf16.msra.mxu1 %v6238_v61 }
0x1a98   : > { %4848 = vmatprep.subr.bf16.mxu1 %v5203_v9 }
0x1a9b   : > { %4849 = vmatpush3.bf16.msra.mxu1 %v6242_v62 }
0x1a9c   : > { %4850 = vmatprep.subr.bf16.mxu1 %v5203_v9 }
0x1a9f   : > { %4851 = vmatpush3.bf16.msra.mxu1 %v6246_v63 }
0x1aa0   : > { %4852 = vmatprep.subr.bf16.mxu1 %v5203_v9 }
0x1aa3   : > { %4853 = vmatpush3.bf16.msra.mxu1 %v6250_v0 }
0x1b59   : > { %v3290_v55 = vpop.f32.mrb[88].mxu1 }
0x1b5a   : > { %v3296_v56 = vadd.f32 %v3290_v55, %v3029_v54  ;;  %v4816_v1 = vpop.f32.mrb[89].mxu1 }
0x1b5b   : > { %v3293_v2 = vpop.f32.mrb[90].mxu1 }
0x1b5c   : > { %5103 = vtanh.f32 %v3296_v56  ;;  %v4817_v3 = vpop.f32.mrb[91].mxu1 }
0x1b66   : > { %v5104_v4 = vpop.eup %5103 }
0x1b67   : > { %v3300_v13 = vpack.c.bf16 %v5104_v4, %v5104_v4 }
0x1b69   : > { %4835 = vmatmul.mubr.bf16.vlgmr.msra.gmra.mrb[76].mxu0 %v3300_v13 }
0x1b6a   : > { %4859 = vmatpush3.bf16.msra.mxu0 %v6222_v57  ;;  %4874 = vmatprep.mubr.msk.bf16.mxu0 %vm5204_vm0, %v5203_v9  ;;  %v3032_v57 = vadd.f32 %v6269_v17, %v6329_v5 }
0x1b6b   : > { %4860 = vmatprep.subr.bf16.mxu0 %v5203_v9 }
0x1b6e   : > { %4861 = vmatpush3.bf16.msra.mxu0 %v6226_v58 }
0x1b6f   : > { %4862 = vmatprep.subr.bf16.mxu0 %v5203_v9 }
0x1b72   : > { %4863 = vmatpush3.bf16.msra.mxu0 %v6230_v59 }
0x1b73   : > { %4864 = vmatprep.subr.bf16.mxu0 %v5203_v9 }
0x1b76   : > { %4865 = vmatpush3.bf16.msra.mxu0 %v6234_v60 }
0x1b77   : > { %4866 = vmatprep.subr.bf16.mxu0 %v5203_v9 }
0x1b7a   : > { %4867 = vmatpush3.bf16.msra.mxu0 %v6238_v61 }
0x1b7b   : > { %4868 = vmatprep.subr.bf16.mxu0 %v5203_v9 }
0x1b7e   : > { %4869 = vmatpush3.bf16.msra.mxu0 %v6242_v62  ;;  %v3037_v62 = vadd.f32 %v6325_v41, %v6269_v17 }
0x1b7f   : > { %4870 = vmatprep.subr.bf16.mxu0 %v5203_v9 }
0x1b82   : > { %4871 = vmatpush3.bf16.msra.mxu0 %v6246_v63 }
0x1b83   : > { %4872 = vmatprep.subr.bf16.mxu0 %v5203_v9 }
0x1b86   : > { %4873 = vmatpush3.bf16.msra.mxu0 %v6250_v0 }
0x1c3c   : > { %v3335_v58 = vpop.f32.mrb[76].mxu0 }
0x1c3d   : > { %v3341_v59 = vadd.f32 %v3335_v58, %v3032_v57  ;;  %v4836_v60 = vpop.f32.mrb[77].mxu0 }
0x1c3e   : > { %v3338_v49 = vpop.f32.mrb[78].mxu0 }
0x1c3f   : > { %5105 = vtanh.f32 %v3341_v59  ;;  %v4837_v61 = vpop.f32.mrb[79].mxu0 }
0x1c49   : > { %v5106_v16 = vpop.eup %5105 }
0x1c4a   : > { %v3345_v18 = vpack.c.bf16 %v5106_v16, %v5106_v16 }
0x1c4c   : > { %4855 = vmatmul.mubr.bf16.vlgmr.msra.gmra.mrb[92].mxu1 %v3345_v18 }
0x1d1f   : > { %v3380_v63 = vpop.f32.mrb[92].mxu1 }
0x1d20   : > { %v3386_v20 = vadd.f32 %v3380_v63, %v3037_v62  ;;  %v4856_v9 = vpop.f32.mrb[93].mxu1 }
0x1d21   : > { %v3383_v6 = vpop.f32.mrb[94].mxu1 }
0x1d22   : > { %5107 = vtanh.f32 %v3386_v20  ;;  %v4857_v0 = vpop.f32.mrb[95].mxu1 }
0x1d2c   : > { %v5108_v7 = vpop.eup %5107 }
0x1d2d   : > { %v3390_v8 = vpack.c.bf16 %v5108_v7, %v5108_v7 }
0x1d2f   : > { %4875 = vmatmul.mubr.bf16.vlgmr.msra.gmra.mrb[80].mxu0 %v3390_v8 }
0x1e02   : > { %v3425_v11 = vpop.f32.mrb[80].mxu0 }
0x1e03   : > { %v3431_v21 = vadd.f32 %v3425_v11, %v3040_v10  ;;  %v4876_v12 = vpop.f32.mrb[81].mxu0 }
0x1e04   : > { %v3428_v22 = vpop.f32.mrb[82].mxu0 }
0x1e05   : > { %5109 = vtanh.f32 %v3431_v21  ;;  %v4877_v23 = vpop.f32.mrb[83].mxu0 }
0x1e0f   : > { %v5110_v24 = vpop.eup %5109 }
0x1e10   : > { %v3441_v14 = vmul.f32 %v5110_v24, %v3651_v50 }
0x1e12   : > { %3442 = vadd.xlane.f32.xlu0 %v3441_v14 }
0x1e9f   : > { %v3443_v26 = vpop.xlane.xlu0 %3442 }
0x1ea0   : > { %v3451_v27 = vadd.f32 %v3652_v25, %v3443_v26 }
0x1ea2   : > { %v3452_v17 = vmax.f32 %v3451_v27, 0.0 }
0x1ea4   : > { %3454 = vst.msk [vmem:[%s424_s30] sm:$0xff] %vm3453_vm3, %v3452_v17 }
0x1ea5 PF: > { %p20_p0 = scmp.ge.s32.totalorder %s5277_s14, 4   ;;  %s6433_s11 = smov %s5193_s12 }
0x1ea6   : > { %s6434_s12 = smov %s5287_s17  ;;  %s6435_s13 = smov %s5277_s14 }
0x1ea7   :  { %22 = sbr.rel (!%p20_p0) target bundleno = 6 (0x6), region = 154 }
0x1eae   :  { %3474 = vsyncpa [#allocation6], 1 }
0x1eaf   :  { %3476 = vsyncpa [#allocation6 + $0x1], 1 }
0x1eb0   :  { %3477 = vsyncpa [#allocation8], 1 }

</bundles_post_ra>
